<compile_context>
chip_gen: v6e
topology: v6e:2x2x1
jax: 0.10.0
libtpu: 0.0.40
codegen_flags: <defaults>
</compile_context>

<pallas_src>
import jax
import jax.numpy as jnp
from jax.experimental import pallas as pl
from jax.experimental.pallas import tpu as pltpu

C_CONV = 64       # fixed by nn.Conv1d(64, 64, ...)
LN_EPS = 1e-5     # nn.LayerNorm default
_SQRT_2_OVER_PI = 0.7978845608028654


def _gelu_tanh(x):
    # tanh-approximate GELU (EUP tanh); used identically in kernel + reference.
    return 0.5 * x * (1.0 + jnp.tanh(_SQRT_2_OVER_PI * (x + 0.044715 * x * x * x)))


# ----------------------------------------------------------------------------
# Fused kernel: LayerNorm -> fn(MLP) -> +x -> Conv1d(64,64,k=3,pad=1)
# One grid step == NB batch elements; block is the full (NB, C=64, D) slab.
# ----------------------------------------------------------------------------
def _prenorm_residual_kernel(x_ref, lnw_ref, lnb_ref, w1_ref, b1_ref,
                             w2_ref, b2_ref, cw_ref, cb_ref, o_ref):
    NB, C, D = x_ref.shape

    # Merge leading dims (free reshape: last two dims untouched) so the MLP
    # matmuls run with M = NB*64 rows on the MXU.
    xf = x_ref[...].astype(jnp.float32).reshape(NB * C, D)

    # LayerNorm over the last (lane) axis, per row, eps = 1e-5 (f32 stats).
    mu = jnp.mean(xf, axis=-1, keepdims=True)
    xc = xf - mu
    var = jnp.mean(xc * xc, axis=-1, keepdims=True)
    y = xc * jax.lax.rsqrt(var + LN_EPS)
    y = y * lnw_ref[...] + lnb_ref[...]                    # (1, D) affine broadcast

    # fn: Linear(D,H) -> GELU(tanh) -> Linear(H,D).
    # bf16 operands on the MXU, f32 accumulation; biases / GELU stay f32.
    h = jnp.dot(y.astype(jnp.bfloat16), w1_ref[...],
                preferred_element_type=jnp.float32) + b1_ref[...]
    h = _gelu_tanh(h)
    f = jnp.dot(h.astype(jnp.bfloat16), w2_ref[...],
                preferred_element_type=jnp.float32) + b2_ref[...]

    z = f + xf                                             # residual add (f32)

    # Conv1d(64, 64, kernel_size=3, stride=1, padding=1) along the last axis:
    #   out[:, t] = W_-1 @ z[:, t-1] + W_0 @ z[:, t] + W_+1 @ z[:, t+1] + bias
    # Build the two shifted copies from one zero-padded slab (boundary zeros
    # come for free); the three taps are then contracted in a single
    # (C, 3C) x (3C, D) matmul per batch element.
    zero = jnp.zeros((NB * C, 1), jnp.float32)
    zp = jnp.concatenate([zero, z, zero], axis=1)          # (NB*C, D+2)
    z_m1 = zp[:, :D]                                       # z[:, t-1], zero at t=0
    z_p1 = zp[:, 2:]                                       # z[:, t+1], zero at t=D-1

    z_bf = z.astype(jnp.bfloat16)
    zm_bf = z_m1.astype(jnp.bfloat16)
    zp_bf = z_p1.astype(jnp.bfloat16)

    cw = cw_ref[...]                                       # (C, 3C) = [W_-1 | W_0 | W_+1]
    cb = cb_ref[...]                                       # (C, 1) bias
    for n in range(NB):                                    # static unroll, NB small
        rows = slice(n * C, (n + 1) * C)
        zn = jnp.concatenate([zm_bf[rows], z_bf[rows], zp_bf[rows]], axis=0)  # (3C, D)
        o_ref[n] = (jnp.dot(cw, zn, preferred_element_type=jnp.float32)
                    + cb).astype(o_ref.dtype)


def prenorm_residual(params, x, *, nb=None):
    """x: (B, 64, D) -> (B, 64, D). Single fused pallas_call, grid over batch."""
    B, C, D = x.shape
    assert C == C_CONV, (C, C_CONV)
    H = params['w1'].shape[1]

    if nb is None:
        # Largest NB in {4,2,1} dividing B while keeping the grid >= 2 steps
        # (so both v7x TensorCores get work via the "parallel" axis).
        nb = 1
        for cand in (4, 2, 1):
            if B % cand == 0 and B // cand >= min(2, B):
                nb = cand
                break
    assert B % nb == 0, (B, nb)

    f32, bf16 = jnp.float32, jnp.bfloat16
    lnw = params['ln_w'].reshape(1, D).astype(f32)
    lnb = params['ln_b'].reshape(1, D).astype(f32)
    w1 = params['w1'].astype(bf16)
    b1 = params['b1'].reshape(1, H).astype(f32)
    w2 = params['w2'].astype(bf16)
    b2 = params['b2'].reshape(1, D).astype(f32)
    cw = params['conv_w']                                   # (3, C, C), tap-major
    cw_cat = jnp.concatenate([cw[0], cw[1], cw[2]], axis=1).astype(bf16)  # (C, 3C)
    cb = params['conv_b'].reshape(C, 1).astype(f32)

    def const_spec(shape):
        # Weight blocks: whole array, same block every grid step.
        return pl.BlockSpec(shape, lambda b, _n=len(shape): (0,) * _n)

    return pl.pallas_call(
        _prenorm_residual_kernel,
        out_shape=jax.ShapeDtypeStruct((B, C, D), x.dtype),
        grid=(B // nb,),
        in_specs=[
            pl.BlockSpec((nb, C, D), lambda b: (b, 0, 0)),  # x
            const_spec((1, D)), const_spec((1, D)),         # LayerNorm gamma/beta
            const_spec((D, H)), const_spec((1, H)),         # fn Linear 1 (bf16 / f32)
            const_spec((H, D)), const_spec((1, D)),         # fn Linear 2 (bf16 / f32)
            const_spec((C, 3 * C)), const_spec((C, 1)),     # fused Conv1d taps + bias
        ],
        out_specs=pl.BlockSpec((nb, C, D), lambda b: (b, 0, 0)),
        compiler_params=pltpu.CompilerParams(
            dimension_semantics=("parallel",),
            vmem_limit_bytes=32 * 1024 * 1024,
        ),
    )(x, lnw, lnb, w1, b1, w2, b2, cw_cat, cb)


# ----------------------------------------------------------------------------
# Pure-JAX reference (same math, same fn).  matmul_dtype=bfloat16 reproduces
# the kernel's MXU-input casts so the comparison tolerance can stay tight.
# ----------------------------------------------------------------------------
def prenorm_residual_reference(params, x, *, matmul_dtype=jnp.float32):
    D = x.shape[-1]
    md = matmul_dtype
    mu = jnp.mean(x, axis=-1, keepdims=True)
    var = jnp.mean((x - mu) ** 2, axis=-1, keepdims=True)
    y = (x - mu) * jax.lax.rsqrt(var + LN_EPS) * params['ln_w'] + params['ln_b']
    h = _gelu_tanh(jnp.dot(y.astype(md), params['w1'].astype(md),
                           preferred_element_type=jnp.float32) + params['b1'])
    f = jnp.dot(h.astype(md), params['w2'].astype(md),
                preferred_element_type=jnp.float32) + params['b2']
    z = f + x
    zp = jnp.pad(z, ((0, 0), (0, 0), (1, 1))).astype(md)
    cw = params['conv_w'].astype(md)
    out = (jnp.einsum('oc,bct->bot', cw[0], zp[:, :, 0:D],
                      preferred_element_type=jnp.float32)
           + jnp.einsum('oc,bct->bot', cw[1], zp[:, :, 1:D + 1],
                        preferred_element_type=jnp.float32)
           + jnp.einsum('oc,bct->bot', cw[2], zp[:, :, 2:D + 2],
                        preferred_element_type=jnp.float32)
           + params['conv_b'][None, :, None])
    return out


# ----------------------------------------------------------------------------
# Deterministic parameter init
# ----------------------------------------------------------------------------
def init_params(key, dim, hidden):
    ks = jax.random.split(key, 8)

    def nrm(k, shape, s=0.1):
        return s * jax.random.normal(k, shape, jnp.float32)

    return dict(
        ln_w=1.0 + nrm(ks[0], (dim,)),
        ln_b=nrm(ks[1], (dim,)),
        w1=nrm(ks[2], (dim, hidden)),
        b1=nrm(ks[3], (hidden,)),
        w2=nrm(ks[4], (hidden, dim)),
        b2=nrm(ks[5], (dim,)),
        # Conv1d weight in tap-major layout (3, C_out, C_in); PyTorch's
        # (C_out, C_in, 3) maps via .transpose(2, 0, 1).
        conv_w=nrm(ks[6], (3, C_CONV, C_CONV)),
        conv_b=nrm(ks[7], (C_CONV,)),
    )


if __name__ == "__main__":
    key = jax.random.PRNGKey(0)
    pkey, xkey = jax.random.split(key)

    B, C, D, H = 8, C_CONV, 128, 256          # C fixed at 64 by Conv1d(64, 64)
    params = init_params(pkey, D, H)
    x = jax.random.normal(xkey, (B, C, D), jnp.float32)

    fwd = jax.jit(prenorm_residual)
    out = jax.block_until_ready(fwd(params, x))

    assert out.shape == (B, C, D), out.shape
    assert bool(jnp.all(jnp.isfinite(out)))

    # Tight check vs. a reference using the same bf16 matmul-operand casts.
    ref_matched = prenorm_residual_reference(params, x, matmul_dtype=jnp.bfloat16)
    err_matched = float(jnp.max(jnp.abs(out - ref_matched)))
    assert err_matched < 5e-3, f"bf16-matched max abs err {err_matched}"

    # Loose sanity check vs. the full-f32 reference (bounds bf16 rounding).
    ref_f32 = prenorm_residual_reference(params, x, matmul_dtype=jnp.float32)
    err_f32 = float(jnp.max(jnp.abs(out - ref_f32)))
    assert err_f32 < 1e-1, f"f32 reference max abs err {err_f32}"

    print("KERNEL_OK")
</pallas_src>

<mosaic_0001>
module attributes {stable_mosaic.version = 11 : i64} {
  func.func @_prenorm_residual_kernel(%arg0: i32, %arg1: memref<4x64x128xf32, #tpu.memory_space<vmem>>, %arg2: memref<1x128xf32, #tpu.memory_space<vmem>>, %arg3: memref<1x128xf32, #tpu.memory_space<vmem>>, %arg4: memref<128x256xbf16, #tpu.memory_space<vmem>>, %arg5: memref<1x256xf32, #tpu.memory_space<vmem>>, %arg6: memref<256x128xbf16, #tpu.memory_space<vmem>>, %arg7: memref<1x128xf32, #tpu.memory_space<vmem>>, %arg8: memref<64x192xbf16, #tpu.memory_space<vmem>>, %arg9: memref<64x1xf32, #tpu.memory_space<vmem>>, %arg10: memref<4x64x128xf32, #tpu.memory_space<vmem>>) attributes {dimension_semantics = [#tpu.dimension_semantics<parallel>], iteration_bounds = array<i64: 2>, scalar_prefetch = 0 : i64, scratch_operands = 0 : i64, tpu.core_type = #tpu.core_type<tc>, window_params = [{transform_indices = @transform_0, window_bounds = array<i64: 4, 64, 128>}, {pipeline_mode = #tpu.pipeline_mode<synchronous>, transform_indices = @transform_1, window_bounds = array<i64: 1, 128>}, {pipeline_mode = #tpu.pipeline_mode<synchronous>, transform_indices = @transform_2, window_bounds = array<i64: 1, 128>}, {pipeline_mode = #tpu.pipeline_mode<synchronous>, transform_indices = @transform_3, window_bounds = array<i64: 128, 256>}, {pipeline_mode = #tpu.pipeline_mode<synchronous>, transform_indices = @transform_4, window_bounds = array<i64: 1, 256>}, {pipeline_mode = #tpu.pipeline_mode<synchronous>, transform_indices = @transform_5, window_bounds = array<i64: 256, 128>}, {pipeline_mode = #tpu.pipeline_mode<synchronous>, transform_indices = @transform_6, window_bounds = array<i64: 1, 128>}, {pipeline_mode = #tpu.pipeline_mode<synchronous>, transform_indices = @transform_7, window_bounds = array<i64: 64, 192>}, {pipeline_mode = #tpu.pipeline_mode<synchronous>, transform_indices = @transform_8, window_bounds = array<i64: 64, 1>}, {transform_indices = @transform_9, window_bounds = array<i64: 4, 64, 128>}]} {
    %c0 = arith.constant 0 : index
    %c0_0 = arith.constant 0 : index
    %c0_1 = arith.constant 0 : index
    %0 = vector.load %arg1[%c0, %c0_0, %c0_1] : memref<4x64x128xf32, #tpu.memory_space<vmem>>, vector<4x64x128xf32>
    %1 = vector.shape_cast %0 : vector<4x64x128xf32> to vector<256x128xf32>
    %cst = arith.constant dense<0.000000e+00> : vector<256xf32>
    %2 = vector.multi_reduction <add>, %1, %cst [1] : vector<256x128xf32> to vector<256xf32>
    %3 = vector.shape_cast %2 : vector<256xf32> to vector<256x1xf32>
    %cst_2 = arith.constant 1.280000e+02 : f32
    %4 = vector.broadcast %cst_2 : f32 to vector<256x1xf32>
    %5 = arith.divf %3, %4 : vector<256x1xf32>
    %6 = vector.broadcast %5 : vector<256x1xf32> to vector<256x128xf32>
    %7 = arith.subf %1, %6 : vector<256x128xf32>
    %8 = arith.mulf %7, %7 : vector<256x128xf32>
    %cst_3 = arith.constant dense<0.000000e+00> : vector<256xf32>
    %9 = vector.multi_reduction <add>, %8, %cst_3 [1] : vector<256x128xf32> to vector<256xf32>
    %10 = vector.shape_cast %9 : vector<256xf32> to vector<256x1xf32>
    %cst_4 = arith.constant 1.280000e+02 : f32
    %11 = vector.broadcast %cst_4 : f32 to vector<256x1xf32>
    %12 = arith.divf %10, %11 : vector<256x1xf32>
    %cst_5 = arith.constant 9.99999974E-6 : f32
    %13 = vector.broadcast %cst_5 : f32 to vector<256x1xf32>
    %14 = arith.addf %12, %13 : vector<256x1xf32>
    %15 = math.rsqrt %14 : vector<256x1xf32>
    %16 = vector.broadcast %15 : vector<256x1xf32> to vector<256x128xf32>
    %17 = arith.mulf %7, %16 : vector<256x128xf32>
    %c0_6 = arith.constant 0 : index
    %c0_7 = arith.constant 0 : index
    %18 = vector.load %arg2[%c0_6, %c0_7] : memref<1x128xf32, #tpu.memory_space<vmem>>, vector<1x128xf32>
    %19 = vector.broadcast %18 : vector<1x128xf32> to vector<256x128xf32>
    %20 = arith.mulf %17, %19 : vector<256x128xf32>
    %c0_8 = arith.constant 0 : index
    %c0_9 = arith.constant 0 : index
    %21 = vector.load %arg3[%c0_8, %c0_9] : memref<1x128xf32, #tpu.memory_space<vmem>>, vector<1x128xf32>
    %22 = vector.broadcast %21 : vector<1x128xf32> to vector<256x128xf32>
    %23 = arith.addf %20, %22 : vector<256x128xf32>
    %24 = arith.truncf %23 : vector<256x128xf32> to vector<256x128xbf16>
    %c0_10 = arith.constant 0 : index
    %c0_11 = arith.constant 0 : index
    %25 = vector.load %arg4[%c0_10, %c0_11] : memref<128x256xbf16, #tpu.memory_space<vmem>>, vector<128x256xbf16>
    %cst_12 = arith.constant dense<0.000000e+00> : vector<256x256xf32>
    %26 = tpu.matmul %24, %25, %cst_12 {dimension_numbers = #tpu.dot_dimension_numbers<[1], [0], [0], [1], [0, 0, 1, 1], [], []>} : vector<256x128xbf16>, vector<128x256xbf16>, vector<256x256xf32> -> vector<256x256xf32>
    %c0_13 = arith.constant 0 : index
    %c0_14 = arith.constant 0 : index
    %27 = vector.load %arg5[%c0_13, %c0_14] : memref<1x256xf32, #tpu.memory_space<vmem>>, vector<1x256xf32>
    %28 = vector.broadcast %27 : vector<1x256xf32> to vector<256x256xf32>
    %29 = arith.addf %26, %28 : vector<256x256xf32>
    %cst_15 = arith.constant 5.000000e-01 : f32
    %30 = vector.broadcast %cst_15 : f32 to vector<256x256xf32>
    %31 = arith.mulf %30, %29 : vector<256x256xf32>
    %cst_16 = arith.constant 4.471500e-02 : f32
    %32 = vector.broadcast %cst_16 : f32 to vector<256x256xf32>
    %33 = arith.mulf %32, %29 : vector<256x256xf32>
    %34 = arith.mulf %33, %29 : vector<256x256xf32>
    %35 = arith.mulf %34, %29 : vector<256x256xf32>
    %36 = arith.addf %29, %35 : vector<256x256xf32>
    %cst_17 = arith.constant 0.797884583 : f32
    %37 = vector.broadcast %cst_17 : f32 to vector<256x256xf32>
    %38 = arith.mulf %37, %36 : vector<256x256xf32>
    %39 = math.tanh %38 : vector<256x256xf32>
    %cst_18 = arith.constant 1.000000e+00 : f32
    %40 = vector.broadcast %cst_18 : f32 to vector<256x256xf32>
    %41 = arith.addf %40, %39 : vector<256x256xf32>
    %42 = arith.mulf %31, %41 : vector<256x256xf32>
    %43 = arith.truncf %42 : vector<256x256xf32> to vector<256x256xbf16>
    %c0_19 = arith.constant 0 : index
    %c0_20 = arith.constant 0 : index
    %44 = vector.load %arg6[%c0_19, %c0_20] : memref<256x128xbf16, #tpu.memory_space<vmem>>, vector<256x128xbf16>
    %cst_21 = arith.constant dense<0.000000e+00> : vector<256x128xf32>
    %45 = tpu.matmul %43, %44, %cst_21 {dimension_numbers = #tpu.dot_dimension_numbers<[1], [0], [0], [1], [0, 0, 1, 1], [], []>} : vector<256x256xbf16>, vector<256x128xbf16>, vector<256x128xf32> -> vector<256x128xf32>
    %c0_22 = arith.constant 0 : index
    %c0_23 = arith.constant 0 : index
    %46 = vector.load %arg7[%c0_22, %c0_23] : memref<1x128xf32, #tpu.memory_space<vmem>>, vector<1x128xf32>
    %47 = vector.broadcast %46 : vector<1x128xf32> to vector<256x128xf32>
    %48 = arith.addf %45, %47 : vector<256x128xf32>
    %49 = arith.addf %48, %1 : vector<256x128xf32>
    %cst_24 = arith.constant 0.000000e+00 : f32
    %50 = vector.broadcast %cst_24 : f32 to vector<256x1xf32>
    %51 = tpu.concatenate %50, %49, %50 in 1 : vector<256x1xf32>, vector<256x128xf32>, vector<256x1xf32> -> vector<256x130xf32>
    %52 = vector.extract_strided_slice %51 {offsets = [0, 0], sizes = [256, 128], strides = [1, 1]} : vector<256x130xf32> to vector<256x128xf32>
    %53 = vector.extract_strided_slice %51 {offsets = [0, 2], sizes = [256, 128], strides = [1, 1]} : vector<256x130xf32> to vector<256x128xf32>
    %54 = arith.truncf %49 : vector<256x128xf32> to vector<256x128xbf16>
    %55 = arith.truncf %52 : vector<256x128xf32> to vector<256x128xbf16>
    %56 = arith.truncf %53 : vector<256x128xf32> to vector<256x128xbf16>
    %c0_25 = arith.constant 0 : index
    %c0_26 = arith.constant 0 : index
    %57 = vector.load %arg8[%c0_25, %c0_26] : memref<64x192xbf16, #tpu.memory_space<vmem>>, vector<64x192xbf16>
    %c0_27 = arith.constant 0 : index
    %c0_28 = arith.constant 0 : index
    %58 = vector.load %arg9[%c0_27, %c0_28] : memref<64x1xf32, #tpu.memory_space<vmem>>, vector<64x1xf32>
    %59 = vector.extract_strided_slice %55 {offsets = [0, 0], sizes = [64, 128], strides = [1, 1]} : vector<256x128xbf16> to vector<64x128xbf16>
    %60 = vector.extract_strided_slice %54 {offsets = [0, 0], sizes = [64, 128], strides = [1, 1]} : vector<256x128xbf16> to vector<64x128xbf16>
    %61 = vector.extract_strided_slice %56 {offsets = [0, 0], sizes = [64, 128], strides = [1, 1]} : vector<256x128xbf16> to vector<64x128xbf16>
    %62 = tpu.concatenate %59, %60, %61 in 0 : vector<64x128xbf16>, vector<64x128xbf16>, vector<64x128xbf16> -> vector<192x128xbf16>
    %cst_29 = arith.constant dense<0.000000e+00> : vector<64x128xf32>
    %63 = tpu.matmul %57, %62, %cst_29 {dimension_numbers = #tpu.dot_dimension_numbers<[1], [0], [0], [1], [0, 0, 1, 1], [], []>} : vector<64x192xbf16>, vector<192x128xbf16>, vector<64x128xf32> -> vector<64x128xf32>
    %64 = vector.broadcast %58 : vector<64x1xf32> to vector<64x128xf32>
    %65 = arith.addf %63, %64 : vector<64x128xf32>
    %c0_30 = arith.constant 0 : index
    %c0_31 = arith.constant 0 : index
    %c0_32 = arith.constant 0 : index
    %66 = vector.load %arg10[%c0_30, %c0_31, %c0_32] : memref<4x64x128xf32, #tpu.memory_space<vmem>>, vector<1x64x128xf32>
    %67 = vector.shape_cast %66 : vector<1x64x128xf32> to vector<64x128xf32>
    %68 = vector.shape_cast %65 : vector<64x128xf32> to vector<1x64x128xf32>
    tpu.vector_store %arg10[%c0_30, %c0_31, %c0_32], %68 {strides = array<i32>} : memref<4x64x128xf32, #tpu.memory_space<vmem>>, vector<1x64x128xf32>,
    %69 = vector.extract_strided_slice %55 {offsets = [64, 0], sizes = [64, 128], strides = [1, 1]} : vector<256x128xbf16> to vector<64x128xbf16>
    %70 = vector.extract_strided_slice %54 {offsets = [64, 0], sizes = [64, 128], strides = [1, 1]} : vector<256x128xbf16> to vector<64x128xbf16>
    %71 = vector.extract_strided_slice %56 {offsets = [64, 0], sizes = [64, 128], strides = [1, 1]} : vector<256x128xbf16> to vector<64x128xbf16>
    %72 = tpu.concatenate %69, %70, %71 in 0 : vector<64x128xbf16>, vector<64x128xbf16>, vector<64x128xbf16> -> vector<192x128xbf16>
    %cst_33 = arith.constant dense<0.000000e+00> : vector<64x128xf32>
    %73 = tpu.matmul %57, %72, %cst_33 {dimension_numbers = #tpu.dot_dimension_numbers<[1], [0], [0], [1], [0, 0, 1, 1], [], []>} : vector<64x192xbf16>, vector<192x128xbf16>, vector<64x128xf32> -> vector<64x128xf32>
    %74 = vector.broadcast %58 : vector<64x1xf32> to vector<64x128xf32>
    %75 = arith.addf %73, %74 : vector<64x128xf32>
    %c1 = arith.constant 1 : index
    %c0_34 = arith.constant 0 : index
    %c0_35 = arith.constant 0 : index
    %76 = vector.load %arg10[%c1, %c0_34, %c0_35] : memref<4x64x128xf32, #tpu.memory_space<vmem>>, vector<1x64x128xf32>
    %77 = vector.shape_cast %76 : vector<1x64x128xf32> to vector<64x128xf32>
    %78 = vector.shape_cast %75 : vector<64x128xf32> to vector<1x64x128xf32>
    tpu.vector_store %arg10[%c1, %c0_34, %c0_35], %78 {strides = array<i32>} : memref<4x64x128xf32, #tpu.memory_space<vmem>>, vector<1x64x128xf32>,
    %79 = vector.extract_strided_slice %55 {offsets = [128, 0], sizes = [64, 128], strides = [1, 1]} : vector<256x128xbf16> to vector<64x128xbf16>
    %80 = vector.extract_strided_slice %54 {offsets = [128, 0], sizes = [64, 128], strides = [1, 1]} : vector<256x128xbf16> to vector<64x128xbf16>
    %81 = vector.extract_strided_slice %56 {offsets = [128, 0], sizes = [64, 128], strides = [1, 1]} : vector<256x128xbf16> to vector<64x128xbf16>
    %82 = tpu.concatenate %79, %80, %81 in 0 : vector<64x128xbf16>, vector<64x128xbf16>, vector<64x128xbf16> -> vector<192x128xbf16>
    %cst_36 = arith.constant dense<0.000000e+00> : vector<64x128xf32>
    %83 = tpu.matmul %57, %82, %cst_36 {dimension_numbers = #tpu.dot_dimension_numbers<[1], [0], [0], [1], [0, 0, 1, 1], [], []>} : vector<64x192xbf16>, vector<192x128xbf16>, vector<64x128xf32> -> vector<64x128xf32>
    %84 = vector.broadcast %58 : vector<64x1xf32> to vector<64x128xf32>
    %85 = arith.addf %83, %84 : vector<64x128xf32>
    %c2 = arith.constant 2 : index
    %c0_37 = arith.constant 0 : index
    %c0_38 = arith.constant 0 : index
    %86 = vector.load %arg10[%c2, %c0_37, %c0_38] : memref<4x64x128xf32, #tpu.memory_space<vmem>>, vector<1x64x128xf32>
    %87 = vector.shape_cast %86 : vector<1x64x128xf32> to vector<64x128xf32>
    %88 = vector.shape_cast %85 : vector<64x128xf32> to vector<1x64x128xf32>
    tpu.vector_store %arg10[%c2, %c0_37, %c0_38], %88 {strides = array<i32>} : memref<4x64x128xf32, #tpu.memory_space<vmem>>, vector<1x64x128xf32>,
    %89 = vector.extract_strided_slice %55 {offsets = [192, 0], sizes = [64, 128], strides = [1, 1]} : vector<256x128xbf16> to vector<64x128xbf16>
    %90 = vector.extract_strided_slice %54 {offsets = [192, 0], sizes = [64, 128], strides = [1, 1]} : vector<256x128xbf16> to vector<64x128xbf16>
    %91 = vector.extract_strided_slice %56 {offsets = [192, 0], sizes = [64, 128], strides = [1, 1]} : vector<256x128xbf16> to vector<64x128xbf16>
    %92 = tpu.concatenate %89, %90, %91 in 0 : vector<64x128xbf16>, vector<64x128xbf16>, vector<64x128xbf16> -> vector<192x128xbf16>
    %cst_39 = arith.constant dense<0.000000e+00> : vector<64x128xf32>
    %93 = tpu.matmul %57, %92, %cst_39 {dimension_numbers = #tpu.dot_dimension_numbers<[1], [0], [0], [1], [0, 0, 1, 1], [], []>} : vector<64x192xbf16>, vector<192x128xbf16>, vector<64x128xf32> -> vector<64x128xf32>
    %94 = vector.broadcast %58 : vector<64x1xf32> to vector<64x128xf32>
    %95 = arith.addf %93, %94 : vector<64x128xf32>
    %c3 = arith.constant 3 : index
    %c0_40 = arith.constant 0 : index
    %c0_41 = arith.constant 0 : index
    %96 = vector.load %arg10[%c3, %c0_40, %c0_41] : memref<4x64x128xf32, #tpu.memory_space<vmem>>, vector<1x64x128xf32>
    %97 = vector.shape_cast %96 : vector<1x64x128xf32> to vector<64x128xf32>
    %98 = vector.shape_cast %95 : vector<64x128xf32> to vector<1x64x128xf32>
    tpu.vector_store %arg10[%c3, %c0_40, %c0_41], %98 {strides = array<i32>} : memref<4x64x128xf32, #tpu.memory_space<vmem>>, vector<1x64x128xf32>,
    return
  }
  func.func @transform_0(%arg0: i32) -> (i32, i32, i32) {
    %c0_i32 = arith.constant 0 : i32
    %c0_i32_0 = arith.constant 0 : i32
    %c0_i32_1 = arith.constant 0 : i32
    return %arg0, %c0_i32, %c0_i32_0 : i32, i32, i32
  }
  func.func @transform_1(%arg0: i32) -> (i32, i32) {
    %c0_i32 = arith.constant 0 : i32
    %c0_i32_0 = arith.constant 0 : i32
    %c0_i32_1 = arith.constant 0 : i32
    return %c0_i32, %c0_i32_0 : i32, i32
  }
  func.func @transform_2(%arg0: i32) -> (i32, i32) {
    %c0_i32 = arith.constant 0 : i32
    %c0_i32_0 = arith.constant 0 : i32
    %c0_i32_1 = arith.constant 0 : i32
    return %c0_i32, %c0_i32_0 : i32, i32
  }
  func.func @transform_3(%arg0: i32) -> (i32, i32) {
    %c0_i32 = arith.constant 0 : i32
    %c0_i32_0 = arith.constant 0 : i32
    %c0_i32_1 = arith.constant 0 : i32
    return %c0_i32, %c0_i32_0 : i32, i32
  }
  func.func @transform_4(%arg0: i32) -> (i32, i32) {
    %c0_i32 = arith.constant 0 : i32
    %c0_i32_0 = arith.constant 0 : i32
    %c0_i32_1 = arith.constant 0 : i32
    return %c0_i32, %c0_i32_0 : i32, i32
  }
  func.func @transform_5(%arg0: i32) -> (i32, i32) {
    %c0_i32 = arith.constant 0 : i32
    %c0_i32_0 = arith.constant 0 : i32
    %c0_i32_1 = arith.constant 0 : i32
    return %c0_i32, %c0_i32_0 : i32, i32
  }
  func.func @transform_6(%arg0: i32) -> (i32, i32) {
    %c0_i32 = arith.constant 0 : i32
    %c0_i32_0 = arith.constant 0 : i32
    %c0_i32_1 = arith.constant 0 : i32
    return %c0_i32, %c0_i32_0 : i32, i32
  }
  func.func @transform_7(%arg0: i32) -> (i32, i32) {
    %c0_i32 = arith.constant 0 : i32
    %c0_i32_0 = arith.constant 0 : i32
    %c0_i32_1 = arith.constant 0 : i32
    return %c0_i32, %c0_i32_0 : i32, i32
  }
  func.func @transform_8(%arg0: i32) -> (i32, i32) {
    %c0_i32 = arith.constant 0 : i32
    %c0_i32_0 = arith.constant 0 : i32
    %c0_i32_1 = arith.constant 0 : i32
    return %c0_i32, %c0_i32_0 : i32, i32
  }
  func.func @transform_9(%arg0: i32) -> (i32, i32, i32) {
    %c0_i32 = arith.constant 0 : i32
    %c0_i32_0 = arith.constant 0 : i32
    %c0_i32_1 = arith.constant 0 : i32
    return %arg0, %c0_i32, %c0_i32_0 : i32, i32, i32
  }
}

</mosaic_0001>

<bundles_post_ra>
// kernel: prenorm_residual.1
= control target key start
LH: loop header
LB: loop body
LE: loop exit
PB: predicated region body
PF: predicated region fallthrough
CT: control target
= control target key end

     0   :  { %14 = vsyncpa [#allocation3], 0  ;;  %s5617_s0 = inlined_call_operand.vmem [shape: f32[8,64,128], index: 0, kind: input, shape index: {}]   ;;  %s5618_s1 = inlined_call_operand.vmem [shape: f32[1,128], index: 1, kind: input, shape index: {}]   ;;  %s5619_s2 = inlined_call_operand.vmem [shape: f32[1,128], index: 2, kind: input, shape index: {}]   ;;  %s5620_s3 = inlined_call_operand.vmem [shape: bf16[128,256], index: 3, kind: input, shape index: {}]   ;;  %s5621_s4 = inlined_call_operand.vmem [shape: f32[1,256], index: 4, kind: input, shape index: {}]   ;;  %s5622_s5 = inlined_call_operand.vmem [shape: bf16[256,128], index: 5, kind: input, shape index: {}]   ;;  %s5623_s6 = inlined_call_operand.vmem [shape: f32[1,128], index: 6, kind: input, shape index: {}]   ;;  %s5624_s7 = inlined_call_operand.vmem [shape: bf16[64,192], index: 7, kind: input, shape index: {}]   ;;  %s5625_s8 = inlined_call_operand.vmem [shape: f32[64,1], index: 8, kind: input, shape index: {}]   ;;  %s5626_s9 = inlined_call_operand.hbm [shape: f32[8,64,128], index: 9, kind: output, shape index: {}]  }
   0x1   :  { %16 = vsyncpa [#allocation3 + $0x1], 0  ;;  %s3713_s30 = smov 0   ;;  %s3715_s10 = smov 0  }
   0x2   :  { %s3717_s11 = smov 0   ;;  %s3719_s12 = smov 0  }
   0x3 LB: > { %s3734_s13 = sadd.s32 4294967295, %s3655_s12   ;;  %s2901_s14 = sadd.s32 4294967294, %s3655_s12   ;;  %s3655_s12 = sphi %s3719_s12, %s5635_s12   ;;  %s3651_s11 = sphi %s3717_s11, %s5634_s11   ;;  %s3647_s10 = sphi %s3715_s10, %s5633_s10   ;;  %s3643_s30 = sphi %s3713_s30, %s5632_s30  }
   0x4   : > { %s3738_s15 = sadd.s32 1, %s3655_s12   ;;  %s223_s16 = sadd.s32 1, %s3651_s11 }
   0x5   : > { %s220_s17 = ssub.s32 %s3655_s12, %s3738_s15  ;;  %p233_p0 = scmp.ne.s32.totalorder %s3651_s11, %s3647_s10 }
   0x6   : > { %p221_p1 = scmp.eq.s32.totalorder %s220_s17, 0  ;;  %p234_p2 = scmp.eq.s32.totalorder %s3734_s13, 1 }
   0x7   : > { %p239_p3 = scmp.ne.s32.totalorder %s3647_s10, %s3643_s30  ;;  %p240_p4 = scmp.eq.s32.totalorder %s2901_s14, 1 }
   0x8   : > { %s3749_s18 = scalar_select %p221_p1, %s3651_s11, %s223_s16  }
   0x9   : > { %p3751_p5 = por %p234_p2, %p233_p0  ;;  %p3755_p6 = por %p240_p4, %p239_p3 }
   0xa   : > { %p2904_p7 = scmp.ge.s32.totalorder %s3655_s12, 1  ;;  %p292_p8 = scmp.lt.s32.totalorder %s3655_s12, 3 }
   0xc   : > { %p293_p9 = pnand %p2904_p7, %p292_p8 }
   0xd   : > { %s2906_s21 = sshll.u32 (!%p293_p9), %s3734_s13, 2  ;;  %s3658_s17 = smov (!%p293_p9), 1  }
   0xe   : > { %296 = sbr.rel (%p293_p9) target bundleno = 1458 (0x5b2), region = 56  ;;  %p330_p10 = scmp.lt.s32.totalorder (!%p293_p9), %s2906_s21, 7 }
   0xf   : > { %s326_s14 = sand.u32 (!%p293_p9), 1, %s3647_s10   ;;  %s3660_s27 = smov (!%p293_p9), [#allocation2]  }
  0x10   : > { %s2905_s16 = sshll.u32 (!%p293_p9), %s326_s14, 8  ;;  %s3599_s28 = sshll.u32 (!%p293_p9), %s3660_s27, 4  ;;  %s3600_s28 = int_to_ptr.vmem [resolvable:$false] %s3599_s28 }
  0x11   : > { %s3601_s29 = scalar_lea.vmem (!%p293_p9), %s3600_s28, 8192 }
  0x13   : > { %s5637_s21 = smov (!%p330_p10, %s2906_s21), 7  ;;  %v3319_v20 = vld [vmem:[%s5620_s3 + $0x74] ss:$8 sps:$4 sm:$0xff]   ;;  %v3321_v21 = vld [vmem:[%s5620_s3 + $0x70] ss:$8 sps:$4 sm:$0xff]   ;;  %vm2182_vm0 = vcmask 7168  }
  0x14   : > { %s3078_s22 = sshll.u32 %s5637_s21, 6  ;;  %925 = vmatprep.subr.bf16.mxu0 %v3319_v20  ;;  %v3322_v47 = vld [vmem:[%s5620_s3 + $0x64] ss:$8 sps:$4 sm:$0xff]   ;;  %v3324_v48 = vld [vmem:[%s5620_s3 + $0x60] ss:$8 sps:$4 sm:$0xff]   ;;  %vm2952_vm1 = vmneg %vm2182_vm0  ;;  %s3659_s21 = smov 126  }
  0x15   : > { %s3765_s25 = scalar_lea.vmem %s5617_s0, %s3078_s22  ;;  %926 = vmatpush1.bf16.msra.mxu0 %v3321_v21  ;;  %v3325_v54 = vld [vmem:[%s5620_s3 + $0x54] ss:$8 sps:$4 sm:$0xff]   ;;  %v3327_v55 = vld [vmem:[%s5620_s3 + $0x50] ss:$8 sps:$4 sm:$0xff]   ;;  %v3328_v61 = vld [vmem:[%s5620_s3 + $0x44] ss:$8 sps:$4 sm:$0xff]  }
  0x16   : > { %v338_v0 = vld [vmem:[%s3765_s25] sm:$0xff]  ;;  %v340_v1 = vld [vmem:[%s3765_s25 + $0x10] sm:$0xff]  ;;  %v339_v2 = vld [vmem:[%s3765_s25 + $0x8] sm:$0xff]  ;;  %927 = vmatprep.subr.bf16.mxu0 %v3322_v47  ;;  %vm2420_vm3 = vcmask 523264   ;;  %vm2335_vm4 = vcmask 1031168  }
  0x17   : > { %370 = vadd.xlane.f32.xlu0 %v338_v0  ;;  %374 = vadd.xlane.f32.xlu1 %v340_v1  ;;  %v341_v3 = vld [vmem:[%s3765_s25 + $0x18] sm:$0xff]  ;;  %v3772_v4 = vld [vmem:[%s3765_s25 + $0x20] sm:$0xff]  ;;  %v3775_v5 = vld [vmem:[%s3765_s25 + $0x28] sm:$0xff] }
  0x18   : > { %v3778_v6 = vld [vmem:[%s3765_s25 + $0x30] sm:$0xff]  ;;  %v3781_v7 = vld [vmem:[%s3765_s25 + $0x38] sm:$0xff]  ;;  %v3786_v8 = vld [vmem:[%s3765_s25 + $0x40] sm:$0xff] }
  0x19   : > { %v3789_v9 = vld [vmem:[%s3765_s25 + $0x48] sm:$0xff]  ;;  %v3796_v10 = vld [vmem:[%s3765_s25 + $0x50] sm:$0xff]  ;;  %v3799_v11 = vld [vmem:[%s3765_s25 + $0x58] sm:$0xff]  ;;  %928 = vmatpush1.bf16.msra.mxu0 %v3324_v48 }
  0x1a   : > { %v3804_v12 = vld [vmem:[%s3765_s25 + $0x60] sm:$0xff]  ;;  %v3807_v13 = vld [vmem:[%s3765_s25 + $0x68] sm:$0xff]  ;;  %v3812_v14 = vld [vmem:[%s3765_s25 + $0x70] sm:$0xff]  ;;  %929 = vmatprep.subr.bf16.mxu0 %v3325_v54 }
  0x1b   : > { %372 = vadd.xlane.f32.xlu0 %v339_v2  ;;  %376 = vadd.xlane.f32.xlu1 %v341_v3  ;;  %v3815_v15 = vld [vmem:[%s3765_s25 + $0x78] sm:$0xff]  ;;  %v3820_v16 = vld [vmem:[%s3765_s25 + $0x80] sm:$0xff]  ;;  %v3823_v17 = vld [vmem:[%s3765_s25 + $0x88] sm:$0xff] }
  0x1c   : > { %v3828_v18 = vld [vmem:[%s3765_s25 + $0x90] sm:$0xff]  ;;  %v3831_v19 = vld [vmem:[%s3765_s25 + $0x98] sm:$0xff]  ;;  %v3850_v34 = vld [vmem:[%s3765_s25 + $0xa0] sm:$0xff] }
  0x1d   : > { %v3860_v40 = vld [vmem:[%s3765_s25 + $0xa8] sm:$0xff]  ;;  %v3869_v45 = vld [vmem:[%s3765_s25 + $0xb0] sm:$0xff]  ;;  %v3884_v52 = vld [vmem:[%s3765_s25 + $0xb8] sm:$0xff]  ;;  %930 = vmatpush1.bf16.msra.mxu0 %v3327_v55  ;;  %v3657_v55 = vmov 0  }
  0x1e   : > { %v3899_v59 = vld [vmem:[%s3765_s25 + $0xc0] sm:$0xff]  ;;  %931 = vmatprep.subr.bf16.mxu0 %v3328_v61  ;;  %957 = vmatprep.mubr.bf16.mxu0 %v3657_v55  ;;  %vm4957_vm2 = vmpackc.low %vm2952_vm1, %vm2952_vm1 }
  0x1f   : > { %378 = vadd.xlane.f32.xlu0 %v3772_v4  ;;  %380 = vadd.xlane.f32.xlu1 %v3775_v5  ;;  %v3330_v62 = vld [vmem:[%s5620_s3 + $0x40] ss:$8 sps:$4 sm:$0xff]  }
  0x20   : > { %3318 = vset.pattern.permute.xlu1 %v3657_v55  ;;  %3317 = vset.pattern.permute.xlu0 %v3657_v55 }
  0x21   : > { %932 = vmatpush1.bf16.msra.mxu0 %v3330_v62 }
  0x23   : > { %382 = vadd.xlane.f32.xlu0 %v3778_v6  ;;  %384 = vadd.xlane.f32.xlu1 %v3781_v7 }
  0x27   : > { %386 = vadd.xlane.f32.xlu0 %v3786_v8  ;;  %388 = vadd.xlane.f32.xlu1 %v3789_v9 }
  0x2b   : > { %390 = vadd.xlane.f32.xlu0 %v3796_v10  ;;  %392 = vadd.xlane.f32.xlu1 %v3799_v11 }
  0x2f   : > { %394 = vadd.xlane.f32.xlu0 %v3804_v12  ;;  %396 = vadd.xlane.f32.xlu1 %v3807_v13 }
  0x33   : > { %398 = vadd.xlane.f32.xlu0 %v3812_v14  ;;  %400 = vadd.xlane.f32.xlu1 %v3815_v15 }
  0x37   : > { %402 = vadd.xlane.f32.xlu0 %v3820_v16  ;;  %404 = vadd.xlane.f32.xlu1 %v3823_v17 }
  0x3b   : > { %406 = vadd.xlane.f32.xlu0 %v3828_v18  ;;  %408 = vadd.xlane.f32.xlu1 %v3831_v19 }
  0xa0   : > { %v371_v22 = vpop.xlane.xlu0 %370  ;;  %v375_v23 = vpop.xlane.xlu1 %374 }
  0xa1   : > { %v435_v24 = vmul.f32 0.0078125, %v371_v22  ;;  %v437_v26 = vmul.f32 0.0078125, %v375_v23  ;;  %v3929_v22 = vld [vmem:[%s3765_s25 + $0xd0] sm:$0xff]  ;;  %v3334_v23 = vld [vmem:[%s5620_s3 + $0x24] ss:$8 sps:$4 sm:$0xff]  }
  0xa3   : > { %v3841_v25 = vsub.f32 %v338_v0, %v435_v24  ;;  %v3847_v33 = vsub.f32 %v340_v1, %v437_v26 }
  0xa4   : > { %v373_v27 = vpop.xlane.xlu0 %372  ;;  %v377_v28 = vpop.xlane.xlu1 %376 }
  0xa5   : > { %v436_v29 = vmul.f32 0.0078125, %v373_v27  ;;  %v499_v30 = vmul.f32 %v3841_v25, %v3841_v25  ;;  %v438_v32 = vmul.f32 0.0078125, %v377_v28  ;;  %v501_v37 = vmul.f32 %v3847_v33, %v3847_v33  ;;  %v3336_v27 = vld [vmem:[%s5620_s3 + $0x20] ss:$8 sps:$4 sm:$0xff]  }
  0xa7   : > { %531 = vadd.xlane.f32.xlu0 %v499_v30  ;;  %v3845_v31 = vsub.f32 %v339_v2, %v436_v29  ;;  %v3857_v39 = vsub.f32 %v341_v3, %v438_v32  ;;  %v3914_v2 = vld [vmem:[%s3765_s25 + $0xc8] sm:$0xff]  ;;  %v3944_v30 = vld [vmem:[%s3765_s25 + $0xd8] sm:$0xff] }
  0xa8   : > { %v379_v35 = vpop.xlane.xlu0 %378  ;;  %v381_v41 = vpop.xlane.xlu1 %380  ;;  %v3337_v32 = vld [vmem:[%s5620_s3 + $0x14] ss:$8 sps:$4 sm:$0xff]  }
  0xa9   : > { %v500_v36 = vmul.f32 %v3845_v31, %v3845_v31  ;;  %v439_v38 = vmul.f32 0.0078125, %v379_v35  ;;  %v502_v42 = vmul.f32 %v3857_v39, %v3857_v39  ;;  %v440_v43 = vmul.f32 0.0078125, %v381_v41  ;;  %v3959_v41 = vld [vmem:[%s3765_s25 + $0xe0] sm:$0xff] }
  0xab   : > { %410 = vadd.xlane.f32.xlu0 %v3850_v34  ;;  %533 = vadd.xlane.f32.xlu1 %v500_v36  ;;  %v3866_v44 = vsub.f32 %v3772_v4, %v439_v38  ;;  %v3881_v51 = vsub.f32 %v3775_v5, %v440_v43  ;;  %v3331_v4 = vld [vmem:[%s5620_s3 + $0x34] ss:$8 sps:$4 sm:$0xff]   ;;  %v3339_v36 = vld [vmem:[%s5620_s3 + $0x10] ss:$8 sps:$4 sm:$0xff]   ;;  %v3340_v43 = vld [vmem:[%s5620_s3 + $0x4] ss:$8 sps:$4 sm:$0xff]  }
  0xac   : > { %v383_v46 = vpop.xlane.xlu0 %382  ;;  %v385_v53 = vpop.xlane.xlu1 %384  ;;  %933 = vmatprep.subr.bf16.mxu0 %v3331_v4  ;;  %v3999_v4 = vld [vmem:[%s3765_s25 + $0xf8] sm:$0xff] }
  0xad   : > { %v503_v49 = vmul.f32 %v3866_v44, %v3866_v44  ;;  %v441_v50 = vmul.f32 0.0078125, %v383_v46  ;;  %v504_v56 = vmul.f32 %v3881_v51, %v3881_v51  ;;  %v442_v57 = vmul.f32 0.0078125, %v385_v53  ;;  %v3342_v46 = vld [vmem:[%s5620_s3] ss:$8 sps:$4 sm:$0xff]  }
  0xaf   : > { %535 = vadd.xlane.f32.xlu0 %v501_v37  ;;  %412 = vadd.xlane.f32.xlu1 %v3860_v40  ;;  %v3896_v58 = vsub.f32 %v3778_v6, %v441_v50  ;;  %v3911_v1 = vsub.f32 %v3781_v7, %v442_v57  ;;  %v3333_v6 = vld [vmem:[%s5620_s3 + $0x30] ss:$8 sps:$4 sm:$0xff]  }
  0xb0   : > { %v387_v60 = vpop.xlane.xlu0 %386  ;;  %v389_v3 = vpop.xlane.xlu1 %388  ;;  %934 = vmatpush1.bf16.msra.mxu0 %v3333_v6 }
  0xb1   : > { %v505_v63 = vmul.f32 %v3896_v58, %v3896_v58  ;;  %v443_v0 = vmul.f32 0.0078125, %v387_v60  ;;  %v506_v7 = vmul.f32 %v3911_v1, %v3911_v1  ;;  %v444_v20 = vmul.f32 0.0078125, %v389_v3  ;;  %935 = vmatprep.subr.bf16.mxu0 %v3334_v23  ;;  %v3985_v60 = vld [vmem:[%s3765_s25 + $0xf0] sm:$0xff] }
  0xb3   : > { %414 = vadd.xlane.f32.xlu0 %v3869_v45  ;;  %537 = vadd.xlane.f32.xlu1 %v502_v42  ;;  %v3926_v21 = vsub.f32 %v3786_v8, %v443_v0  ;;  %v3941_v29 = vsub.f32 %v3789_v9, %v444_v20 }
  0xb4   : > { %v391_v5 = vpop.xlane.xlu0 %390  ;;  %v393_v24 = vpop.xlane.xlu1 %392  ;;  %936 = vmatpush1.bf16.msra.mxu0 %v3336_v27 }
  0xb5   : > { %v507_v8 = vmul.f32 %v3926_v21, %v3926_v21  ;;  %v445_v28 = vmul.f32 0.0078125, %v391_v5  ;;  %v508_v9 = vmul.f32 %v3941_v29, %v3941_v29  ;;  %v446_v37 = vmul.f32 0.0078125, %v393_v24  ;;  %937 = vmatprep.subr.bf16.mxu0 %v3337_v32 }
  0xb7   : > { %416 = vadd.xlane.f32.xlu1 %v3884_v52  ;;  %539 = vadd.xlane.f32.xlu0 %v503_v49  ;;  %v3956_v38 = vsub.f32 %v3796_v10, %v445_v28  ;;  %v3971_v48 = vsub.f32 %v3799_v11, %v446_v37  ;;  %v3974_v49 = vld [vmem:[%s3765_s25 + $0xe8] sm:$0xff] }
  0xb8   : > { %v395_v26 = vpop.xlane.xlu0 %394  ;;  %v397_v35 = vpop.xlane.xlu1 %396  ;;  %938 = vmatpush1.bf16.msra.mxu0 %v3339_v36 }
  0xb9   : > { %v509_v10 = vmul.f32 %v3956_v38, %v3956_v38  ;;  %v447_v47 = vmul.f32 0.0078125, %v395_v26  ;;  %939 = vmatprep.subr.bf16.mxu0 %v3340_v43  ;;  %v448_v53 = vmul.f32 0.0078125, %v397_v35  ;;  %v510_v11 = vmul.f32 %v3971_v48, %v3971_v48 }
  0xbb   : > { %541 = vadd.xlane.f32.xlu1 %v504_v56  ;;  %418 = vadd.xlane.f32.xlu0 %v3899_v59  ;;  %v3982_v57 = vsub.f32 %v3804_v12, %v447_v47  ;;  %v3990_v62 = vsub.f32 %v3807_v13, %v448_v53 }
  0xbc   : > { %v399_v42 = vpop.xlane.xlu0 %398  ;;  %v401_v50 = vpop.xlane.xlu1 %400  ;;  %940 = vmatpush1.bf16.msra.mxu0 %v3342_v46 }
  0xbd   : > { %2433 = vmatprep.subr.bf16.mxu0 %v3657_v55  ;;  %v449_v56 = vmul.f32 0.0078125, %v399_v42  ;;  %v450_v61 = vmul.f32 0.0078125, %v401_v50  ;;  %v511_v0 = vmul.f32 %v3982_v57, %v3982_v57  ;;  %v512_v6 = vmul.f32 %v3990_v62, %v3990_v62 }
  0xbf   : > { %420 = vadd.xlane.f32.xlu1 %v3914_v2  ;;  %543 = vadd.xlane.f32.xlu0 %v505_v63  ;;  %v3996_v12 = vsub.f32 %v3812_v14, %v449_v56  ;;  %v4004_v13 = vsub.f32 %v3815_v15, %v450_v61 }
  0xc0   : > { %v403_v54 = vpop.xlane.xlu0 %402  ;;  %v405_v63 = vpop.xlane.xlu1 %404 }
  0xc1   : > { %v451_v3 = vmul.f32 0.0078125, %v403_v54  ;;  %v452_v20 = vmul.f32 0.0078125, %v405_v63  ;;  %v514_v26 = vmul.f32 %v4004_v13, %v4004_v13 }
  0xc3   : > { %545 = vadd.xlane.f32.xlu1 %v506_v7  ;;  %422 = vadd.xlane.f32.xlu0 %v3929_v22  ;;  %v513_v7 = vmul.f32 %v3996_v12, %v3996_v12  ;;  %v4010_v14 = vsub.f32 %v3820_v16, %v451_v3 }
  0xc4   : > { %v407_v5 = vpop.xlane.xlu0 %406  ;;  %v409_v24 = vpop.xlane.xlu1 %408 }
  0xc5   : > { %v453_v23 = vmul.f32 0.0078125, %v407_v5  ;;  %v515_v15 = vmul.f32 %v4010_v14, %v4010_v14  ;;  %v454_v27 = vmul.f32 0.0078125, %v409_v24 }
  0xc7   : > { %424 = vadd.xlane.f32.xlu1 %v3944_v30  ;;  %547 = vadd.xlane.f32.xlu0 %v507_v8  ;;  %v4017_v8 = vsub.f32 %v3823_v17, %v452_v20  ;;  %v4020_v28 = vsub.f32 %v3828_v18, %v453_v23  ;;  %v4027_v35 = vsub.f32 %v3831_v19, %v454_v27 }
  0xc9   : > { %v516_v16 = vmul.f32 %v4017_v8, %v4017_v8  ;;  %v517_v32 = vmul.f32 %v4020_v28, %v4020_v28  ;;  %v518_v17 = vmul.f32 %v4027_v35, %v4027_v35 }
  0xcb   : > { %549 = vadd.xlane.f32.xlu1 %v508_v9  ;;  %426 = vadd.xlane.f32.xlu0 %v3959_v41 }
  0xcf   : > { %428 = vadd.xlane.f32.xlu1 %v3974_v49  ;;  %551 = vadd.xlane.f32.xlu0 %v509_v10 }
  0xd3   : > { %553 = vadd.xlane.f32.xlu1 %v510_v11  ;;  %430 = vadd.xlane.f32.xlu0 %v3985_v60 }
  0xd7   : > { %432 = vadd.xlane.f32.xlu1 %v3999_v4  ;;  %555 = vadd.xlane.f32.xlu0 %v511_v0 }
  0xdb   : > { %557 = vadd.xlane.f32.xlu1 %v512_v6  ;;  %559 = vadd.xlane.f32.xlu0 %v513_v7 }
  0xdf   : > { %561 = vadd.xlane.f32.xlu1 %v514_v26  ;;  %563 = vadd.xlane.f32.xlu0 %v515_v15 }
  0xe3   : > { %565 = vadd.xlane.f32.xlu1 %v516_v16  ;;  %567 = vadd.xlane.f32.xlu0 %v517_v32 }
  0xe7   : > { %569 = vadd.xlane.f32.xlu1 %v518_v17 }
 0x130   : > { %v532_v36 = vpop.xlane.xlu0 %531 }
 0x131   : > { %v595_v18 = vmul.f32 0.0078125, %v532_v36 }
 0x133   : > { %v627_v9 = vadd.f32 1e-05, %v595_v18 }
 0x134   : > { %v534_v37 = vpop.xlane.xlu1 %533  ;;  %v411_v42 = vpop.xlane.xlu0 %410 }
 0x135   : > { %3371 = vrsqrt.f32 %v627_v9  ;;  %v596_v43 = vmul.f32 0.0078125, %v534_v37  ;;  %v455_v46 = vmul.f32 0.0078125, %v411_v42  ;;  %v4055_v37 = vld [vmem:[%s5618_s1] ss:$0 sm:$0xff] }
 0x137   : > { %v628_v10 = vadd.f32 1e-05, %v596_v43  ;;  %v4032_v47 = vsub.f32 %v3850_v34, %v455_v46 }
 0x138   : > { %v413_v19 = vpop.xlane.xlu1 %412  ;;  %v536_v50 = vpop.xlane.xlu0 %535 }
 0x139   : > { %3373 = vrsqrt.f32 %v628_v10  ;;  %v456_v53 = vmul.f32 0.0078125, %v413_v19  ;;  %v597_v54 = vmul.f32 0.0078125, %v536_v50  ;;  %v519_v11 = vmul.f32 %v4032_v47, %v4032_v47 }
 0x13b   : > { %v629_v56 = vadd.f32 1e-05, %v597_v54  ;;  %571 = vadd.xlane.f32.xlu0 %v519_v11  ;;  %v4037_v61 = vsub.f32 %v3860_v40, %v456_v53  ;;  %v4067_v11 = vld [vmem:[%s5619_s2] ss:$0 sm:$0xff] }
 0x13c   : > { %v538_v63 = vpop.xlane.xlu1 %537  ;;  %v415_v0 = vpop.xlane.xlu0 %414 }
 0x13d   : > { %3375 = vrsqrt.f32 %v629_v56  ;;  %v598_v3 = vmul.f32 0.0078125, %v538_v63  ;;  %v457_v5 = vmul.f32 0.0078125, %v415_v0  ;;  %v520_v34 = vmul.f32 %v4037_v61, %v4037_v61 }
 0x13f   : > { %v630_v6 = vadd.f32 1e-05, %v598_v3  ;;  %v4042_v7 = vsub.f32 %v3869_v45, %v457_v5  ;;  %573 = vadd.xlane.f32.xlu1 %v520_v34 }
 0x140   : > { %v417_v20 = vpop.xlane.xlu1 %416  ;;  %v540_v23 = vpop.xlane.xlu0 %539 }
 0x141   : > { %3377 = vrsqrt.f32 %v630_v6  ;;  %v458_v24 = vmul.f32 0.0078125, %v417_v20  ;;  %v599_v26 = vmul.f32 0.0078125, %v540_v23  ;;  %v521_v40 = vmul.f32 %v4042_v7, %v4042_v7 }
 0x142   : > { %v3372_v15 = vpop.eup %3371 }
 0x143   : > { %v4047_v27 = vsub.f32 %v3884_v52, %v458_v24  ;;  %v631_v16 = vadd.f32 1e-05, %v599_v26  ;;  %575 = vadd.xlane.f32.xlu0 %v521_v40  ;;  %v691_v45 = vmul.f32 %v3372_v15, %v3841_v25 }
 0x144   : > { %v542_v32 = vpop.xlane.xlu1 %541  ;;  %v419_v17 = vpop.xlane.xlu0 %418 }
 0x145   : > { %3379 = vrsqrt.f32 %v631_v16  ;;  %v600_v36 = vmul.f32 0.0078125, %v542_v32  ;;  %v459_v18 = vmul.f32 0.0078125, %v419_v17  ;;  %v522_v9 = vmul.f32 %v4047_v27, %v4047_v27 }
 0x146   : > { %v3374_v42 = vpop.eup %3373  ;;  %v730_v19 = vmul.f32 %v4055_v37, %v691_v45 }
 0x147   : > { %v632_v52 = vadd.f32 1e-05, %v600_v36  ;;  %v4058_v43 = vsub.f32 %v3899_v59, %v459_v18  ;;  %577 = vadd.xlane.f32.xlu1 %v522_v9  ;;  %v692_v46 = vmul.f32 %v3374_v42, %v3845_v31 }
 0x148   : > { %v421_v25 = vpop.xlane.xlu1 %420  ;;  %v544_v10 = vpop.xlane.xlu0 %543  ;;  %v769_v5 = vadd.f32 %v4067_v11, %v730_v19 }
 0x149   : > { %3381 = vrsqrt.f32 %v632_v52  ;;  %v460_v50 = vmul.f32 0.0078125, %v421_v25  ;;  %v601_v53 = vmul.f32 0.0078125, %v544_v10  ;;  %v523_v54 = vmul.f32 %v4058_v43, %v4058_v43 }
 0x14a   : > { %v3376_v59 = vpop.eup %3375  ;;  %v731_v56 = vmul.f32 %v4055_v37, %v692_v46 }
 0x14b   : > { %v4071_v31 = vsub.f32 %v3914_v2, %v460_v50  ;;  %v633_v63 = vadd.f32 1e-05, %v601_v53  ;;  %579 = vadd.xlane.f32.xlu0 %v523_v54  ;;  %v693_v6 = vmul.f32 %v3376_v59, %v3847_v33 }
 0x14c   : > { %v546_v0 = vpop.xlane.xlu1 %545  ;;  %v423_v3 = vpop.xlane.xlu0 %422  ;;  %v770_v34 = vadd.f32 %v4067_v11, %v731_v56 }
 0x14d   : > { %3383 = vrsqrt.f32 %v633_v63  ;;  %v602_v20 = vmul.f32 0.0078125, %v546_v0  ;;  %v461_v23 = vmul.f32 0.0078125, %v423_v3  ;;  %v524_v24 = vmul.f32 %v4071_v31, %v4071_v31 }
 0x14e   : > { %v3378_v26 = vpop.eup %3377  ;;  %v801_v40 = vpack.c.bf16 %v770_v34, %v769_v5  ;;  %v732_v33 = vmul.f32 %v4055_v37, %v693_v6 }
 0x14f   : > { %v634_v2 = vadd.f32 1e-05, %v602_v20  ;;  %v4079_v15 = vsub.f32 %v3929_v22, %v461_v23  ;;  %581 = vadd.xlane.f32.xlu1 %v524_v24  ;;  %v694_v16 = vmul.f32 %v3378_v26, %v3857_v39 }
 0x150   : > { %958 = vmatmul.mubr.bf16.vlgmr.msra.gmra.mxu0 %v801_v40  ;;  %v425_v32 = vpop.xlane.xlu1 %424  ;;  %v548_v17 = vpop.xlane.xlu0 %547  ;;  %v771_v25 = vadd.f32 %v4067_v11, %v732_v33 }
 0x151   : > { %3385 = vrsqrt.f32 %v634_v2  ;;  %v462_v45 = vmul.f32 0.0078125, %v425_v32  ;;  %v603_v36 = vmul.f32 0.0078125, %v548_v17  ;;  %v525_v18 = vmul.f32 %v4079_v15, %v4079_v15  ;;  %967 = vmatprep.mubr.bf16.mxu0 %v3657_v55 }
 0x152   : > { %v3380_v9 = vpop.eup %3379  ;;  %v733_v22 = vmul.f32 %v4055_v37, %v694_v16 }
 0x153   : > { %v4088_v42 = vsub.f32 %v3944_v30, %v462_v45  ;;  %v635_v39 = vadd.f32 1e-05, %v603_v36  ;;  %583 = vadd.xlane.f32.xlu0 %v525_v18  ;;  %v695_v19 = vmul.f32 %v3380_v9, %v3866_v44 }
 0x154   : > { %v550_v52 = vpop.xlane.xlu1 %549  ;;  %v427_v46 = vpop.xlane.xlu0 %426  ;;  %v772_v10 = vadd.f32 %v4067_v11, %v733_v22 }
 0x155   : > { %3387 = vrsqrt.f32 %v635_v39  ;;  %v604_v50 = vmul.f32 0.0078125, %v550_v52  ;;  %v463_v53 = vmul.f32 0.0078125, %v427_v46  ;;  %v526_v54 = vmul.f32 %v4088_v42, %v4088_v42 }
 0x156   : > { %v3382_v59 = vpop.eup %3381  ;;  %v802_v56 = vpack.c.bf16 %v772_v10, %v771_v25  ;;  %v734_v44 = vmul.f32 %v4055_v37, %v695_v19 }
 0x157   : > { %v636_v30 = vadd.f32 1e-05, %v604_v50  ;;  %v4096_v63 = vsub.f32 %v3959_v41, %v463_v53  ;;  %585 = vadd.xlane.f32.xlu1 %v526_v54  ;;  %v696_v0 = vmul.f32 %v3382_v59, %v3881_v51 }
 0x158   : > { %968 = vmatmul.mubr.bf16.gmra.mxu0 %v802_v56  ;;  %v429_v3 = vpop.xlane.xlu1 %428  ;;  %v552_v5 = vpop.xlane.xlu0 %551  ;;  %v773_v2 = vadd.f32 %v4067_v11, %v734_v44 }
 0x159   : > { %3389 = vrsqrt.f32 %v636_v30  ;;  %v464_v34 = vmul.f32 0.0078125, %v429_v3  ;;  %v605_v6 = vmul.f32 0.0078125, %v552_v5  ;;  %v527_v20 = vmul.f32 %v4096_v63, %v4096_v63  ;;  %977 = vmatprep.mubr.bf16.mxu0 %v3657_v55 }
 0x15a   : > { %v3384_v23 = vpop.eup %3383  ;;  %v735_v41 = vmul.f32 %v4055_v37, %v696_v0 }
 0x15b   : > { %v4105_v24 = vsub.f32 %v3974_v49, %v464_v34  ;;  %v637_v51 = vadd.f32 1e-05, %v605_v6  ;;  %587 = vadd.xlane.f32.xlu0 %v527_v20  ;;  %v697_v32 = vmul.f32 %v3384_v23, %v3896_v58 }
 0x15c   : > { %v554_v26 = vpop.xlane.xlu1 %553  ;;  %v431_v40 = vpop.xlane.xlu0 %430  ;;  %v774_v16 = vadd.f32 %v4067_v11, %v735_v41 }
 0x15d   : > { %3391 = vrsqrt.f32 %v637_v51  ;;  %v606_v17 = vmul.f32 0.0078125, %v554_v26  ;;  %v465_v33 = vmul.f32 0.0078125, %v431_v40  ;;  %v528_v45 = vmul.f32 %v4105_v24, %v4105_v24 }
 0x15e   : > { %v3386_v36 = vpop.eup %3385  ;;  %v803_v18 = vpack.c.bf16 %v774_v16, %v773_v2  ;;  %v736_v58 = vmul.f32 %v4055_v37, %v697_v32 }
 0x15f   : > { %v638_v49 = vadd.f32 1e-05, %v606_v17  ;;  %v4113_v9 = vsub.f32 %v3985_v60, %v465_v33  ;;  %589 = vadd.xlane.f32.xlu1 %v528_v45  ;;  %v698_v22 = vmul.f32 %v3386_v36, %v3911_v1 }
 0x160   : > { %978 = vmatmul.mubr.bf16.gmra.mxu0 %v803_v18  ;;  %v433_v39 = vpop.xlane.xlu1 %432  ;;  %v556_v52 = vpop.xlane.xlu0 %555  ;;  %v775_v56 = vadd.f32 %v4067_v11, %v736_v58 }
 0x161   : > { %3393 = vrsqrt.f32 %v638_v49  ;;  %v466_v46 = vmul.f32 0.0078125, %v433_v39  ;;  %v607_v25 = vmul.f32 0.0078125, %v556_v52  ;;  %v529_v10 = vmul.f32 %v4113_v9, %v4113_v9  ;;  %987 = vmatprep.mubr.bf16.mxu0 %v3657_v55 }
 0x162   : > { %v3388_v19 = vpop.eup %3387  ;;  %v737_v60 = vmul.f32 %v4055_v37, %v698_v22 }
 0x163   : > { %v4122_v50 = vsub.f32 %v3999_v4, %v466_v46  ;;  %v639_v1 = vadd.f32 1e-05, %v607_v25  ;;  %591 = vadd.xlane.f32.xlu0 %v529_v10  ;;  %v699_v53 = vmul.f32 %v3388_v19, %v3926_v21 }
 0x164   : > { %v558_v54 = vpop.xlane.xlu1 %557  ;;  %v560_v59 = vpop.xlane.xlu0 %559  ;;  %v776_v30 = vadd.f32 %v4067_v11, %v737_v60 }
 0x165   : > { %3395 = vrsqrt.f32 %v639_v1  ;;  %v608_v0 = vmul.f32 0.0078125, %v558_v54  ;;  %v609_v3 = vmul.f32 0.0078125, %v560_v59  ;;  %v530_v5 = vmul.f32 %v4122_v50, %v4122_v50 }
 0x166   : > { %v3390_v44 = vpop.eup %3389  ;;  %v804_v34 = vpack.c.bf16 %v776_v30, %v775_v56  ;;  %v738_v21 = vmul.f32 %v4055_v37, %v699_v53 }
 0x167   : > { %v640_v4 = vadd.f32 1e-05, %v608_v0  ;;  %593 = vadd.xlane.f32.xlu1 %v530_v5  ;;  %v700_v6 = vmul.f32 %v3390_v44, %v3941_v29  ;;  %v641_v20 = vadd.f32 1e-05, %v609_v3 }
 0x168   : > { %988 = vmatmul.mubr.bf16.gmra.mxu0 %v804_v34  ;;  %v562_v23 = vpop.xlane.xlu1 %561  ;;  %v564_v51 = vpop.xlane.xlu0 %563  ;;  %v777_v16 = vadd.f32 %v4067_v11, %v738_v21 }
 0x169   : > { %3397 = vrsqrt.f32 %v640_v4  ;;  %v610_v41 = vmul.f32 0.0078125, %v562_v23  ;;  %997 = vmatprep.mubr.bf16.mxu0 %v3657_v55  ;;  %v739_v26 = vmul.f32 %v4055_v37, %v700_v6  ;;  %v611_v17 = vmul.f32 0.0078125, %v564_v51 }
 0x16a   : > { %v3392_v40 = vpop.eup %3391  ;;  %3399 = vrsqrt.f32 %v641_v20 }
 0x16b   : > { %v642_v2 = vadd.f32 1e-05, %v610_v41  ;;  %v778_v32 = vadd.f32 %v4067_v11, %v739_v26  ;;  %v701_v29 = vmul.f32 %v3392_v40, %v3956_v38  ;;  %v643_v52 = vadd.f32 1e-05, %v611_v17 }
 0x16c   : > { %v566_v33 = vpop.xlane.xlu1 %565  ;;  %v568_v46 = vpop.xlane.xlu0 %567 }
 0x16d   : > { %3401 = vrsqrt.f32 %v642_v2  ;;  %v612_v45 = vmul.f32 0.0078125, %v566_v33  ;;  %v805_v36 = vpack.c.bf16 %v778_v32, %v777_v16  ;;  %v740_v39 = vmul.f32 %v4055_v37, %v701_v29 }
 0x16e   : > { %v3394_v18 = vpop.eup %3393 }
 0x16f   : > { %v644_v49 = vadd.f32 1e-05, %v612_v45  ;;  %v702_v22 = vmul.f32 %v3394_v18, %v3971_v48  ;;  %v779_v19 = vadd.f32 %v4067_v11, %v740_v39  ;;  %v613_v48 = vmul.f32 0.0078125, %v568_v46  ;;  %v3347_v46 = vld [vmem:[%s5622_s5 + $0x68] sm:$0xff]  }
 0x170   : > { %998 = vmatmul.mubr.bf16.gmra.mxu0 %v805_v36  ;;  %v570_v58 = vpop.xlane.xlu1 %569 }
 0x171   : > { %1007 = vmatprep.mubr.bf16.mxu0 %v3657_v55  ;;  %v741_v38 = vmul.f32 %v4055_v37, %v702_v22  ;;  %3403 = vrsqrt.f32 %v644_v49  ;;  %v614_v10 = vmul.f32 0.0078125, %v570_v58  ;;  %v645_v0 = vadd.f32 1e-05, %v613_v48  ;;  %v3346_v58 = vld [vmem:[%s5622_s5 + $0x30] sm:$0xff]  }
 0x172   : > { %v3396_v25 = vpop.eup %3395  ;;  %3405 = vrsqrt.f32 %v643_v52  ;;  %v3345_v52 = vld [vmem:[%s5622_s5 + $0x70] sm:$0xff]  }
 0x173   : > { %v780_v60 = vadd.f32 %v4067_v11, %v741_v38  ;;  %v703_v1 = vmul.f32 %v3396_v25, %v3982_v57  ;;  %v646_v59 = vadd.f32 1e-05, %v614_v10  ;;  %v3348_v38 = vld [vmem:[%s5622_s5 + $0x28] sm:$0xff]   ;;  %v3349_v25 = vld [vmem:[%s5622_s5 + $0x60] sm:$0xff]   ;;  %v3354_v48 = vld [vmem:[%s5622_s5 + $0x10] sm:$0xff]  }
 0x174   : > { %v3350_v10 = vld [vmem:[%s5622_s5 + $0x20] sm:$0xff]  }
 0x175   : > { %v806_v53 = vpack.c.bf16 %v780_v60, %v779_v19  ;;  %v742_v30 = vmul.f32 %v4055_v37, %v703_v1  ;;  %3407 = vrsqrt.f32 %v646_v59  ;;  %v3351_v19 = vld [vmem:[%s5622_s5 + $0x58] sm:$0xff]   ;;  %v3353_v1 = vld [vmem:[%s5622_s5 + $0x50] sm:$0xff]   ;;  %v3357_v59 = vld [vmem:[%s5622_s5 + $0x40] sm:$0xff]  }
 0x176   : > { %v3398_v54 = vpop.eup %3397  ;;  %3409 = vrsqrt.f32 %v645_v0  ;;  %v3352_v60 = vld [vmem:[%s5622_s5 + $0x18] sm:$0xff]  }
 0x177   : > { %v704_v56 = vmul.f32 %v3398_v54, %v3990_v62  ;;  %v3400_v3 = vpop.eup %3399  ;;  %v781_v57 = vadd.f32 %v4067_v11, %v742_v30  ;;  %v3356_v54 = vld [vmem:[%s5622_s5 + $0x8] sm:$0xff]  }
 0x178   : > { %1008 = vmatmul.mubr.bf16.gmra.mxu0 %v806_v53  ;;  %v705_v62 = vmul.f32 %v3400_v3, %v3996_v12  ;;  %v3355_v53 = vld [vmem:[%s5622_s5 + $0x48] sm:$0xff]  }
 0x179   : > { %1017 = vmatprep.mubr.bf16.mxu0 %v3657_v55  ;;  %v743_v5 = vmul.f32 %v4055_v37, %v704_v56  ;;  %v3358_v56 = vld [vmem:[%s5622_s5] sm:$0xff]  }
 0x17a   : > { %v3402_v44 = vpop.eup %3401  ;;  %v744_v23 = vmul.f32 %v4055_v37, %v705_v62 }
 0x17b   : > { %v782_v34 = vadd.f32 %v4067_v11, %v743_v5  ;;  %v706_v4 = vmul.f32 %v3402_v44, %v4004_v13 }
 0x17c   : > { %v783_v40 = vadd.f32 %v4067_v11, %v744_v23 }
 0x17d   : > { %v807_v6 = vpack.c.bf16 %v782_v34, %v781_v57  ;;  %v745_v21 = vmul.f32 %v4055_v37, %v706_v4 }
 0x17e   : > { %v3404_v20 = vpop.eup %3403 }
 0x17f   : > { %v3406_v41 = vpop.eup %3405  ;;  %v784_v51 = vadd.f32 %v4067_v11, %v745_v21  ;;  %v708_v26 = vmul.f32 %v3404_v20, %v4017_v8 }
 0x180   : > { %1018 = vmatmul.mubr.bf16.gmra.mxu0 %v807_v6  ;;  %v707_v13 = vmul.f32 %v3406_v41, %v4010_v14 }
 0x181   : > { %1027 = vmatprep.mubr.bf16.mxu0 %v3657_v55  ;;  %v808_v2 = vpack.c.bf16 %v784_v51, %v783_v40  ;;  %v747_v12 = vmul.f32 %v4055_v37, %v708_v26 }
 0x182   : > { %v3408_v16 = vpop.eup %3407  ;;  %v746_v32 = vmul.f32 %v4055_v37, %v707_v13 }
 0x183   : > { %v3410_v29 = vpop.eup %3409  ;;  %v786_v17 = vadd.f32 %v4067_v11, %v747_v12  ;;  %v710_v33 = vmul.f32 %v3408_v16, %v4027_v35  ;;  %v3343_v35 = vld [vmem:[%s5622_s5 + $0x78] sm:$0xff]  }
 0x184   : > { %v785_v8 = vadd.f32 %v4067_v11, %v746_v32  ;;  %v709_v45 = vmul.f32 %v3410_v29, %v4020_v28  ;;  %v3344_v28 = vld [vmem:[%s5622_s5 + $0x38] sm:$0xff]   ;;  %3081 = vmatprep.subr.bf16.mxu1 %v3343_v35 }
 0x185   : > { %v749_v14 = vmul.f32 %v4055_v37, %v710_v33  ;;  %3082 = vmatpush3.bf16.msra.mxu1 %v3344_v28 }
 0x186   : > { %v809_v36 = vpack.c.bf16 %v786_v17, %v785_v8  ;;  %v748_v18 = vmul.f32 %v4055_v37, %v709_v45  ;;  %3083 = vmatprep.subr.bf16.mxu1 %v3345_v52 }
 0x187   : > { %v788_v49 = vadd.f32 %v4067_v11, %v749_v14 }
 0x188   : > { %1028 = vmatmul.mubr.bf16.gmra.mxu0 %v808_v2  ;;  %v787_v22 = vadd.f32 %v4067_v11, %v748_v18 }
 0x189   : > { %1037 = vmatprep.mubr.bf16.mxu0 %v3657_v55  ;;  %3084 = vmatpush3.bf16.msra.mxu1 %v3346_v58 }
 0x18a   : > { %v810_v39 = vpack.c.bf16 %v788_v49, %v787_v22  ;;  %3085 = vmatprep.subr.bf16.mxu1 %v3347_v46 }
 0x18d   : > { %3086 = vmatpush3.bf16.msra.mxu1 %v3348_v38 }
 0x18e   : > { %3087 = vmatprep.subr.bf16.mxu1 %v3349_v25 }
 0x190   : > { %1038 = vmatmul.mubr.bf16.gmra.mxu0 %v809_v36 }
 0x191   : > { %1047 = vmatprep.mubr.bf16.mxu0 %v3657_v55  ;;  %3088 = vmatpush3.bf16.msra.mxu1 %v3350_v10 }
 0x192   : > { %3089 = vmatprep.subr.bf16.mxu1 %v3351_v19 }
 0x195   : > { %3090 = vmatpush3.bf16.msra.mxu1 %v3352_v60 }
 0x196   : > { %3091 = vmatprep.subr.bf16.mxu1 %v3353_v1 }
 0x198   : > { %1048 = vmatmul.mubr.bf16.gmra.mxu0 %v810_v39 }
 0x199   : > { %1057 = vmatprep.mubr.bf16.mxu0 %v3657_v55  ;;  %3092 = vmatpush3.bf16.msra.mxu1 %v3354_v48 }
 0x19a   : > { %3093 = vmatprep.subr.bf16.mxu1 %v3355_v53 }
 0x19d   : > { %3094 = vmatpush3.bf16.msra.mxu1 %v3356_v54 }
 0x19e   : > { %3095 = vmatprep.subr.bf16.mxu1 %v3357_v59 }
 0x1a1   : > { %3096 = vmatpush3.bf16.msra.mxu1 %v3358_v56 }
 0x1a2   : > { %2538 = vmatprep.subr.bf16.mxu1 %v3657_v55 }
 0x1c4   : > { %v572_v30 = vpop.xlane.xlu0 %571 }
 0x1c5   : > { %v615_v0 = vmul.f32 0.0078125, %v572_v30 }
 0x1c7   : > { %v647_v3 = vadd.f32 1e-05, %v615_v0 }
 0x1c8   : > { %v574_v5 = vpop.xlane.xlu1 %573 }
 0x1c9   : > { %3411 = vrsqrt.f32 %v647_v3  ;;  %v616_v44 = vmul.f32 0.0078125, %v574_v5 }
 0x1cb   : > { %v648_v57 = vadd.f32 1e-05, %v616_v44 }
 0x1cc   : > { %v576_v34 = vpop.xlane.xlu0 %575 }
 0x1cd   : > { %3413 = vrsqrt.f32 %v648_v57  ;;  %v617_v4 = vmul.f32 0.0078125, %v576_v34 }
 0x1cf   : > { %v649_v62 = vadd.f32 1e-05, %v617_v4 }
 0x1d0   : > { %v578_v6 = vpop.xlane.xlu1 %577 }
 0x1d1   : > { %3415 = vrsqrt.f32 %v649_v62  ;;  %v618_v21 = vmul.f32 0.0078125, %v578_v6 }
 0x1d3   : > { %v650_v20 = vadd.f32 1e-05, %v618_v21 }
 0x1d4   : > { %v580_v23 = vpop.xlane.xlu0 %579 }
 0x1d5   : > { %3417 = vrsqrt.f32 %v650_v20  ;;  %v619_v41 = vmul.f32 0.0078125, %v580_v23 }
 0x1d6   : > { %v3412_v51 = vpop.eup %3411 }
 0x1d7   : > { %v651_v26 = vadd.f32 1e-05, %v619_v41  ;;  %v711_v40 = vmul.f32 %v3412_v51, %v4032_v47 }
 0x1d8   : > { %v582_v13 = vpop.xlane.xlu1 %581 }
 0x1d9   : > { %3419 = vrsqrt.f32 %v651_v26  ;;  %v620_v2 = vmul.f32 0.0078125, %v582_v13  ;;  %v750_v29 = vmul.f32 %v4055_v37, %v711_v40 }
 0x1da   : > { %v3414_v12 = vpop.eup %3413 }
 0x1db   : > { %v652_v16 = vadd.f32 1e-05, %v620_v2  ;;  %v712_v32 = vmul.f32 %v3414_v12, %v4037_v61  ;;  %v789_v14 = vadd.f32 %v4067_v11, %v750_v29 }
 0x1dc   : > { %v584_v17 = vpop.xlane.xlu0 %583 }
 0x1dd   : > { %3421 = vrsqrt.f32 %v652_v16  ;;  %v621_v33 = vmul.f32 0.0078125, %v584_v17  ;;  %v751_v8 = vmul.f32 %v4055_v37, %v712_v32 }
 0x1de   : > { %v3416_v45 = vpop.eup %3415 }
 0x1df   : > { %v653_v36 = vadd.f32 1e-05, %v621_v33  ;;  %v790_v47 = vadd.f32 %v4067_v11, %v751_v8  ;;  %v713_v18 = vmul.f32 %v3416_v45, %v4042_v7 }
 0x1e0   : > { %v586_v49 = vpop.xlane.xlu1 %585 }
 0x1e1   : > { %3423 = vrsqrt.f32 %v653_v36  ;;  %v622_v22 = vmul.f32 0.0078125, %v586_v49  ;;  %v811_v39 = vpack.c.bf16 %v790_v47, %v789_v14  ;;  %v752_v52 = vmul.f32 %v4055_v37, %v713_v18 }
 0x1e2   : > { %v3418_v61 = vpop.eup %3417 }
 0x1e3   : > { %v654_v35 = vadd.f32 1e-05, %v622_v22  ;;  %1058 = vmatmul.mubr.bf16.gmra.mxu0 %v811_v39  ;;  %v714_v28 = vmul.f32 %v3418_v61, %v4047_v27  ;;  %v791_v10 = vadd.f32 %v4067_v11, %v752_v52 }
 0x1e4   : > { %v588_v58 = vpop.xlane.xlu0 %587  ;;  %1067 = vmatprep.mubr.bf16.mxu0 %v3657_v55 }
 0x1e5   : > { %3425 = vrsqrt.f32 %v654_v35  ;;  %v623_v46 = vmul.f32 0.0078125, %v588_v58  ;;  %v753_v38 = vmul.f32 %v4055_v37, %v714_v28 }
 0x1e6   : > { %v3420_v25 = vpop.eup %3419 }
 0x1e7   : > { %v655_v7 = vadd.f32 1e-05, %v623_v46  ;;  %v792_v19 = vadd.f32 %v4067_v11, %v753_v38  ;;  %v715_v60 = vmul.f32 %v3420_v25, %v4058_v43 }
 0x1e8   : > { %v590_v1 = vpop.xlane.xlu1 %589 }
 0x1e9   : > { %3427 = vrsqrt.f32 %v655_v7  ;;  %v624_v27 = vmul.f32 0.0078125, %v590_v1  ;;  %v812_v48 = vpack.c.bf16 %v792_v19, %v791_v10  ;;  %v754_v56 = vmul.f32 %v4055_v37, %v715_v60 }
 0x1ea   : > { %v3422_v53 = vpop.eup %3421 }
 0x1eb   : > { %v656_v54 = vadd.f32 1e-05, %v624_v27  ;;  %1068 = vmatmul.mubr.bf16.gmra.mxu0 %v812_v48  ;;  %v716_v59 = vmul.f32 %v3422_v53, %v4071_v31  ;;  %v793_v44 = vadd.f32 %v4067_v11, %v754_v56 }
 0x1ec   : > { %v592_v30 = vpop.xlane.xlu0 %591  ;;  %1077 = vmatprep.mubr.bf16.mxu0 %v3657_v55 }
 0x1ed   : > { %3429 = vrsqrt.f32 %v656_v54  ;;  %v625_v0 = vmul.f32 0.0078125, %v592_v30  ;;  %v755_v3 = vmul.f32 %v4055_v37, %v716_v59 }
 0x1ee   : > { %v3424_v5 = vpop.eup %3423 }
 0x1ef   : > { %v657_v43 = vadd.f32 1e-05, %v625_v0  ;;  %v794_v57 = vadd.f32 %v4067_v11, %v755_v3  ;;  %v717_v34 = vmul.f32 %v3424_v5, %v4079_v15 }
 0x1f0   : > { %v594_v4 = vpop.xlane.xlu1 %593 }
 0x1f1   : > { %3431 = vrsqrt.f32 %v657_v43  ;;  %v626_v31 = vmul.f32 0.0078125, %v594_v4  ;;  %v813_v62 = vpack.c.bf16 %v794_v57, %v793_v44  ;;  %v756_v23 = vmul.f32 %v4055_v37, %v717_v34 }
 0x1f2   : > { %v3426_v6 = vpop.eup %3425 }
 0x1f3   : > { %v658_v21 = vadd.f32 1e-05, %v626_v31  ;;  %1078 = vmatmul.mubr.bf16.gmra.mxu0 %v813_v62  ;;  %v718_v20 = vmul.f32 %v3426_v6, %v4088_v42  ;;  %v795_v26 = vadd.f32 %v4067_v11, %v756_v23 }
 0x1f4   : > { %1087 = vmatprep.mubr.bf16.mxu0 %v3657_v55 }
 0x1f5   : > { %3433 = vrsqrt.f32 %v658_v21  ;;  %v757_v41 = vmul.f32 %v4055_v37, %v718_v20 }
 0x1f6   : > { %v3428_v51 = vpop.eup %3427 }
 0x1f7   : > { %v796_v15 = vadd.f32 %v4067_v11, %v757_v41  ;;  %v719_v40 = vmul.f32 %v3428_v51, %v4096_v63  ;;  %v835_v63 = vlaneseq }
 0x1f9   : > { %v814_v13 = vpack.c.bf16 %v796_v15, %v795_v26  ;;  %v758_v42 = vmul.f32 %v4055_v37, %v719_v40  ;;  %v836_v47 = vshrl.u32 %v835_v63, 7 }
 0x1fa   : > { %v3430_v2 = vpop.eup %3429 }
 0x1fb   : > { %1088 = vmatmul.mubr.bf16.gmra.mxu0 %v814_v13  ;;  %v720_v12 = vmul.f32 %v3430_v2, %v4105_v24  ;;  %v797_v29 = vadd.f32 %v4067_v11, %v758_v42  ;;  %v837_v39 = vsub.s32 0, %v836_v47  ;;  %v841_v61 = vsub.s32 1, %v836_v47 }
 0x1fc   : > { %1097 = vmatprep.mubr.bf16.mxu0 %v3657_v55 }
 0x1fd   : > { %v759_v16 = vmul.f32 %v4055_v37, %v720_v12 }
 0x1fe   : > { %v3432_v32 = vpop.eup %3431 }
 0x1ff   : > { %v798_v17 = vadd.f32 %v4067_v11, %v759_v16  ;;  %v721_v33 = vmul.f32 %v3432_v32, %v4113_v9  ;;  %v833_v9 = vld [vmem:[%s5621_s4] sm:$0x3] }
 0x200   : > { %v4266_v35 = vrot.slane %v833_v9, %v841_v61 }
 0x201   : > { %v815_v8 = vpack.c.bf16 %v798_v17, %v797_v29  ;;  %v760_v24 = vmul.f32 %v4055_v37, %v721_v33 }
 0x202   : > { %v3434_v45 = vpop.eup %3433 }
 0x203   : > { %1098 = vmatmul.mubr.bf16.gmra.mxu0 %v815_v8  ;;  %v722_v36 = vmul.f32 %v3434_v45, %v4122_v50  ;;  %v799_v18 = vadd.f32 %v4067_v11, %v760_v24  ;;  %v4264_v50 = vrot.slane %v833_v9, %v837_v39 }
 0x204   : > { %1107 = vmatprep.mubr.bf16.mxu0 %v3657_v55 }
 0x205   : > { %v761_v14 = vmul.f32 %v4055_v37, %v722_v36 }
 0x207   : > { %v800_v49 = vadd.f32 %v4067_v11, %v761_v14 }
 0x209   : > { %v816_v22 = vpack.c.bf16 %v800_v49, %v799_v18 }
 0x20b   : > { %1108 = vmatmul.mubr.bf16.gmra.mxu0 %v816_v22 }
 0x210   : > { %v959_v28 = vpop.f32.mrf.mxu0 }
 0x211   : > { %v4269_v37 = vadd.f32 %v959_v28, %v4264_v50 }
 0x212   : > { %v961_v52 = vpop.f32.mrf.mxu0 }
 0x213   : > { %v1182_v58 = vmul.f32 0.044715, %v4269_v37  ;;  %v4273_v11 = vadd.f32 %v961_v52, %v4266_v35 }
 0x214   : > { %v963_v46 = vpop.f32.mrf.mxu0 }
 0x215   : > { %v1246_v38 = vmul.f32 %v1182_v58, %v4269_v37  ;;  %v1183_v25 = vmul.f32 0.044715, %v4273_v11  ;;  %v4278_v7 = vadd.f32 %v963_v46, %v4264_v50 }
 0x216   : > { %v965_v10 = vpop.f32.mrf.mxu0 }
 0x217   : > { %v1310_v19 = vmul.f32 %v1246_v38, %v4269_v37  ;;  %v1184_v60 = vmul.f32 0.044715, %v4278_v7  ;;  %v4283_v1 = vadd.f32 %v965_v10, %v4266_v35  ;;  %v1247_v27 = vmul.f32 %v1183_v25, %v4273_v11 }
 0x218   : > { %v969_v48 = vpop.f32.mrf.mxu0 }
 0x219   : > { %v1248_v53 = vmul.f32 %v1184_v60, %v4278_v7  ;;  %v1185_v54 = vmul.f32 0.044715, %v4283_v1  ;;  %v4289_v59 = vadd.f32 %v969_v48, %v4264_v50  ;;  %v1311_v30 = vmul.f32 %v1247_v27, %v4273_v11 }
 0x21a   : > { %v971_v56 = vpop.f32.mrf.mxu0  ;;  %v1374_v0 = vadd.f32 %v1310_v19, %v4269_v37 }
 0x21b   : > { %v1312_v3 = vmul.f32 %v1248_v53, %v4278_v7  ;;  %v1186_v5 = vmul.f32 0.044715, %v4289_v59  ;;  %v4296_v43 = vadd.f32 %v971_v56, %v4266_v35  ;;  %v1249_v44 = vmul.f32 %v1185_v54, %v4283_v1 }
 0x21c   : > { %v973_v57 = vpop.f32.mrf.mxu0  ;;  %v1375_v34 = vadd.f32 %v1311_v30, %v4273_v11  ;;  %v1438_v4 = vmul.f32 0.7978846, %v1374_v0 }
 0x21d   : > { %v1250_v31 = vmul.f32 %v1186_v5, %v4289_v59  ;;  %v1187_v62 = vmul.f32 0.044715, %v4296_v43  ;;  %v4303_v6 = vadd.f32 %v973_v57, %v4264_v50  ;;  %v1313_v21 = vmul.f32 %v1249_v44, %v4283_v1 }
 0x21e   : > { %v975_v20 = vpop.f32.mrf.mxu0  ;;  %v1439_v23 = vmul.f32 0.7978846, %v1375_v34  ;;  %v1376_v41 = vadd.f32 %v1312_v3, %v4278_v7  ;;  %3435 = vtanh.f32 %v1438_v4  ;;  %v1118_v5 = vmul.f32 0.5, %v4269_v37 }
 0x21f   : > { %v1314_v51 = vmul.f32 %v1250_v31, %v4289_v59  ;;  %v1251_v26 = vmul.f32 %v1187_v62, %v4296_v43  ;;  %v1188_v15 = vmul.f32 0.044715, %v4303_v6  ;;  %v4311_v40 = vadd.f32 %v975_v20, %v4266_v35 }
 0x220   : > { %v979_v13 = vpop.f32.mrf.mxu0  ;;  %v1377_v2 = vadd.f32 %v1313_v21, %v4283_v1  ;;  %3437 = vtanh.f32 %v1439_v23  ;;  %v1440_v12 = vmul.f32 0.7978846, %v1376_v41  ;;  %v1119_v34 = vmul.f32 0.5, %v4273_v11 }
 0x221   : > { %v1315_v42 = vmul.f32 %v1251_v26, %v4296_v43  ;;  %v1252_v16 = vmul.f32 %v1188_v15, %v4303_v6  ;;  %v1189_v32 = vmul.f32 0.044715, %v4311_v40  ;;  %v4318_v29 = vadd.f32 %v979_v13, %v4264_v50 }
 0x222   : > { %v981_v17 = vpop.f32.mrf.mxu0  ;;  %v1441_v33 = vmul.f32 0.7978846, %v1377_v2  ;;  %3439 = vtanh.f32 %v1440_v12  ;;  %v1378_v8 = vadd.f32 %v1314_v51, %v4289_v59  ;;  %v1121_v20 = vmul.f32 0.5, %v4283_v1 }
 0x223   : > { %v1316_v63 = vmul.f32 %v1252_v16, %v4303_v6  ;;  %v1253_v45 = vmul.f32 %v1189_v32, %v4311_v40  ;;  %v1190_v36 = vmul.f32 0.044715, %v4318_v29  ;;  %v4325_v24 = vadd.f32 %v981_v17, %v4266_v35 }
 0x224   : > { %v983_v14 = vpop.f32.mrf.mxu0  ;;  %3441 = vtanh.f32 %v1441_v33  ;;  %v1379_v47 = vadd.f32 %v1315_v42, %v4296_v43  ;;  %v1442_v39 = vmul.f32 0.7978846, %v1378_v8  ;;  %v1120_v23 = vmul.f32 0.5, %v4278_v7 }
 0x225   : > { %v1317_v18 = vmul.f32 %v1253_v45, %v4311_v40  ;;  %v1191_v49 = vmul.f32 0.044715, %v4325_v24  ;;  %v4331_v22 = vadd.f32 %v983_v14, %v4264_v50  ;;  %v1254_v9 = vmul.f32 %v1190_v36, %v4318_v29 }
 0x226   : > { %v985_v61 = vpop.f32.mrf.mxu0  ;;  %v1443_v28 = vmul.f32 0.7978846, %v1379_v47  ;;  %v1380_v52 = vadd.f32 %v1316_v63, %v4303_v6  ;;  %v4361_v51 = vmul.f32 0.5, %v4289_v59  ;;  %v4368_v12 = vmul.f32 0.5, %v4296_v43 }
 0x227   : > { %v1255_v58 = vmul.f32 %v1191_v49, %v4325_v24  ;;  %v1192_v46 = vmul.f32 0.044715, %v4331_v22  ;;  %v4338_v38 = vadd.f32 %v985_v61, %v4266_v35  ;;  %v1381_v10 = vadd.f32 %v1317_v18, %v4311_v40 }
 0x228   : > { %v989_v25 = vpop.f32.mrf.mxu0  ;;  %3443 = vtanh.f32 %v1443_v28  ;;  %v1444_v19 = vmul.f32 0.7978846, %v1380_v52  ;;  %v1318_v53 = vmul.f32 %v1254_v9, %v4318_v29  ;;  %v1124_v1 = vmul.f32 0.5, %v4303_v6 }
 0x229   : > { %v1319_v60 = vmul.f32 %v1255_v58, %v4325_v24  ;;  %v1256_v27 = vmul.f32 %v1192_v46, %v4331_v22  ;;  %v1193_v48 = vmul.f32 0.044715, %v4338_v38  ;;  %3445 = vtanh.f32 %v1442_v39 }
 0x22a   : > { %v991_v54 = vpop.f32.mrf.mxu0  ;;  %v1445_v56 = vmul.f32 0.7978846, %v1381_v10  ;;  %3447 = vtanh.f32 %v1444_v19  ;;  %v4355_v21 = vadd.f32 %v989_v25, %v4264_v50  ;;  %v1382_v26 = vadd.f32 %v1318_v53, %v4318_v29 }
 0x22b   : > { %v3436_v30 = vpop.eup %3435  ;;  %v1257_v0 = vmul.f32 %v1193_v48, %v4338_v38  ;;  %v4347_v3 = vadd.f32 %v991_v54, %v4266_v35  ;;  %v1320_v44 = vmul.f32 %v1256_v27, %v4331_v22  ;;  %v1383_v4 = vadd.f32 %v1319_v60, %v4325_v24 }
 0x22c   : > { %v993_v57 = vpop.f32.mrf.mxu0  ;;  %3449 = vtanh.f32 %v1445_v56  ;;  %v1194_v17 = vmul.f32 0.044715, %v4355_v21  ;;  %v1566_v63 = vadd.f32 1.0, %v3436_v30  ;;  %v1446_v14 = vmul.f32 0.7978846, %v1382_v26 }
 0x22d   : > { %v3438_v31 = vpop.eup %3437  ;;  %v1321_v62 = vmul.f32 %v1257_v0, %v4338_v38  ;;  %v1195_v37 = vmul.f32 0.044715, %v4347_v3  ;;  %v1447_v11 = vmul.f32 0.7978846, %v1383_v4  ;;  %v1384_v59 = vadd.f32 %v1320_v44, %v4331_v22 }
 0x22e   : > { %v995_v41 = vpop.f32.mrf.mxu0  ;;  %v1567_v2 = vadd.f32 1.0, %v3438_v31  ;;  %v4375_v33 = vadd.f32 %v993_v57, %v4264_v50  ;;  %v1630_v25 = vmul.f32 %v1566_v63, %v1118_v5  ;;  %v1125_v10 = vmul.f32 0.5, %v4311_v40 }
 0x22f   : > { %v3440_v15 = vpop.eup %3439  ;;  %v4365_v13 = vadd.f32 %v995_v41, %v4266_v35  ;;  %v1385_v16 = vadd.f32 %v1321_v62, %v4338_v38  ;;  %3451 = vtanh.f32 %v1447_v11  ;;  %v1259_v43 = vmul.f32 %v1195_v37, %v4347_v3 }
 0x230   : > { %v999_v7 = vpop.f32.mrf.mxu0  ;;  %v1568_v42 = vadd.f32 1.0, %v3440_v15  ;;  %v1631_v49 = vmul.f32 %v1567_v2, %v1119_v34  ;;  %v1448_v52 = vmul.f32 0.7978846, %v1384_v59  ;;  %v1196_v46 = vmul.f32 0.044715, %v4375_v33 }
 0x231   : > { %v3442_v32 = vpop.eup %3441  ;;  %v1197_v8 = vmul.f32 0.044715, %v4365_v13  ;;  %v1449_v36 = vmul.f32 0.7978846, %v1385_v16  ;;  %v4380_v47 = vadd.f32 %v999_v7, %v4264_v50  ;;  %v4389_v19 = vmul.f32 0.5, %v4318_v29 }
 0x232   : > { %v1001_v45 = vpop.f32.mrf.mxu0  ;;  %v1569_v6 = vadd.f32 1.0, %v3442_v32  ;;  %v1632_v39 = vmul.f32 %v1568_v42, %v1120_v23  ;;  %v1323_v27 = vmul.f32 %v1259_v43, %v4347_v3  ;;  %v4393_v54 = vmul.f32 0.5, %v4325_v24 }
 0x233   : > { %v4383_v18 = vadd.f32 %v1001_v45, %v4266_v35  ;;  %v1261_v9 = vmul.f32 %v1197_v8, %v4365_v13  ;;  %3453 = vtanh.f32 %v1449_v36  ;;  %v1258_v30 = vmul.f32 %v1194_v17, %v4355_v21 }
 0x234   : > { %v1003_v61 = vpop.f32.mrf.mxu0  ;;  %v1633_v28 = vmul.f32 %v1569_v6, %v1121_v20  ;;  %3455 = vtanh.f32 %v1446_v14  ;;  %v1198_v0 = vmul.f32 0.044715, %v4380_v47  ;;  %v1694_v40 = vpack.c.bf16 %v1632_v39, %v1630_v25 }
 0x235   : > { %v3444_v58 = vpop.eup %3443  ;;  %v1199_v5 = vmul.f32 0.044715, %v4383_v18  ;;  %v1325_v29 = vmul.f32 %v1261_v9, %v4365_v13  ;;  %3457 = vtanh.f32 %v1448_v52  ;;  %v1260_v24 = vmul.f32 %v1196_v46, %v4375_v33 }
 0x236   : > { %v3446_v60 = vpop.eup %3445  ;;  %v1005_v48 = vpop.f32.mrf.mxu0  ;;  %v1695_v53 = vpack.c.bf16 %v1633_v28, %v1631_v49  ;;  %v1571_v57 = vadd.f32 1.0, %v3444_v58  ;;  %v4401_v31 = vadd.f32 %v1003_v61, %v4264_v50  ;;  %v4410_v11 = vmul.f32 0.5, %v4331_v22 }
 0x237   : > { %v3448_v56 = vpop.eup %3447  ;;  %v4404_v62 = vadd.f32 %v1005_v48, %v4266_v35  ;;  %v1570_v20 = vadd.f32 1.0, %v3446_v60  ;;  %v1387_v26 = vadd.f32 %v1323_v27, %v4347_v3  ;;  %v1322_v15 = vmul.f32 %v1258_v30, %v4355_v21 }
 0x238   : > { %1893 = vmatprep.mubr.bf16.mxu1 %v1695_v53  ;;  %v1009_v44 = vpop.f32.mrf.mxu0  ;;  %v1572_v34 = vadd.f32 1.0, %v3448_v56  ;;  %v1262_v2 = vmul.f32 %v1198_v0, %v4380_v47  ;;  %v1263_v7 = vmul.f32 %v1199_v5, %v4383_v18  ;;  %v1635_v59 = vmul.f32 %v1571_v57, %v4368_v12 }
 0x239   : > { %v3450_v4 = vpop.eup %3449  ;;  %1894 = vmatmul.mubr.bf16.vlgmr.msra.gmra.mxu1 %v1694_v40  ;;  %v4407_v23 = vadd.f32 %v1009_v44, %v4264_v50  ;;  %v1389_v17 = vadd.f32 %v1325_v29, %v4365_v13  ;;  %v1451_v8 = vmul.f32 0.7978846, %v1387_v26  ;;  %v1324_v22 = vmul.f32 %v1260_v24, %v4375_v33 }
 0x23a   : > { %v1011_v37 = vpop.f32.mrf.mxu0  ;;  %v1573_v41 = vadd.f32 1.0, %v3450_v4  ;;  %v1636_v42 = vmul.f32 %v1572_v34, %v1124_v1  ;;  %v1200_v43 = vmul.f32 0.044715, %v4401_v31  ;;  %v1201_v45 = vmul.f32 0.044715, %v4404_v62 }
 0x23b   : > { %v1634_v6 = vmul.f32 %v1570_v20, %v4361_v51  ;;  %v1202_v36 = vmul.f32 0.044715, %v4407_v23  ;;  %v1453_v49 = vmul.f32 0.7978846, %v1389_v17  ;;  %3459 = vtanh.f32 %v1451_v8 }
 0x23c   : > { %v1013_v16 = vpop.f32.mrf.mxu0  ;;  %v1637_v32 = vmul.f32 %v1573_v41, %v1125_v10  ;;  %v3452_v63 = vpop.eup %3451  ;;  %v4424_v12 = vadd.f32 %v1011_v37, %v4266_v35  ;;  %v1129_v9 = vmul.f32 0.5, %v4338_v38  ;;  %v4428_v28 = vmul.f32 %v1262_v2, %v4380_v47 }
 0x23d   : > { %v1696_v39 = vpack.c.bf16 %v1636_v42, %v1634_v6  ;;  %v1575_v61 = vadd.f32 1.0, %v3452_v63  ;;  %v1327_v52 = vmul.f32 %v1263_v7, %v4383_v18  ;;  %v4432_v58 = vmul.f32 0.5, %v4347_v3 }
 0x23e   : > { %v1015_v14 = vpop.f32.mrf.mxu0  ;;  %v1697_v1 = vpack.c.bf16 %v1637_v32, %v1635_v59  ;;  %3461 = vtanh.f32 %v1453_v49  ;;  %v1264_v25 = vmul.f32 %v1200_v43, %v4401_v31  ;;  %v1265_v10 = vmul.f32 %v1201_v45, %v4404_v62 }
 0x23f   : > { %v4437_v60 = vadd.f32 %v1013_v16, %v4264_v50  ;;  %v4440_v38 = vmul.f32 0.5, %v4365_v13  ;;  %v1266_v27 = vmul.f32 %v1202_v36, %v4407_v23  ;;  %v1386_v3 = vadd.f32 %v1322_v15, %v4355_v21 }
 0x240   : > { %1901 = vmatprep.mubr.bf16.mxu1 %v1697_v1  ;;  %v1019_v51 = vpop.f32.mrf.mxu0  ;;  %v3454_v46 = vpop.eup %3453  ;;  %v1388_v56 = vadd.f32 %v1324_v22, %v4375_v33  ;;  %v1203_v0 = vmul.f32 0.044715, %v4424_v12  ;;  %v4447_v5 = vadd.f32 %v1015_v14, %v4266_v35  ;;  %v1639_v13 = vmul.f32 %v1575_v61, %v4393_v54 }
 0x241   : > { %1902 = vmatmul.mubr.bf16.gmra.mxu1 %v1696_v39  ;;  %v1577_v53 = vadd.f32 1.0, %v3454_v46  ;;  %v3456_v30 = vpop.eup %3455  ;;  %v4450_v40 = vadd.f32 %v1019_v51, %v4264_v50  ;;  %v1450_v34 = vmul.f32 0.7978846, %v1386_v3  ;;  %v1328_v20 = vmul.f32 %v1264_v25, %v4401_v31 }
 0x242   : > { %v1021_v48 = vpop.f32.mrf.mxu0  ;;  %v1574_v57 = vadd.f32 1.0, %v3456_v30  ;;  %v1452_v4 = vmul.f32 0.7978846, %v1388_v56  ;;  %v3458_v24 = vpop.eup %3457  ;;  %v1329_v37 = vmul.f32 %v1265_v10, %v4404_v62  ;;  %v1204_v41 = vmul.f32 0.044715, %v4437_v60 }
 0x243   : > { %v1641_v44 = vmul.f32 %v1577_v53, %v1129_v9  ;;  %v4457_v26 = vadd.f32 %v1021_v48, %v4266_v35  ;;  %v4460_v15 = vmul.f32 %v1266_v27, %v4407_v23  ;;  %v1576_v7 = vadd.f32 1.0, %v3458_v24 }
 0x244   : > { %v1023_v29 = vpop.f32.mrf.mxu0  ;;  %3463 = vtanh.f32 %v1450_v34  ;;  %v1267_v42 = vmul.f32 %v1203_v0, %v4424_v12  ;;  %v1205_v16 = vmul.f32 0.044715, %v4447_v5  ;;  %v1206_v59 = vmul.f32 0.044715, %v4450_v40 }
 0x245   : > { %v1699_v54 = vpack.c.bf16 %v1641_v44, %v1639_v13  ;;  %v4466_v32 = vmul.f32 0.5, %v4355_v21  ;;  %v1638_v8 = vmul.f32 %v1574_v57, %v4389_v19  ;;  %v1640_v63 = vmul.f32 %v1576_v7, %v4410_v11 }
 0x246   : > { %v1025_v2 = vpop.f32.mrf.mxu0  ;;  %3465 = vtanh.f32 %v1452_v4  ;;  %v1391_v22 = vadd.f32 %v1327_v52, %v4383_v18  ;;  %v1268_v43 = vmul.f32 %v1204_v41, %v4437_v60  ;;  %v1207_v45 = vmul.f32 0.044715, %v4457_v26 }
 0x247   : > { %1909 = vmatprep.mubr.bf16.mxu1 %v1699_v54  ;;  %v4474_v6 = vadd.f32 %v1023_v29, %v4264_v50  ;;  %v4477_v36 = vmul.f32 0.5, %v4375_v33  ;;  %v4480_v21 = vadd.f32 %v1025_v2, %v4266_v35  ;;  %v1698_v14 = vpack.c.bf16 %v1640_v63, %v1638_v8 }
 0x248   : > { %v1029_v17 = vpop.f32.mrf.mxu0  ;;  %v1393_v11 = vadd.f32 %v1329_v37, %v4404_v62  ;;  %v1455_v1 = vmul.f32 0.7978846, %v1391_v22  ;;  %v3460_v49 = vpop.eup %3459  ;;  %v1331_v39 = vmul.f32 %v1267_v42, %v4424_v12  ;;  %v1269_v9 = vmul.f32 %v1205_v16, %v4447_v5 }
 0x249   : > { %v1270_v61 = vmul.f32 %v1206_v59, %v4450_v40  ;;  %v4487_v52 = vadd.f32 %v1029_v17, %v4264_v50  ;;  %1910 = vmatmul.mubr.bf16.gmra.mxu1 %v1698_v14  ;;  %v1579_v51 = vadd.f32 1.0, %v3460_v49  ;;  %v4490_v46 = vmul.f32 0.5, %v4383_v18 }
 0x24a   : > { %v1031_v19 = vpop.f32.mrf.mxu0  ;;  %v1457_v25 = vmul.f32 0.7978846, %v1393_v11  ;;  %3467 = vtanh.f32 %v1455_v1  ;;  %v4493_v27 = vmul.f32 %v1268_v43, %v4437_v60  ;;  %v1271_v48 = vmul.f32 %v1207_v45, %v4457_v26 }
 0x24b   : > { %v3462_v10 = vpop.eup %3461  ;;  %v1208_v53 = vmul.f32 0.044715, %v4474_v6  ;;  %v4498_v3 = vadd.f32 %v1031_v19, %v4266_v35  ;;  %v1209_v56 = vmul.f32 0.044715, %v4480_v21  ;;  %v1390_v18 = vadd.f32 %v4428_v28, %v4380_v47 }
 0x24c   : > { %v1033_v33 = vpop.f32.mrf.mxu0  ;;  %v1581_v0 = vadd.f32 1.0, %v3462_v10  ;;  %3469 = vtanh.f32 %v1457_v25  ;;  %v1333_v13 = vmul.f32 %v1269_v9, %v4447_v5  ;;  %v4505_v29 = vmul.f32 %v1270_v61, %v4450_v40 }
 0x24d   : > { %v1210_v44 = vmul.f32 0.044715, %v4487_v52  ;;  %v4509_v57 = vmul.f32 0.5, %v4404_v62  ;;  %v1643_v34 = vmul.f32 %v1579_v51, %v4432_v58  ;;  %v1392_v37 = vadd.f32 %v1328_v20, %v4401_v31 }
 0x24e   : > { %v1035_v30 = vpop.f32.mrf.mxu0  ;;  %v1645_v4 = vmul.f32 %v1581_v0, %v4440_v38  ;;  %v1454_v41 = vmul.f32 0.7978846, %v1390_v18  ;;  %v4515_v28 = vmul.f32 %v1271_v48, %v4457_v26  ;;  %v1272_v2 = vmul.f32 %v1208_v53, %v4474_v6 }
 0x24f   : > { %v1211_v54 = vmul.f32 0.044715, %v4498_v3  ;;  %v4520_v7 = vmul.f32 0.5, %v4380_v47  ;;  %v1273_v62 = vmul.f32 %v1209_v56, %v4480_v21  ;;  %v1456_v16 = vmul.f32 0.7978846, %v1392_v37 }
 0x250   : > { %v1039_v24 = vpop.f32.mrf.mxu0  ;;  %v1701_v42 = vpack.c.bf16 %v1645_v4, %v1643_v34  ;;  %3471 = vtanh.f32 %v1454_v41  ;;  %v1274_v20 = vmul.f32 %v1210_v44, %v4487_v52  ;;  %v4525_v59 = vadd.f32 %v1033_v33, %v4264_v50 }
 0x251   : > { %v3464_v38 = vpop.eup %3463  ;;  %v4528_v17 = vadd.f32 %v1035_v30, %v4266_v35  ;;  %v4531_v8 = vadd.f32 %v1039_v24, %v4264_v50  ;;  %3473 = vtanh.f32 %v1456_v16  ;;  %v1395_v22 = vadd.f32 %v1331_v39, %v4424_v12 }
 0x252   : > { %v1041_v58 = vpop.f32.mrf.mxu0  ;;  %1917 = vmatprep.mubr.bf16.mxu1 %v1701_v42  ;;  %v1578_v47 = vadd.f32 1.0, %v3464_v38  ;;  %v1397_v43 = vadd.f32 %v1333_v13, %v4447_v5  ;;  %v4536_v14 = vmul.f32 %v1272_v2, %v4474_v6  ;;  %v1275_v19 = vmul.f32 %v1211_v54, %v4498_v3 }
 0x253   : > { %v3466_v45 = vpop.eup %3465  ;;  %v4540_v11 = vadd.f32 %v1041_v58, %v4266_v35  ;;  %v4543_v1 = vmul.f32 0.5, %v4401_v31  ;;  %v1337_v49 = vmul.f32 %v1273_v62, %v4480_v21  ;;  %v1459_v33 = vmul.f32 0.7978846, %v1395_v22 }
 0x254   : > { %v1043_v63 = vpop.f32.mrf.mxu0  ;;  %v1580_v9 = vadd.f32 1.0, %v3466_v45  ;;  %v1461_v39 = vmul.f32 0.7978846, %v1397_v43  ;;  %v4547_v51 = vmul.f32 %v1274_v20, %v4487_v52  ;;  %v1212_v25 = vmul.f32 0.044715, %v4525_v59 }
 0x255   : > { %v1213_v10 = vmul.f32 0.044715, %v4528_v17  ;;  %v4552_v48 = vmul.f32 0.5, %v4424_v12  ;;  %v1214_v53 = vmul.f32 0.044715, %v4531_v8  ;;  %v1642_v31 = vmul.f32 %v1578_v47, %v4466_v32 }
 0x256   : > { %v1045_v61 = vpop.f32.mrf.mxu0  ;;  %v1644_v56 = vmul.f32 %v1580_v9, %v4477_v36  ;;  %3475 = vtanh.f32 %v1459_v33  ;;  %v4558_v18 = vmul.f32 %v1275_v19, %v4498_v3  ;;  %v1215_v13 = vmul.f32 0.044715, %v4540_v11 }
 0x257   : > { %v3468_v0 = vpop.eup %3467  ;;  %v4562_v44 = vadd.f32 %v1043_v63, %v4264_v50  ;;  %v4565_v12 = vadd.f32 %v1045_v61, %v4266_v35  ;;  %3477 = vtanh.f32 %v1461_v39  ;;  %v1394_v32 = vadd.f32 %v4460_v15, %v4407_v23 }
 0x258   : > { %v1049_v30 = vpop.f32.mrf.mxu0  ;;  %v1700_v34 = vpack.c.bf16 %v1644_v56, %v1642_v31  ;;  %v1583_v4 = vadd.f32 1.0, %v3468_v0  ;;  %v1276_v37 = vmul.f32 %v1212_v25, %v4525_v59  ;;  %v1277_v41 = vmul.f32 %v1213_v10, %v4528_v17 }
 0x259   : > { %v3470_v36 = vpop.eup %3469  ;;  %v4575_v54 = vmul.f32 0.5, %v4447_v5  ;;  %v1278_v62 = vmul.f32 %v1214_v53, %v4531_v8  ;;  %v1396_v16 = vadd.f32 %v4493_v27, %v4437_v60  ;;  %v1458_v15 = vmul.f32 0.7978846, %v1394_v32 }
 0x25a   : > { %v1051_v24 = vpop.f32.mrf.mxu0  ;;  %1918 = vmatmul.mubr.bf16.gmra.mxu1 %v1700_v34  ;;  %v1585_v42 = vadd.f32 1.0, %v3470_v36  ;;  %v1279_v38 = vmul.f32 %v1215_v13, %v4540_v11  ;;  %v1216_v20 = vmul.f32 0.044715, %v4562_v44  ;;  %v1217_v47 = vmul.f32 0.044715, %v4565_v12 }
 0x25b   : > { %v4572_v2 = vadd.f32 %v1051_v24, %v4266_v35  ;;  %v4584_v63 = vadd.f32 %v1049_v30, %v4264_v50  ;;  %v1647_v5 = vmul.f32 %v1583_v4, %v4490_v46  ;;  %v1460_v45 = vmul.f32 0.7978846, %v1396_v16 }
 0x25c   : > { %v1053_v58 = vpop.f32.mrf.mxu0  ;;  %v1649_v22 = vmul.f32 %v1585_v42, %v4509_v57  ;;  %3479 = vtanh.f32 %v1458_v15  ;;  %v1340_v27 = vmul.f32 %v1276_v37, %v4525_v59  ;;  %v1341_v9 = vmul.f32 %v1277_v41, %v4528_v17 }
 0x25d   : > { %v3472_v19 = vpop.eup %3471  ;;  %v1219_v61 = vmul.f32 0.044715, %v4572_v2  ;;  %v4595_v39 = vmul.f32 %v1278_v62, %v4531_v8  ;;  %3481 = vtanh.f32 %v1460_v45  ;;  %v1280_v10 = vmul.f32 %v1216_v20, %v4562_v44 }
 0x25e   : > { %v1055_v43 = vpop.f32.mrf.mxu0  ;;  %v1703_v25 = vpack.c.bf16 %v1649_v22, %v1647_v5  ;;  %v1582_v46 = vadd.f32 1.0, %v3472_v19  ;;  %v3474_v57 = vpop.eup %3473  ;;  %v1281_v53 = vmul.f32 %v1217_v47, %v4565_v12  ;;  %v4600_v31 = vadd.f32 %v1053_v58, %v4264_v50 }
 0x25f   : > { %v4592_v33 = vadd.f32 %v1055_v43, %v4266_v35  ;;  %v1399_v56 = vadd.f32 %v4515_v28, %v4457_v26  ;;  %v1343_v30 = vmul.f32 %v1279_v38, %v4540_v11  ;;  %v1218_v0 = vmul.f32 0.044715, %v4584_v63 }
 0x260   : > { %1925 = vmatprep.mubr.bf16.mxu1 %v1703_v25  ;;  %v1584_v13 = vadd.f32 1.0, %v3474_v57  ;;  %v1401_v34 = vadd.f32 %v1337_v49, %v4480_v21  ;;  %v1646_v4 = vmul.f32 %v1582_v46, %v4520_v7  ;;  %v1283_v24 = vmul.f32 %v1219_v61, %v4572_v2 }
 0x261   : > { %v1221_v32 = vmul.f32 0.044715, %v4592_v33  ;;  %v1463_v36 = vmul.f32 0.7978846, %v1399_v56  ;;  %v1398_v28 = vadd.f32 %v4505_v29, %v4450_v40  ;;  %v1400_v62 = vadd.f32 %v4536_v14, %v4474_v6 }
 0x262   : > { %v1648_v37 = vmul.f32 %v1584_v13, %v4543_v1  ;;  %v1465_v41 = vmul.f32 0.7978846, %v1401_v34  ;;  %v1344_v58 = vmul.f32 %v1280_v10, %v4562_v44  ;;  %v1345_v49 = vmul.f32 %v1281_v53, %v4565_v12 }
 0x263   : > { %v3476_v42 = vpop.eup %3475  ;;  %v1220_v7 = vmul.f32 0.044715, %v4600_v31  ;;  %3483 = vtanh.f32 %v1463_v36  ;;  %v1462_v38 = vmul.f32 0.7978846, %v1398_v28  ;;  %v1282_v20 = vmul.f32 %v1218_v0, %v4584_v63 }
 0x264   : > { %v1702_v16 = vpack.c.bf16 %v1648_v37, %v1646_v4  ;;  %v1587_v15 = vadd.f32 1.0, %v3476_v42  ;;  %3485 = vtanh.f32 %v1465_v41  ;;  %v3478_v1 = vpop.eup %3477  ;;  %v1464_v47 = vmul.f32 0.7978846, %v1400_v62 }
 0x265   : > { %v1403_v29 = vadd.f32 %v4558_v18, %v4498_v3  ;;  %v1405_v14 = vadd.f32 %v1341_v9, %v4528_v17  ;;  %v1347_v5 = vmul.f32 %v1283_v24, %v4572_v2  ;;  %v1285_v22 = vmul.f32 %v1221_v32, %v4592_v33 }
 0x266   : > { %1926 = vmatmul.mubr.bf16.gmra.mxu1 %v1702_v16  ;;  %v1589_v43 = vadd.f32 1.0, %v3478_v1  ;;  %3487 = vtanh.f32 %v1462_v38  ;;  %v1402_v61 = vadd.f32 %v4547_v51, %v4487_v52  ;;  %v1284_v25 = vmul.f32 %v1220_v7, %v4600_v31 }
 0x267   : > { %3489 = vtanh.f32 %v1464_v47  ;;  %v1467_v45 = vmul.f32 0.7978846, %v1403_v29  ;;  %v1469_v19 = vmul.f32 0.7978846, %v1405_v14  ;;  %v1651_v46 = vmul.f32 %v1587_v15, %v4552_v48 }
 0x268   : > { %v1653_v18 = vmul.f32 %v1589_v43, %v4575_v54  ;;  %v1404_v9 = vadd.f32 %v1340_v27, %v4525_v59  ;;  %v1466_v10 = vmul.f32 0.7978846, %v1402_v61  ;;  %v1407_v53 = vadd.f32 %v1343_v30, %v4540_v11 }
 0x269   : > { %v3480_v57 = vpop.eup %3479  ;;  %3491 = vtanh.f32 %v1467_v45  ;;  %v1409_v56 = vadd.f32 %v1345_v49, %v4565_v12  ;;  %v1349_v4 = vmul.f32 %v1285_v22, %v4592_v33  ;;  %v1138_v54 = vmul.f32 0.5, %v4407_v23 }
 0x26a   : > { %v1705_v0 = vpack.c.bf16 %v1653_v18, %v1651_v46  ;;  %v1586_v13 = vadd.f32 1.0, %v3480_v57  ;;  %3493 = vtanh.f32 %v1469_v19  ;;  %v1468_v34 = vmul.f32 0.7978846, %v1404_v9  ;;  %v3482_v51 = vpop.eup %3481 }
 0x26b   : > { %3495 = vtanh.f32 %v1466_v10  ;;  %v1471_v48 = vmul.f32 0.7978846, %v1407_v53  ;;  %v1473_v24 = vmul.f32 0.7978846, %v1409_v56  ;;  %v1140_v27 = vmul.f32 0.5, %v4437_v60 }
 0x26c   : > { %1933 = vmatprep.mubr.bf16.mxu1 %v1705_v0  ;;  %v1588_v32 = vadd.f32 1.0, %v3482_v51  ;;  %3497 = vtanh.f32 %v1468_v34  ;;  %v1348_v30 = vmul.f32 %v1284_v25, %v4600_v31  ;;  %v1406_v36 = vadd.f32 %v4595_v39, %v4531_v8 }
 0x26d   : > { %3499 = vtanh.f32 %v1471_v48  ;;  %v1408_v37 = vadd.f32 %v1344_v58, %v4562_v44  ;;  %v1650_v41 = vmul.f32 %v1586_v13, %v1138_v54  ;;  %v1411_v62 = vadd.f32 %v1347_v5, %v4572_v2 }
 0x26e   : > { %v1652_v28 = vmul.f32 %v1588_v32, %v1140_v27  ;;  %3501 = vtanh.f32 %v1473_v24  ;;  %v1346_v42 = vmul.f32 %v1282_v20, %v4584_v63  ;;  %v1470_v23 = vmul.f32 0.7978846, %v1406_v36 }
 0x26f   : > { %v1472_v49 = vmul.f32 0.7978846, %v1408_v37  ;;  %v1413_v60 = vadd.f32 %v1349_v4, %v4592_v33  ;;  %v1475_v15 = vmul.f32 0.7978846, %v1411_v62  ;;  %v1412_v58 = vadd.f32 %v1348_v30, %v4600_v31 }
 0x270   : > { %v3484_v7 = vpop.eup %3483  ;;  %v1704_v16 = vpack.c.bf16 %v1652_v28, %v1650_v41  ;;  %3503 = vtanh.f32 %v1470_v23  ;;  %v1143_v47 = vmul.f32 0.5, %v4457_v26  ;;  %v1145_v29 = vmul.f32 0.5, %v4480_v21 }
 0x271   : > { %v3486_v38 = vpop.eup %3485  ;;  %v1591_v1 = vadd.f32 1.0, %v3484_v7  ;;  %v1477_v39 = vmul.f32 0.7978846, %v1413_v60  ;;  %3505 = vtanh.f32 %v1472_v49  ;;  %v1410_v5 = vadd.f32 %v1346_v42, %v4584_v63 }
 0x272   : > { %1934 = vmatmul.mubr.bf16.gmra.mxu1 %v1704_v16  ;;  %v1593_v14 = vadd.f32 1.0, %v3486_v38  ;;  %3507 = vtanh.f32 %v1475_v15  ;;  %v1142_v61 = vmul.f32 0.5, %v4450_v40  ;;  %v1144_v25 = vmul.f32 0.5, %v4474_v6 }
 0x273   : > { %v3488_v20 = vpop.eup %3487  ;;  %v1655_v43 = vmul.f32 %v1591_v1, %v1143_v47  ;;  %3509 = vtanh.f32 %v1477_v39  ;;  %v1476_v18 = vmul.f32 0.7978846, %v1412_v58  ;;  %v1474_v56 = vmul.f32 0.7978846, %v1410_v5 }
 0x274   : > { %v3490_v22 = vpop.eup %3489  ;;  %v1657_v45 = vmul.f32 %v1593_v14, %v1145_v29  ;;  %v1590_v19 = vadd.f32 1.0, %v3488_v20  ;;  %v1147_v13 = vmul.f32 0.5, %v4498_v3  ;;  %v1149_v34 = vmul.f32 0.5, %v4528_v17 }
 0x275   : > { %v1592_v46 = vadd.f32 1.0, %v3490_v22  ;;  %3511 = vtanh.f32 %v1476_v18  ;;  %v1148_v32 = vmul.f32 0.5, %v4525_v59  ;;  %v1151_v3 = vmul.f32 0.5, %v4540_v11 }
 0x276   : > { %v3492_v26 = vpop.eup %3491  ;;  %v1707_v9 = vpack.c.bf16 %v1657_v45, %v1655_v43  ;;  %v1654_v57 = vmul.f32 %v1590_v19, %v1142_v61  ;;  %3513 = vtanh.f32 %v1474_v56  ;;  %v1153_v17 = vmul.f32 0.5, %v4565_v12 }
 0x277   : > { %v3494_v21 = vpop.eup %3493  ;;  %v1656_v10 = vmul.f32 %v1592_v46, %v1144_v25  ;;  %v1595_v53 = vadd.f32 1.0, %v3492_v26  ;;  %v1146_v28 = vmul.f32 0.5, %v4487_v52  ;;  %v1157_v39 = vmul.f32 0.5, %v4592_v33 }
 0x278   : > { %v3496_v0 = vpop.eup %3495  ;;  %1941 = vmatprep.mubr.bf16.mxu1 %v1707_v9  ;;  %v1597_v51 = vadd.f32 1.0, %v3494_v21  ;;  %v1152_v12 = vmul.f32 0.5, %v4562_v44  ;;  %v1155_v47 = vmul.f32 0.5, %v4572_v2  ;;  %v1150_v14 = vmul.f32 0.5, %v4531_v8 }
 0x279   : > { %v3498_v4 = vpop.eup %3497  ;;  %v1706_v40 = vpack.c.bf16 %v1656_v10, %v1654_v57  ;;  %v1659_v48 = vmul.f32 %v1595_v53, %v1147_v13  ;;  %v1594_v30 = vadd.f32 1.0, %v3496_v0  ;;  %v1156_v25 = vmul.f32 0.5, %v4600_v31 }
 0x27a   : > { %v3500_v6 = vpop.eup %3499  ;;  %v1661_v24 = vmul.f32 %v1597_v51, %v1149_v34  ;;  %v1596_v54 = vadd.f32 1.0, %v3498_v4  ;;  %v1154_v44 = vmul.f32 0.5, %v4584_v63 }
 0x27b   : > { %v3502_v27 = vpop.eup %3501  ;;  %1942 = vmatmul.mubr.bf16.gmra.mxu1 %v1706_v40  ;;  %v1599_v36 = vadd.f32 1.0, %v3500_v6  ;;  %v1658_v7 = vmul.f32 %v1594_v30, %v1146_v28 }
 0x27c   : > { %v1709_v37 = vpack.c.bf16 %v1661_v24, %v1659_v48  ;;  %v1601_v41 = vadd.f32 1.0, %v3502_v27  ;;  %v1660_v62 = vmul.f32 %v1596_v54, %v1148_v32 }
 0x27d   : > { %v3504_v42 = vpop.eup %3503  ;;  %v1663_v23 = vmul.f32 %v1599_v36, %v1151_v3 }
 0x27e   : > { %1949 = vmatprep.mubr.bf16.mxu1 %v1709_v37  ;;  %v1665_v49 = vmul.f32 %v1601_v41, %v1153_v17  ;;  %v3506_v60 = vpop.eup %3505  ;;  %v1708_v38 = vpack.c.bf16 %v1660_v62, %v1658_v7  ;;  %v1598_v52 = vadd.f32 1.0, %v3504_v42 }
 0x27f   : > { %v3508_v16 = vpop.eup %3507  ;;  %v1600_v1 = vadd.f32 1.0, %v3506_v60 }
 0x280   : > { %v1711_v59 = vpack.c.bf16 %v1665_v49, %v1663_v23  ;;  %v3510_v15 = vpop.eup %3509  ;;  %v1603_v11 = vadd.f32 1.0, %v3508_v16  ;;  %v1662_v43 = vmul.f32 %v1598_v52, %v1150_v14 }
 0x281   : > { %v1605_v58 = vadd.f32 1.0, %v3510_v15  ;;  %v1664_v20 = vmul.f32 %v1600_v1, %v1152_v12 }
 0x282   : > { %v3512_v5 = vpop.eup %3511  ;;  %v1667_v22 = vmul.f32 %v1603_v11, %v1155_v47 }
 0x283   : > { %1950 = vmatmul.mubr.bf16.gmra.mxu1 %v1708_v38  ;;  %v1669_v29 = vmul.f32 %v1605_v58, %v1157_v39  ;;  %v3514_v45 = vpop.eup %3513  ;;  %v1710_v61 = vpack.c.bf16 %v1664_v20, %v1662_v43  ;;  %v1604_v33 = vadd.f32 1.0, %v3512_v5 }
 0x284   : > { %1957 = vmatprep.mubr.bf16.mxu1 %v1711_v59  ;;  %v1602_v46 = vadd.f32 1.0, %v3514_v45 }
 0x285   : > { %v1713_v19 = vpack.c.bf16 %v1669_v29, %v1667_v22  ;;  %v1668_v18 = vmul.f32 %v1604_v33, %v1156_v25 }
 0x286   : > { %v1666_v2 = vmul.f32 %v1602_v46, %v1154_v44 }
 0x288   : > { %v1712_v26 = vpack.c.bf16 %v1668_v18, %v1666_v2 }
 0x28b   : > { %1958 = vmatmul.mubr.bf16.gmra.mxu1 %v1710_v61 }
 0x28c   : > { %1965 = vmatprep.mubr.bf16.mxu1 %v1713_v19 }
 0x293   : > { %1966 = vmatmul.mubr.bf16.gmra.mxu1 %v1712_v26 }
 0x2a3   : > { %v1059_v8 = vpop.f32.mrf.mxu0 }
 0x2a4   : > { %v4661_v9 = vadd.f32 %v1059_v8, %v4264_v50 }
 0x2a5   : > { %v1061_v21 = vpop.f32.mrf.mxu0 }
 0x2a6   : > { %v1222_v57 = vmul.f32 0.044715, %v4661_v9  ;;  %v4665_v10 = vadd.f32 %v1061_v21, %v4266_v35 }
 0x2a7   : > { %v1063_v53 = vpop.f32.mrf.mxu0 }
 0x2a8   : > { %v1286_v31 = vmul.f32 %v1222_v57, %v4661_v9  ;;  %v1223_v56 = vmul.f32 0.044715, %v4665_v10  ;;  %v4670_v63 = vadd.f32 %v1063_v53, %v4264_v50 }
 0x2a9   : > { %v1065_v0 = vpop.f32.mrf.mxu0 }
 0x2aa   : > { %v1350_v13 = vmul.f32 %v1286_v31, %v4661_v9  ;;  %v1287_v34 = vmul.f32 %v1223_v56, %v4665_v10  ;;  %v1224_v51 = vmul.f32 0.044715, %v4670_v63  ;;  %v4676_v4 = vadd.f32 %v1065_v0, %v4266_v35 }
 0x2ab   : > { %v1069_v40 = vpop.f32.mrf.mxu0  ;;  %v4720_v56 = vmul.f32 0.5, %v4661_v9 }
 0x2ac   : > { %v1351_v6 = vmul.f32 %v1287_v34, %v4665_v10  ;;  %v1288_v48 = vmul.f32 %v1224_v51, %v4670_v63  ;;  %v1225_v24 = vmul.f32 0.044715, %v4676_v4  ;;  %v4682_v54 = vadd.f32 %v1069_v40, %v4264_v50 }
 0x2ad   : > { %v1071_v27 = vpop.f32.mrf.mxu0  ;;  %v1414_v32 = vadd.f32 %v1350_v13, %v4661_v9  ;;  %v1159_v13 = vmul.f32 0.5, %v4665_v10 }
 0x2ae   : > { %v1352_v30 = vmul.f32 %v1288_v48, %v4670_v63  ;;  %v1289_v36 = vmul.f32 %v1225_v24, %v4676_v4  ;;  %v1226_v37 = vmul.f32 0.044715, %v4682_v54  ;;  %v4689_v3 = vadd.f32 %v1071_v27, %v4266_v35 }
 0x2af   : > { %v1073_v17 = vpop.f32.mrf.mxu0  ;;  %v1415_v41 = vadd.f32 %v1351_v6, %v4665_v10  ;;  %v1478_v28 = vmul.f32 0.7978846, %v1414_v32  ;;  %v1160_v24 = vmul.f32 0.5, %v4670_v63 }
 0x2b0   : > { %v1353_v62 = vmul.f32 %v1289_v36, %v4676_v4  ;;  %v1290_v42 = vmul.f32 %v1226_v37, %v4682_v54  ;;  %v1227_v23 = vmul.f32 0.044715, %v4689_v3  ;;  %v4696_v49 = vadd.f32 %v1073_v17, %v4264_v50 }
 0x2b1   : > { %v1075_v60 = vpop.f32.mrf.mxu0  ;;  %v1479_v7 = vmul.f32 0.7978846, %v1415_v41  ;;  %v1416_v16 = vadd.f32 %v1352_v30, %v4670_v63  ;;  %3515 = vtanh.f32 %v1478_v28  ;;  %v1161_v30 = vmul.f32 0.5, %v4676_v4 }
 0x2b2   : > { %v1354_v59 = vmul.f32 %v1290_v42, %v4682_v54  ;;  %v1291_v15 = vmul.f32 %v1227_v23, %v4689_v3  ;;  %v1228_v38 = vmul.f32 0.044715, %v4696_v49  ;;  %v1076_v1 = vadd.f32 %v1075_v60, %v4266_v35 }
 0x2b3   : > { %v1079_v39 = vpop.f32.mrf.mxu0  ;;  %v1417_v11 = vadd.f32 %v1353_v62, %v4676_v4  ;;  %3517 = vtanh.f32 %v1479_v7  ;;  %v1480_v58 = vmul.f32 0.7978846, %v1416_v16  ;;  %v4735_v41 = vmul.f32 0.5, %v4682_v54 }
 0x2b4   : > { %v1355_v12 = vmul.f32 %v1291_v15, %v4689_v3  ;;  %v1292_v52 = vmul.f32 %v1228_v38, %v4696_v49  ;;  %v1229_v47 = vmul.f32 0.044715, %v1076_v1  ;;  %v1080_v29 = vadd.f32 %v1079_v39, %v4264_v50 }
 0x2b5   : > { %v1081_v14 = vpop.f32.mrf.mxu0  ;;  %v1481_v20 = vmul.f32 0.7978846, %v1417_v11  ;;  %3519 = vtanh.f32 %v1480_v58  ;;  %v1418_v5 = vadd.f32 %v1354_v59, %v4682_v54  ;;  %v4739_v62 = vmul.f32 0.5, %v4689_v3 }
 0x2b6   : > { %v1356_v22 = vmul.f32 %v1292_v52, %v4696_v49  ;;  %v1293_v43 = vmul.f32 %v1229_v47, %v1076_v1  ;;  %v1230_v45 = vmul.f32 0.044715, %v1080_v29  ;;  %v1082_v19 = vadd.f32 %v1081_v14, %v4266_v35 }
 0x2b7   : > { %v1083_v61 = vpop.f32.mrf.mxu0  ;;  %3521 = vtanh.f32 %v1481_v20  ;;  %v1419_v33 = vadd.f32 %v1355_v12, %v4689_v3  ;;  %v1482_v25 = vmul.f32 0.7978846, %v1418_v5  ;;  %v4747_v16 = vmul.f32 0.5, %v4696_v49 }
 0x2b8   : > { %v1357_v46 = vmul.f32 %v1293_v43, %v1076_v1  ;;  %v1231_v44 = vmul.f32 0.044715, %v1082_v19  ;;  %v4712_v18 = vadd.f32 %v1083_v61, %v4264_v50  ;;  %v1294_v2 = vmul.f32 %v1230_v45, %v1080_v29 }
 0x2b9   : > { %v1085_v26 = vpop.f32.mrf.mxu0  ;;  %v1483_v8 = vmul.f32 0.7978846, %v1419_v33  ;;  %v1420_v21 = vadd.f32 %v1356_v22, %v4696_v49  ;;  %3523 = vtanh.f32 %v1482_v25  ;;  %v4749_v59 = vmul.f32 0.5, %v1076_v1 }
 0x2ba   : > { %v1295_v57 = vmul.f32 %v1231_v44, %v1082_v19  ;;  %v1232_v53 = vmul.f32 0.044715, %v4712_v18  ;;  %v4717_v31 = vadd.f32 %v1085_v26, %v4266_v35  ;;  %v1421_v34 = vadd.f32 %v1357_v46, %v1076_v1 }
 0x2bb   : > { %v1089_v0 = vpop.f32.mrf.mxu0  ;;  %3525 = vtanh.f32 %v1483_v8  ;;  %v1484_v51 = vmul.f32 0.7978846, %v1420_v21  ;;  %v1358_v27 = vmul.f32 %v1294_v2, %v1080_v29  ;;  %v4751_v38 = vmul.f32 0.5, %v1080_v29 }
 0x2bc   : > { %v1359_v40 = vmul.f32 %v1295_v57, %v1082_v19  ;;  %v1296_v6 = vmul.f32 %v1232_v53, %v4712_v18  ;;  %v1233_v48 = vmul.f32 0.044715, %v4717_v31  ;;  %v1485_v36 = vmul.f32 0.7978846, %v1421_v34 }
 0x2bd   : > { %v1091_v32 = vpop.f32.mrf.mxu0  ;;  %3527 = vtanh.f32 %v1484_v51  ;;  %v4729_v10 = vadd.f32 %v1089_v0, %v4264_v50  ;;  %v1422_v3 = vadd.f32 %v1358_v27, %v1080_v29  ;;  %v4757_v52 = vmul.f32 0.5, %v1082_v19 }
 0x2be   : > { %v3516_v9 = vpop.eup %3515  ;;  %v1297_v37 = vmul.f32 %v1233_v48, %v4717_v31  ;;  %v4732_v17 = vadd.f32 %v1091_v32, %v4266_v35  ;;  %v1360_v63 = vmul.f32 %v1296_v6, %v4712_v18  ;;  %3529 = vtanh.f32 %v1485_v36 }
 0x2bf   : > { %v1093_v28 = vpop.f32.mrf.mxu0  ;;  %v1423_v4 = vadd.f32 %v1359_v40, %v1082_v19  ;;  %v1234_v11 = vmul.f32 0.044715, %v4729_v10  ;;  %v1606_v43 = vadd.f32 1.0, %v3516_v9  ;;  %v1486_v25 = vmul.f32 0.7978846, %v1422_v3 }
 0x2c0   : > { %v3518_v42 = vpop.eup %3517  ;;  %v1361_v23 = vmul.f32 %v1297_v37, %v4717_v31  ;;  %v1235_v60 = vmul.f32 0.044715, %v4732_v17  ;;  %v4744_v7 = vadd.f32 %v1093_v28, %v4264_v50  ;;  %v1424_v1 = vadd.f32 %v1360_v63, %v4712_v18 }
 0x2c1   : > { %v1095_v54 = vpop.f32.mrf.mxu0  ;;  %v1487_v15 = vmul.f32 0.7978846, %v1423_v4  ;;  %v1607_v12 = vadd.f32 1.0, %v3518_v42  ;;  %v1298_v44 = vmul.f32 %v1234_v11, %v4729_v10  ;;  %v1670_v48 = vmul.f32 %v1606_v43, %v4720_v56 }
 0x2c2   : > { %v3520_v39 = vpop.eup %3519  ;;  %v4755_v58 = vadd.f32 %v1095_v54, %v4266_v35  ;;  %v1425_v49 = vadd.f32 %v1361_v23, %v4717_v31  ;;  %v1299_v5 = vmul.f32 %v1235_v60, %v4732_v17  ;;  %v1236_v29 = vmul.f32 0.044715, %v4744_v7 }
 0x2c3   : > { %v1099_v47 = vpop.f32.mrf.mxu0  ;;  %v1608_v14 = vadd.f32 1.0, %v3520_v39  ;;  %3531 = vtanh.f32 %v1487_v15  ;;  %v1671_v26 = vmul.f32 %v1607_v12, %v1159_v13  ;;  %v1488_v0 = vmul.f32 0.7978846, %v1424_v1 }
 0x2c4   : > { %v3522_v20 = vpop.eup %3521  ;;  %v1237_v22 = vmul.f32 0.044715, %v4755_v58  ;;  %v4765_v45 = vadd.f32 %v1099_v47, %v4264_v50  ;;  %v1489_v33 = vmul.f32 0.7978846, %v1425_v49  ;;  %v1363_v51 = vmul.f32 %v1299_v5, %v4732_v17 }
 0x2c5   : > { %v1101_v19 = vpop.f32.mrf.mxu0  ;;  %v1609_v61 = vadd.f32 1.0, %v3522_v20  ;;  %v1672_v8 = vmul.f32 %v1608_v14, %v1160_v24  ;;  %v1300_v40 = vmul.f32 %v1236_v29, %v4744_v7  ;;  %v1362_v28 = vmul.f32 %v1298_v44, %v4729_v10 }
 0x2c6   : > { %v3524_v46 = vpop.eup %3523  ;;  %v4769_v2 = vadd.f32 %v1101_v19, %v4266_v35  ;;  %v1301_v21 = vmul.f32 %v1237_v22, %v4755_v58  ;;  %3533 = vtanh.f32 %v1489_v33  ;;  %v1238_v27 = vmul.f32 0.044715, %v4765_v45 }
 0x2c7   : > { %v1103_v57 = vpop.f32.mrf.mxu0  ;;  %v1673_v53 = vmul.f32 %v1609_v61, %v1161_v30  ;;  %v1610_v32 = vadd.f32 1.0, %v3524_v46  ;;  %3535 = vtanh.f32 %v1486_v25  ;;  %v1714_v37 = vpack.c.bf16 %v1672_v8, %v1670_v48 }
 0x2c8   : > { %v3526_v34 = vpop.eup %3525  ;;  %v4775_v6 = vadd.f32 %v1103_v57, %v4264_v50  ;;  %v1239_v30 = vmul.f32 0.044715, %v4769_v2  ;;  %v1365_v4 = vmul.f32 %v1301_v21, %v4755_v58  ;;  %3537 = vtanh.f32 %v1488_v0 }
 0x2c9   : > { %v1105_v13 = vpop.f32.mrf.mxu0  ;;  %v1715_v24 = vpack.c.bf16 %v1673_v53, %v1671_v26  ;;  %v1611_v63 = vadd.f32 1.0, %v3526_v34  ;;  %v1364_v60 = vmul.f32 %v1300_v40, %v4744_v7  ;;  %v1302_v39 = vmul.f32 %v1238_v27, %v4765_v45 }
 0x2ca   : > { %v3528_v36 = vpop.eup %3527  ;;  %v4781_v9 = vadd.f32 %v1105_v13, %v4266_v35  ;;  %v1240_v54 = vmul.f32 0.044715, %v4775_v6  ;;  %v1674_v47 = vmul.f32 %v1610_v32, %v4735_v41  ;;  %v1427_v14 = vadd.f32 %v1363_v51, %v4732_v17 }
 0x2cb   : > { %1973 = vmatprep.mubr.bf16.mxu1 %v1715_v24  ;;  %v1109_v56 = vpop.f32.mrf.mxu0  ;;  %v1612_v42 = vadd.f32 1.0, %v3528_v36  ;;  %v3530_v23 = vpop.eup %3529  ;;  %v1303_v49 = vmul.f32 %v1239_v30, %v4769_v2  ;;  %v1675_v20 = vmul.f32 %v1611_v63, %v4739_v62  ;;  %v1429_v19 = vadd.f32 %v1365_v4, %v4755_v58 }
 0x2cc   : > { %v1241_v15 = vmul.f32 0.044715, %v4781_v9  ;;  %v4789_v3 = vadd.f32 %v1109_v56, %v4264_v50  ;;  %1974 = vmatmul.mubr.bf16.gmra.mxu1 %v1714_v37  ;;  %v1613_v12 = vadd.f32 1.0, %v3530_v23  ;;  %v1491_v61 = vmul.f32 0.7978846, %v1427_v14 }
 0x2cd   : > { %v1111_v11 = vpop.f32.mrf.mxu0  ;;  %v1676_v5 = vmul.f32 %v1612_v42, %v4747_v16  ;;  %v1304_v33 = vmul.f32 %v1240_v54, %v4775_v6  ;;  %v1493_v8 = vmul.f32 0.7978846, %v1429_v19  ;;  %v1366_v0 = vmul.f32 %v1302_v39, %v4765_v45 }
 0x2ce   : > { %v4796_v1 = vadd.f32 %v1111_v11, %v4266_v35  ;;  %v1305_v29 = vmul.f32 %v1241_v15, %v4781_v9  ;;  %v1677_v43 = vmul.f32 %v1613_v12, %v4749_v59  ;;  %v1242_v25 = vmul.f32 0.044715, %v4789_v3 }
 0x2cf   : > { %v1113_v22 = vpop.f32.mrf.mxu0  ;;  %3539 = vtanh.f32 %v1491_v61  ;;  %v1367_v59 = vmul.f32 %v1303_v49, %v4769_v2  ;;  %v1716_v53 = vpack.c.bf16 %v1676_v5, %v1674_v47  ;;  %v1368_v40 = vmul.f32 %v1304_v33, %v4775_v6 }
 0x2d0   : > { %v3532_v41 = vpop.eup %3531  ;;  %v1243_v46 = vmul.f32 0.044715, %v4796_v1  ;;  %v4807_v44 = vadd.f32 %v1113_v22, %v4264_v50  ;;  %v1717_v16 = vpack.c.bf16 %v1677_v43, %v1675_v20  ;;  %v1369_v34 = vmul.f32 %v1305_v29, %v4781_v9 }
 0x2d1   : > { %v1115_v62 = vpop.f32.mrf.mxu0  ;;  %v1615_v26 = vadd.f32 1.0, %v3532_v41  ;;  %v1169_v50 = vmul.f32 0.5, %v4717_v31  ;;  %3541 = vtanh.f32 %v1493_v8  ;;  %v1306_v13 = vmul.f32 %v1242_v25, %v4789_v3 }
 0x2d2   : > { %v1244_v21 = vmul.f32 0.044715, %v4807_v44  ;;  %v4812_v57 = vadd.f32 %v1115_v62, %v4266_v35  ;;  %1981 = vmatprep.mubr.bf16.mxu1 %v1717_v16  ;;  %v1307_v48 = vmul.f32 %v1243_v46, %v4796_v1  ;;  %v1426_v35 = vadd.f32 %v1362_v28, %v4729_v10 }
 0x2d3   : > { %v3534_v51 = vpop.eup %3533  ;;  %v1679_v32 = vmul.f32 %v1615_v26, %v4757_v52  ;;  %v1428_v36 = vadd.f32 %v1364_v60, %v4744_v7  ;;  %v1431_v4 = vadd.f32 %v1367_v59, %v4769_v2  ;;  %v1433_v28 = vadd.f32 %v1369_v34, %v4781_v9 }
 0x2d4   : > { %v1245_v27 = vmul.f32 0.044715, %v4812_v57  ;;  %1982 = vmatmul.mubr.bf16.gmra.mxu1 %v1716_v53  ;;  %v1617_v24 = vadd.f32 1.0, %v3534_v51  ;;  %v3536_v30 = vpop.eup %3535  ;;  %v1308_v31 = vmul.f32 %v1244_v21, %v4807_v44  ;;  %v1490_v63 = vmul.f32 0.7978846, %v1426_v35 }
 0x2d5   : > { %v1614_v42 = vadd.f32 1.0, %v3536_v30  ;;  %v1492_v23 = vmul.f32 0.7978846, %v1428_v36  ;;  %v3538_v54 = vpop.eup %3537  ;;  %v1371_v15 = vmul.f32 %v1307_v48, %v4796_v1  ;;  %v1495_v60 = vmul.f32 0.7978846, %v1431_v4 }
 0x2d6   : > { %v1309_v37 = vmul.f32 %v1245_v27, %v4812_v57  ;;  %v1681_v56 = vmul.f32 %v1617_v24, %v1169_v50  ;;  %3543 = vtanh.f32 %v1490_v63  ;;  %v1168_v11 = vmul.f32 0.5, %v4712_v18 }
 0x2d7   : > { %v1616_v12 = vadd.f32 1.0, %v3538_v54  ;;  %3545 = vtanh.f32 %v1492_v23  ;;  %v1370_v47 = vmul.f32 %v1306_v13, %v4789_v3  ;;  %v1497_v14 = vmul.f32 0.7978846, %v1433_v28 }
 0x2d8   : > { %v1373_v52 = vmul.f32 %v1309_v37, %v4812_v57  ;;  %v1719_v39 = vpack.c.bf16 %v1681_v56, %v1679_v32  ;;  %3547 = vtanh.f32 %v1495_v60  ;;  %v1430_v49 = vadd.f32 %v1366_v0, %v4765_v45 }
 0x2d9   : > { %v1372_v20 = vmul.f32 %v1308_v31, %v4807_v44  ;;  %v1678_v5 = vmul.f32 %v1614_v42, %v4751_v38  ;;  %v1680_v29 = vmul.f32 %v1616_v12, %v1168_v11  ;;  %v1432_v22 = vadd.f32 %v1368_v40, %v4775_v6 }
 0x2da   : > { %1989 = vmatprep.mubr.bf16.mxu1 %v1719_v39  ;;  %3549 = vtanh.f32 %v1497_v14  ;;  %v1494_v43 = vmul.f32 0.7978846, %v1430_v49  ;;  %v1435_v18 = vadd.f32 %v1371_v15, %v4796_v1  ;;  %v1437_v19 = vadd.f32 %v1373_v52, %v4812_v57 }
 0x2db   : > { %v1718_v61 = vpack.c.bf16 %v1680_v29, %v1678_v5  ;;  %v1496_v41 = vmul.f32 0.7978846, %v1432_v22  ;;  %v1434_v62 = vadd.f32 %v1370_v47, %v4789_v3  ;;  %v1436_v38 = vadd.f32 %v1372_v20, %v4807_v44 }
 0x2dc   : > { %v3540_v33 = vpop.eup %3539  ;;  %3551 = vtanh.f32 %v1494_v43  ;;  %v1499_v25 = vmul.f32 0.7978846, %v1435_v18  ;;  %v1501_v46 = vmul.f32 0.7978846, %v1437_v19  ;;  %v1171_v8 = vmul.f32 0.5, %v4732_v17 }
 0x2dd   : > { %1990 = vmatmul.mubr.bf16.gmra.mxu1 %v1718_v61  ;;  %v1619_v16 = vadd.f32 1.0, %v3540_v33  ;;  %3553 = vtanh.f32 %v1496_v41  ;;  %v1173_v59 = vmul.f32 0.5, %v4755_v58  ;;  %v1498_v53 = vmul.f32 0.7978846, %v1434_v62 }
 0x2de   : > { %v3542_v26 = vpop.eup %3541  ;;  %3555 = vtanh.f32 %v1499_v25  ;;  %v1500_v0 = vmul.f32 0.7978846, %v1436_v38  ;;  %v1170_v13 = vmul.f32 0.5, %v4729_v10  ;;  %v1172_v17 = vmul.f32 0.5, %v4744_v7 }
 0x2df   : > { %v1621_v21 = vadd.f32 1.0, %v3542_v26  ;;  %3557 = vtanh.f32 %v1501_v46  ;;  %v1683_v34 = vmul.f32 %v1619_v16, %v1171_v8  ;;  %v1175_v31 = vmul.f32 0.5, %v4769_v2 }
 0x2e0   : > { %3559 = vtanh.f32 %v1500_v0  ;;  %v1177_v37 = vmul.f32 0.5, %v4781_v9  ;;  %v1176_v10 = vmul.f32 0.5, %v4775_v6  ;;  %v1174_v39 = vmul.f32 0.5, %v4765_v45 }
 0x2e1   : > { %v1685_v50 = vmul.f32 %v1621_v21, %v1173_v59  ;;  %3561 = vtanh.f32 %v1498_v53  ;;  %v1179_v9 = vmul.f32 0.5, %v4796_v1  ;;  %v1181_v12 = vmul.f32 0.5, %v4812_v57 }
 0x2e2   : > { %v1180_v18 = vmul.f32 0.5, %v4807_v44  ;;  %v1178_v19 = vmul.f32 0.5, %v4789_v3  ;;  %v4855_v3 = vld [vmem:[%s5623_s6] ss:$0 sm:$0xff] }
 0x2e3   : > { %v3544_v51 = vpop.eup %3543  ;;  %v1721_v40 = vpack.c.bf16 %v1685_v50, %v1683_v34 }
 0x2e4   : > { %v3546_v48 = vpop.eup %3545  ;;  %v1618_v27 = vadd.f32 1.0, %v3544_v51  ;;  %v3563_v51 = vld [vmem:[%s3765_s25 + $0x20] sm:$0xff] }
 0x2e5   : > { %v3548_v35 = vpop.eup %3547  ;;  %1997 = vmatprep.mubr.bf16.mxu1 %v1721_v40  ;;  %v1620_v58 = vadd.f32 1.0, %v3546_v48  ;;  %v3564_v48 = vld [vmem:[%s3765_s25 + $0x28] sm:$0xff] }
 0x2e6   : > { %v1623_v24 = vadd.f32 1.0, %v3548_v35  ;;  %v1682_v36 = vmul.f32 %v1618_v27, %v1170_v13 }
 0x2e7   : > { %v3550_v32 = vpop.eup %3549  ;;  %v1684_v30 = vmul.f32 %v1620_v58, %v1172_v17 }
 0x2e8   : > { %v1625_v63 = vadd.f32 1.0, %v3550_v32  ;;  %v1687_v23 = vmul.f32 %v1623_v24, %v1175_v31 }
 0x2e9   : > { %v3552_v4 = vpop.eup %3551  ;;  %v1720_v56 = vpack.c.bf16 %v1684_v30, %v1682_v36 }
 0x2ea   : > { %v3554_v42 = vpop.eup %3553  ;;  %v1689_v28 = vmul.f32 %v1625_v63, %v1177_v37  ;;  %v1622_v7 = vadd.f32 1.0, %v3552_v4 }
 0x2eb   : > { %v3556_v54 = vpop.eup %3555  ;;  %1998 = vmatmul.mubr.bf16.gmra.mxu1 %v1720_v56  ;;  %v1624_v15 = vadd.f32 1.0, %v3554_v42 }
 0x2ec   : > { %v3558_v52 = vpop.eup %3557  ;;  %v1723_v60 = vpack.c.bf16 %v1689_v28, %v1687_v23  ;;  %v1627_v11 = vadd.f32 1.0, %v3556_v54  ;;  %v1686_v49 = vmul.f32 %v1622_v7, %v1174_v39  ;;  %v3565_v28 = vld [vmem:[%s3765_s25 + $0x30] sm:$0xff] }
 0x2ed   : > { %v1688_v2 = vmul.f32 %v1624_v15, %v1176_v10  ;;  %v1629_v47 = vadd.f32 1.0, %v3558_v52  ;;  %v3560_v14 = vpop.eup %3559  ;;  %v3566_v10 = vld [vmem:[%s3765_s25 + $0x38] sm:$0xff] }
 0x2ee   : > { %2005 = vmatprep.mubr.bf16.mxu1 %v1723_v60  ;;  %v1691_v20 = vmul.f32 %v1627_v11, %v1179_v9  ;;  %v3562_v29 = vpop.eup %3561  ;;  %v1628_v43 = vadd.f32 1.0, %v3560_v14  ;;  %v3567_v60 = vld [vmem:[%s3765_s25 + $0x18] sm:$0xff] }
 0x2ef   : > { %v1693_v5 = vmul.f32 %v1629_v47, %v1181_v12  ;;  %v1722_v6 = vpack.c.bf16 %v1688_v2, %v1686_v49  ;;  %v1626_v45 = vadd.f32 1.0, %v3562_v29  ;;  %v3568_v47 = vld [vmem:[%s3765_s25 + $0x10] sm:$0xff] }
 0x2f0   : > { %v1692_v1 = vmul.f32 %v1628_v43, %v1180_v18 }
 0x2f1   : > { %v1725_v22 = vpack.c.bf16 %v1693_v5, %v1691_v20  ;;  %v1690_v61 = vmul.f32 %v1626_v45, %v1178_v19  ;;  %v3569_v20 = vld [vmem:[%s3765_s25 + $0x8] sm:$0xff] }
 0x2f3   : > { %2006 = vmatmul.mubr.bf16.gmra.mxu1 %v1722_v6  ;;  %v1724_v41 = vpack.c.bf16 %v1692_v1, %v1690_v61 }
 0x2f4   : > { %2013 = vmatprep.mubr.bf16.mxu1 %v1725_v22  ;;  %v3570_v22 = vld [vmem:[%s3765_s25] sm:$0xff] }
 0x2f9   : > { %v3097_v57 = vpop.f32.mrf.mxu1 }
 0x2fb   : > { %v3098_v33 = vpop.f32.mrf.mxu1  ;;  %2014 = vmatmul.mubr.bf16.gmra.mxu1 %v1724_v41 }
 0x2fc   : > { %v3099_v42 = vadd.f32 %v3098_v33, %v3097_v57 }
 0x2fd   : > { %v3100_v25 = vpop.f32.mrf.mxu1 }
 0x2fe   : > { %v1896_v12 = vadd.f32 %v3099_v42, %v4855_v3 }
 0x2ff   : > { %v3101_v46 = vpop.f32.mrf.mxu1 }
 0x300   : > { %v3102_v63 = vadd.f32 %v3101_v46, %v3100_v25  ;;  %v2022_v43 = vadd.f32 %v3570_v22, %v1896_v12  ;;  %v3578_v22 = vld [vmem:[%s3765_s25 + $0x88] sm:$0xff] }
 0x301   : > { %v3103_v62 = vpop.f32.mrf.mxu1 }
 0x302   : > { %v1899_v52 = vadd.f32 %v3102_v63, %v4855_v3  ;;  %v3573_v63 = vld [vmem:[%s3765_s25 + $0x68] sm:$0xff] }
 0x303   : > { %v3104_v16 = vpop.f32.mrf.mxu1 }
 0x304   : > { %v3105_v30 = vadd.f32 %v3104_v16, %v3103_v62  ;;  %v2023_v5 = vadd.f32 %v3569_v20, %v1899_v52 }
 0x305   : > { %v3106_v38 = vpop.f32.mrf.mxu1 }
 0x306   : > { %v1904_v23 = vadd.f32 %v3105_v30, %v4855_v3  ;;  %v3267_v19 = vpack.i.bf16 %v2023_v5, %v2022_v43  ;;  %v2247_v61 = vpack.c.bf16 %v2023_v5, %v2022_v43 }
 0x307   : > { %v3107_v26 = vpop.f32.mrf.mxu1 }
 0x308   : > { %v3108_v32 = vadd.f32 %v3107_v26, %v3106_v38  ;;  %v2024_v14 = vadd.f32 %v3568_v47, %v1904_v23 }
 0x309   : > { %v3109_v8 = vpop.f32.mrf.mxu1 }
 0x30a   : > { %v1907_v4 = vadd.f32 %v3108_v32, %v4855_v3 }
 0x30b   : > { %v3110_v44 = vpop.f32.mrf.mxu1 }
 0x30c   : > { %v3111_v59 = vadd.f32 %v3110_v44, %v3109_v8  ;;  %v2025_v39 = vadd.f32 %v3567_v60, %v1907_v4 }
 0x30d   : > { %v3112_v21 = vpop.f32.mrf.mxu1 }
 0x30e   : > { %v1912_v0 = vadd.f32 %v3111_v59, %v4855_v3  ;;  %v3257_v6 = vpack.i.bf16 %v2025_v39, %v2024_v14  ;;  %v2248_v45 = vpack.c.bf16 %v2025_v39, %v2024_v14 }
 0x30f   : > { %v3113_v53 = vpop.f32.mrf.mxu1 }
 0x310   : > { %v3114_v34 = vadd.f32 %v3113_v53, %v3112_v21  ;;  %v2026_v40 = vadd.f32 %v3563_v51, %v1912_v0 }
 0x312   : > { %v1915_v50 = vadd.f32 %v3114_v34, %v4855_v3 }
 0x314   : > { %v2027_v27 = vadd.f32 %v3564_v48, %v1915_v50 }
 0x316   : > { %v3242_v35 = vpack.i.bf16 %v2027_v27, %v2026_v40  ;;  %v2249_v29 = vpack.c.bf16 %v2027_v27, %v2026_v40 }
 0x318   : > { %3243 = vrot.lane.b32.xlu1 %v3242_v35, %s3658_s17 }
 0x31a   : > { %v3115_v13 = vpop.f32.mrf.mxu1 }
 0x31c   : > { %v3116_v17 = vpop.f32.mrf.mxu1 }
 0x31d   : > { %v3117_v58 = vadd.f32 %v3116_v17, %v3115_v13  ;;  %v3571_v17 = vld [vmem:[%s3765_s25 + $0x70] sm:$0xff] }
 0x31e   : > { %v3118_v24 = vpop.f32.mrf.mxu1 }
 0x31f   : > { %v1920_v31 = vadd.f32 %v3117_v58, %v4855_v3 }
 0x320   : > { %v3119_v36 = vpop.f32.mrf.mxu1 }
 0x321   : > { %v3120_v37 = vadd.f32 %v3119_v36, %v3118_v24  ;;  %v2028_v54 = vadd.f32 %v3565_v28, %v1920_v31  ;;  %v3572_v24 = vld [vmem:[%s3765_s25 + $0x78] sm:$0xff] }
 0x323   : > { %v1923_v56 = vadd.f32 %v3120_v37, %v4855_v3 }
 0x325   : > { %v2029_v7 = vadd.f32 %v3566_v10, %v1923_v56  ;;  %v3574_v10 = vld [vmem:[%s3765_s25 + $0x60] sm:$0xff] }
 0x326   : > { %v4868_v15 = vpop.f32.mrf.mxu1 }
 0x327   : > { %v2250_v11 = vpack.c.bf16 %v2029_v7, %v2028_v54  ;;  %v3237_v2 = vpack.i.bf16 %v2029_v7, %v2028_v54 }
 0x328   : > { %v3122_v9 = vpop.f32.mrf.mxu1 }
 0x329   : > { %2434 = vmatpush1.bf16.msra.mxu0 %v2250_v11  ;;  %3238 = vrot.lane.b32.xlu0 %v3237_v2, %s3658_s17  ;;  %v3123_v23 = vadd.f32 %v3122_v9, %v4868_v15  ;;  %v3575_v15 = vld [vmem:[%s3765_s25 + $0x58] sm:$0xff] }
 0x32a   : > { %v3124_v49 = vpop.f32.mrf.mxu1  ;;  %2435 = vmatprep.subr.bf16.mxu0 %v3657_v55 }
 0x32b   : > { %v1928_v14 = vadd.f32 %v3123_v23, %v4855_v3 }
 0x32c   : > { %v3125_v18 = vpop.f32.mrf.mxu1 }
 0x32d   : > { %2436 = vmatpush1.bf16.msra.mxu0 %v2249_v29  ;;  %3258 = vrot.lane.b32.xlu0 %v3257_v6, %s3658_s17  ;;  %v3126_v30 = vadd.f32 %v3125_v18, %v3124_v49  ;;  %v3576_v49 = vld [vmem:[%s3765_s25 + $0x50] sm:$0xff]  ;;  %v3577_v29 = vld [vmem:[%s3765_s25 + $0x80] sm:$0xff] }
 0x32e   : > { %2437 = vmatprep.subr.bf16.mxu0 %v3657_v55 }
 0x32f   : > { %v1931_v39 = vadd.f32 %v3126_v30, %v4855_v3 }
 0x331   : > { %2438 = vmatpush1.bf16.msra.mxu0 %v2248_v45  ;;  %3268 = vrot.lane.b32.xlu0 %v3267_v19, %s3658_s17  ;;  %v3579_v45 = vld [vmem:[%s3765_s25 + $0x48] sm:$0xff] }
 0x332   : > { %v3127_v1 = vpop.f32.mrf.mxu1  ;;  %2439 = vmatprep.subr.bf16.mxu0 %v3657_v55  ;;  %v2031_v19 = vadd.f32 %v3579_v45, %v1931_v39 }
 0x334   : > { %v3128_v57 = vpop.f32.mrf.mxu1 }
 0x335   : > { %2440 = vmatpush1.bf16.msra.mxu0 %v2247_v61  ;;  %v3129_v27 = vadd.f32 %v3128_v57, %v3127_v1 }
 0x336   : > { %v3130_v41 = vpop.f32.mrf.mxu1  ;;  %2441 = vmatprep.subr.bf16.mxu0 %v3657_v55 }
 0x337   : > { %v1936_v28 = vadd.f32 %v3129_v27, %v4855_v3 }
 0x338   : > { %v3131_v33 = vpop.f32.mrf.mxu1 }
 0x339   : > { %v3132_v51 = vadd.f32 %v3131_v33, %v3130_v41  ;;  %v2032_v20 = vadd.f32 %v3576_v49, %v1936_v28 }
 0x33b   : > { %v3133_v25 = vpop.f32.mrf.mxu1  ;;  %v1939_v37 = vadd.f32 %v3132_v51, %v4855_v3 }
 0x33d   : > { %v3134_v46 = vpop.f32.mrf.mxu1  ;;  %v2033_v2 = vadd.f32 %v3575_v15, %v1939_v37 }
 0x33e   : > { %v3135_v53 = vadd.f32 %v3134_v46, %v3133_v25  ;;  %v3580_v46 = vld [vmem:[%s3765_s25 + $0x40] sm:$0xff] }
 0x33f   : > { %v3136_v62 = vpop.f32.mrf.mxu1  ;;  %v2252_v61 = vpack.c.bf16 %v2033_v2, %v2032_v20  ;;  %v3262_v41 = vpack.i.bf16 %v2033_v2, %v2032_v20 }
 0x340   : > { %v1944_v13 = vadd.f32 %v3135_v53, %v4855_v3  ;;  %v3582_v53 = vld [vmem:[%s3765_s25 + $0x98] sm:$0xff] }
 0x341   : > { %v3137_v16 = vpop.f32.mrf.mxu1 }
 0x342   : > { %v3138_v59 = vadd.f32 %v3137_v16, %v3136_v62  ;;  %v2034_v7 = vadd.f32 %v3574_v10, %v1944_v13  ;;  %v2030_v62 = vadd.f32 %v3580_v46, %v1928_v14 }
 0x343   : > { %v3139_v38 = vpop.f32.mrf.mxu1 }
 0x344   : > { %v1947_v40 = vadd.f32 %v3138_v59, %v4855_v3  ;;  %v3581_v59 = vld [vmem:[%s3765_s25 + $0x90] sm:$0xff] }
 0x345   : > { %v3140_v26 = vpop.f32.mrf.mxu1 }
 0x346   : > { %v3141_v8 = vadd.f32 %v3140_v26, %v3139_v38  ;;  %v2035_v4 = vadd.f32 %v3573_v63, %v1947_v40  ;;  %v2251_v26 = vpack.c.bf16 %v2031_v19, %v2030_v62 }
 0x347   : > { %v3142_v44 = vpop.f32.mrf.mxu1 }
 0x348   : > { %v1952_v0 = vadd.f32 %v3141_v8, %v4855_v3  ;;  %v2253_v9 = vpack.c.bf16 %v2035_v4, %v2034_v7  ;;  %v3252_v47 = vpack.i.bf16 %v2035_v4, %v2034_v7 }
 0x349   : > { %v3143_v21 = vpop.f32.mrf.mxu1 }
 0x34a   : > { %v3144_v34 = vadd.f32 %v3143_v21, %v3142_v44  ;;  %v2036_v58 = vadd.f32 %v3571_v17, %v1952_v0  ;;  %v3272_v44 = vpack.i.bf16 %v2031_v19, %v2030_v62 }
 0x34b   : > { %v3145_v50 = vpop.f32.mrf.mxu1 }
 0x34c   : > { %v1955_v48 = vadd.f32 %v3144_v34, %v4855_v3 }
 0x34d   : > { %v3146_v35 = vpop.f32.mrf.mxu1 }
 0x34e   : > { %v2037_v32 = vadd.f32 %v3572_v24, %v1955_v48  ;;  %v3147_v36 = vadd.f32 %v3146_v35, %v3145_v50 }
 0x34f   : > { %v3148_v31 = vpop.f32.mrf.mxu1 }
 0x350   : > { %v2254_v56 = vpack.c.bf16 %v2037_v32, %v2036_v58  ;;  %v3247_v42 = vpack.i.bf16 %v2037_v32, %v2036_v58  ;;  %v1960_v52 = vadd.f32 %v3147_v36, %v4855_v3  ;;  %v3583_v36 = vld [vmem:[%s3765_s25 + $0xa0] sm:$0xff] }
 0x351   : > { %v3149_v54 = vpop.f32.mrf.mxu1 }
 0x352   : > { %v3150_v60 = vadd.f32 %v3149_v54, %v3148_v31  ;;  %3248 = vrot.lane.b32.xlu1 %v3247_v42, %s3658_s17  ;;  %2539 = vmatpush1.bf16.msra.mxu1 %v2254_v56  ;;  %v4903_v6 = vadd.f32 %v3577_v29, %v1960_v52  ;;  %v3584_v31 = vld [vmem:[%s3765_s25 + $0xa8] sm:$0xff] }
 0x353   : > { %v3151_v11 = vpop.f32.mrf.mxu1  ;;  %2540 = vmatprep.subr.bf16.mxu1 %v3657_v55 }
 0x354   : > { %v1963_v12 = vadd.f32 %v3150_v60, %v4855_v3 }
 0x355   : > { %v3152_v5 = vpop.f32.mrf.mxu1 }
 0x356   : > { %v4906_v43 = vadd.f32 %v3578_v22, %v1963_v12  ;;  %v3153_v18 = vadd.f32 %v3152_v5, %v3151_v11  ;;  %3253 = vrot.lane.b32.xlu1 %v3252_v47, %s3658_s17  ;;  %2541 = vmatpush1.bf16.msra.mxu1 %v2253_v9  ;;  %v3585_v11 = vld [vmem:[%s3765_s25 + $0xb0] sm:$0xff]  ;;  %v3586_v9 = vld [vmem:[%s3765_s25 + $0xb8] sm:$0xff] }
 0x357   : > { %v3154_v1 = vpop.f32.mrf.mxu1  ;;  %2542 = vmatprep.subr.bf16.mxu1 %v3657_v55 }
 0x358   : > { %v2255_v57 = vpack.c.bf16 %v4906_v43, %v4903_v6  ;;  %v3277_v33 = vpack.i.bf16 %v4906_v43, %v4903_v6  ;;  %v1968_v16 = vadd.f32 %v3153_v18, %v4855_v3  ;;  %v5402_v43 = vld [vmem:[%s5624_s7 + $0x30] ss:$8 sps:$4 sm:$0xff]  }
 0x359   : > { %v3155_v25 = vpop.f32.mrf.mxu1 }
 0x35a   : > { %v3156_v38 = vadd.f32 %v3155_v25, %v3154_v1  ;;  %3263 = vrot.lane.b32.xlu1 %v3262_v41, %s3658_s17  ;;  %2543 = vmatpush1.bf16.msra.mxu1 %v2252_v61  ;;  %v4922_v21 = vadd.f32 %v3581_v59, %v1968_v16 }
 0x35b   : > { %3278 = vrot.lane.b32.xlu0 %v3277_v33, %s3658_s17  ;;  %2544 = vmatprep.subr.bf16.mxu1 %v3657_v55 }
 0x35c   : > { %v1971_v8 = vadd.f32 %v3156_v38, %v4855_v3 }
 0x35e   : > { %v4925_v0 = vadd.f32 %v3582_v53, %v1971_v8  ;;  %3273 = vrot.lane.b32.xlu1 %v3272_v44, %s3658_s17  ;;  %2545 = vmatpush1.bf16.msra.mxu1 %v2251_v26 }
 0x35f   : > { %2546 = vmatprep.subr.bf16.mxu1 %v3657_v55 }
 0x360   : > { %v2256_v34 = vpack.c.bf16 %v4925_v0, %v4922_v21  ;;  %v3282_v50 = vpack.i.bf16 %v4925_v0, %v4922_v21  ;;  %v5381_v21 = vld [vmem:[%s5624_s7 + $0x34] ss:$8 sps:$4 sm:$0xff]  }
 0x362   : > { %3283 = vrot.lane.b32.xlu0 %v3282_v50, %s3658_s17 }
 0x38a   : > { %v3244_v10 = vpop.permute.xlu1 %3243 }
 0x38b   : > { %v4964_v14 = vunpack.i.h.bf16 %v3244_v10  ;;  %v4966_v49 = vunpack.i.l.bf16 %v3244_v10 }
 0x38c   : > { %v3157_v51 = vpop.f32.mrf.mxu1 }
 0x38d   : > { %v2960_v41 = vpack.c.bf16 %v4964_v14, %v4966_v49  ;;  %v2187_v8 = vsel %vm2182_vm0, 0.0, %v4966_v49  ;;  %v2188_v44 = vsel %vm2182_vm0, 0.0, %v4964_v14 }
 0x38e   : > { %v3158_v40 = vpop.f32.mrf.mxu1 }
 0x38f   : > { %v3159_v48 = vadd.f32 %v3158_v40, %v3157_v51  ;;  %v2265_v40 = vpack.c.bf16 %v2188_v44, %v2187_v8  ;;  %v3592_v8 = vld [vmem:[%s3765_s25 + $0xe8] sm:$0xff] }
 0x390   : > { %v3160_v27 = vpop.f32.mrf.mxu1 }
 0x391   : > { %v1976_v13 = vadd.f32 %v3159_v48, %v4855_v3  ;;  %v3587_v48 = vld [vmem:[%s3765_s25 + $0xc0] sm:$0xff] }
 0x392   : > { %v3161_v35 = vpop.f32.mrf.mxu1 }
 0x393   : > { %v3162_v17 = vadd.f32 %v3161_v35, %v3160_v27  ;;  %v4937_v30 = vadd.f32 %v3583_v36, %v1976_v13  ;;  %v3588_v35 = vld [vmem:[%s3765_s25 + $0xc8] sm:$0xff] }
 0x394   : > { %v3163_v58 = vpop.f32.mrf.mxu1 }
 0x395   : > { %v1979_v24 = vadd.f32 %v3162_v17, %v4855_v3 }
 0x396   : > { %v3164_v32 = vpop.f32.mrf.mxu1 }
 0x397   : > { %v4940_v37 = vadd.f32 %v3584_v31, %v1979_v24  ;;  %v3165_v63 = vadd.f32 %v3164_v32, %v3163_v58 }
 0x398   : > { %v3166_v4 = vpop.f32.mrf.mxu1 }
 0x399   : > { %v2257_v56 = vpack.c.bf16 %v4940_v37, %v4937_v30  ;;  %v3287_v42 = vpack.i.bf16 %v4940_v37, %v4937_v30  ;;  %v1984_v28 = vadd.f32 %v3165_v63, %v4855_v3  ;;  %v5346_v30 = vld [vmem:[%s5624_s7 + $0x24] ss:$8 sps:$4 sm:$0xff]   ;;  %v2310_v37 = vld [vmem:[%s5625_s8 + $0x38] sm:$0xff] }
 0x39a   : > { %v3167_v23 = vpop.f32.mrf.mxu1 }
 0x39b   : > { %v3168_v54 = vadd.f32 %v3167_v23, %v3166_v4  ;;  %3288 = vrot.lane.b32.xlu0 %v3287_v42, %s3658_s17  ;;  %v3239_v7 = vpop.permute.xlu0 %3238  ;;  %v4955_v15 = vadd.f32 %v3585_v11, %v1984_v28 }
 0x39c   : > { %v4950_v60 = vunpack.i.h.bf16 %v3239_v7  ;;  %v4952_v39 = vunpack.i.l.bf16 %v3239_v7 }
 0x39d   : > { %v1987_v52 = vadd.f32 %v3168_v54, %v4855_v3  ;;  %v3169_v47 = vpop.f32.mrf.mxu1 }
 0x39e   : > { %v2955_v20 = vpack.c.bf16 %v4950_v60, %v4952_v39  ;;  %v2189_v17 = vsel %vm2182_vm0, 0.0, %v4952_v39  ;;  %v2190_v58 = vsel %vm2182_vm0, 0.0, %v4950_v60 }
 0x39f   : > { %v4962_v12 = vadd.f32 %v3586_v9, %v1987_v52  ;;  %v3259_v5 = vpop.permute.xlu0 %3258  ;;  %v3170_v22 = vpop.f32.mrf.mxu1  ;;  %v2266_v63 = vpack.c.bf16 %v2190_v58, %v2189_v17  ;;  %v3589_v9 = vld [vmem:[%s3765_s25 + $0xd0] sm:$0xff] }
 0x3a0   : > { %v4974_v45 = vunpack.i.h.bf16 %v3259_v5  ;;  %v4976_v19 = vunpack.i.l.bf16 %v3259_v5  ;;  %2956 = vmatpush1.bf16.msk.msra.mxu0 %vm4957_vm2, %v2955_v20  ;;  %v3171_v1 = vadd.f32 %v3170_v22, %v3169_v47  ;;  %v3590_v20 = vld [vmem:[%s3765_s25 + $0xd8] sm:$0xff] }
 0x3a1   : > { %v2258_v29 = vpack.c.bf16 %v4962_v12, %v4955_v15  ;;  %v3292_v18 = vpack.i.bf16 %v4962_v12, %v4955_v15  ;;  %2443 = vmatprep.subr.bf16.mxu0 %v3657_v55  ;;  %v3172_v61 = vpop.f32.mrf.mxu1  ;;  %v2308_v15 = vld [vmem:[%s5625_s8 + $0x28] sm:$0xff]  ;;  %v2309_v12 = vld [vmem:[%s5625_s8 + $0x30] sm:$0xff] }
 0x3a2   : > { %v2185_v33 = vsel %vm2182_vm0, 0.0, %v4976_v19  ;;  %v2186_v25 = vsel %vm2182_vm0, 0.0, %v4974_v45  ;;  %v1992_v38 = vadd.f32 %v3171_v1, %v4855_v3  ;;  %v2965_v59 = vpack.c.bf16 %v4974_v45, %v4976_v19 }
 0x3a3   : > { %3293 = vrot.lane.b32.xlu0 %v3292_v18, %s3658_s17  ;;  %v3269_v46 = vpop.permute.xlu0 %3268  ;;  %v3173_v62 = vpop.f32.mrf.mxu1  ;;  %v2264_v16 = vpack.c.bf16 %v2186_v25, %v2185_v33 }
 0x3a4   : > { %2961 = vmatpush1.bf16.msk.msra.mxu0 %vm4957_vm2, %v2960_v41  ;;  %v3174_v26 = vadd.f32 %v3173_v62, %v3172_v61  ;;  %v4999_v53 = vunpack.i.h.bf16 %v3269_v46  ;;  %v5001_v50 = vunpack.i.l.bf16 %v3269_v46  ;;  %v5005_v27 = vadd.f32 %v3587_v48, %v1992_v38  ;;  %v3591_v38 = vld [vmem:[%s3765_s25 + $0xe0] sm:$0xff] }
 0x3a5   : > { %2445 = vmatprep.subr.bf16.mxu0 %v3657_v55 }
 0x3a6   : > { %v1995_v51 = vadd.f32 %v3174_v26, %v4855_v3  ;;  %v2970_v24 = vpack.c.bf16 %v4999_v53, %v5001_v50 }
 0x3a7   : > { %2323 = vrot.lane.b32.xlu0 %v2264_v16, %s3659_s21 }
 0x3a8   : > { %2966 = vmatpush1.bf16.msk.msra.mxu0 %vm4957_vm2, %v2965_v59  ;;  %v5010_v13 = vadd.f32 %v3588_v35, %v1995_v51 }
 0x3a9   : > { %2447 = vmatprep.subr.bf16.mxu0 %v3657_v55 }
 0x3aa   : > { %v2259_v32 = vpack.c.bf16 %v5010_v13, %v5005_v27  ;;  %v3297_v36 = vpack.i.bf16 %v5010_v13, %v5005_v27 }
 0x3ab   : > { %2327 = vrot.lane.b32.xlu0 %v2265_v40, %s3659_s21  ;;  %v3175_v31 = vpop.f32.mrf.mxu1 }
 0x3ac   : > { %2971 = vmatpush1.bf16.msk.msra.mxu0 %vm4957_vm2, %v2970_v24  ;;  %3298 = vrot.lane.b32.xlu1 %v3297_v36, %s3658_s17 }
 0x3ad   : > { %v3176_v4 = vpop.f32.mrf.mxu1  ;;  %2457 = vmatprep.subr.bf16.mxu0 %v3657_v55 }
 0x3ae   : > { %v3177_v42 = vadd.f32 %v3176_v4, %v3175_v31  ;;  %v3593_v4 = vld [vmem:[%s3765_s25 + $0xf0] sm:$0xff] }
 0x3af   : > { %2331 = vrot.lane.b32.xlu0 %v2266_v63, %s3659_s21  ;;  %v3178_v23 = vpop.f32.mrf.mxu1 }
 0x3b0   : > { %v2000_v54 = vadd.f32 %v3177_v42, %v4855_v3 }
 0x3b1   : > { %v3179_v28 = vpop.f32.mrf.mxu1 }
 0x3b2   : > { %v3180_v10 = vadd.f32 %v3179_v28, %v3178_v23  ;;  %v5032_v47 = vadd.f32 %v3589_v9, %v2000_v54  ;;  %v3594_v23 = vld [vmem:[%s3765_s25 + $0xf8] sm:$0xff]  ;;  %v2217_v9 = vsel %vm2182_vm0, %v4976_v19, 0.0  ;;  %v2220_v19 = vsel %vm2182_vm0, %v4964_v14, 0.0 }
 0x3b3   : > { %v3181_v7 = vpop.f32.mrf.mxu1 }
 0x3b4   : > { %v2003_v52 = vadd.f32 %v3180_v10, %v4855_v3 }
 0x3b5   : > { %v3182_v11 = vpop.f32.mrf.mxu1 }
 0x3b6   : > { %v5035_v5 = vadd.f32 %v3590_v20, %v2003_v52  ;;  %v3183_v22 = vadd.f32 %v3182_v11, %v3181_v7  ;;  %v2218_v20 = vsel %vm2182_vm0, %v4974_v45, 0.0 }
 0x3b7   : > { %v3184_v18 = vpop.f32.mrf.mxu1 }
 0x3b8   : > { %v2260_v1 = vpack.c.bf16 %v5035_v5, %v5032_v47  ;;  %v3302_v61 = vpack.i.bf16 %v5035_v5, %v5032_v47  ;;  %v2008_v33 = vadd.f32 %v3183_v22, %v4855_v3 }
 0x3b9   : > { %v3185_v41 = vpop.f32.mrf.mxu1 }
 0x3ba   : > { %v3186_v25 = vadd.f32 %v3185_v41, %v3184_v18  ;;  %3303 = vrot.lane.b32.xlu1 %v3302_v61, %s3658_s17  ;;  %v5045_v26 = vadd.f32 %v3591_v38, %v2008_v33 }
 0x3bb   : > { %v3187_v46 = vpop.f32.mrf.mxu1 }
 0x3bc   : > { %v2011_v62 = vadd.f32 %v3186_v25, %v4855_v3  ;;  %v2280_v25 = vpack.c.bf16 %v2218_v20, %v2217_v9  ;;  %v2183_v9 = vsel %vm2182_vm0, 0.0, %v5001_v50 }
 0x3bd   : > { %v3188_v16 = vpop.f32.mrf.mxu1 }
 0x3be   : > { %v5048_v44 = vadd.f32 %v3592_v8, %v2011_v62  ;;  %v3189_v59 = vadd.f32 %v3188_v16, %v3187_v46  ;;  %v2219_v46 = vsel %vm2182_vm0, %v4966_v49, 0.0 }
 0x3bf   : > { %v3190_v51 = vpop.f32.mrf.mxu1 }
 0x3c0   : > { %v2261_v40 = vpack.c.bf16 %v5048_v44, %v5045_v26  ;;  %v3307_v48 = vpack.i.bf16 %v5048_v44, %v5045_v26  ;;  %v2016_v17 = vadd.f32 %v3189_v59, %v4855_v3 }
 0x3c1   : > { %v3191_v35 = vpop.f32.mrf.mxu1 }
 0x3c2   : > { %v3192_v58 = vadd.f32 %v3191_v35, %v3190_v51  ;;  %3308 = vrot.lane.b32.xlu1 %v3307_v48, %s3658_s17  ;;  %v5062_v42 = vadd.f32 %v3593_v4, %v2016_v17  ;;  %v2281_v51 = vpack.c.bf16 %v2220_v19, %v2219_v46  ;;  %v2221_v48 = vsel %vm2182_vm0, %v4952_v39, 0.0 }
 0x3c4   : > { %v3249_v24 = vpop.permute.xlu1 %3248  ;;  %v2019_v36 = vadd.f32 %v3192_v58, %v4855_v3 }
 0x3c5   : > { %v5057_v31 = vunpack.i.h.bf16 %v3249_v24  ;;  %v5059_v63 = vunpack.i.l.bf16 %v3249_v24  ;;  %v2222_v24 = vsel %vm2182_vm0, %v4950_v60, 0.0  ;;  %v2184_v60 = vsel %vm2182_vm0, 0.0, %v4999_v53 }
 0x3c6   : > { %v5065_v28 = vadd.f32 %v3594_v23, %v2019_v36 }
 0x3c7   : > { %v2979_v54 = vpack.c.bf16 %v5057_v31, %v5059_v63  ;;  %v2197_v16 = vsel %vm2182_vm0, 0.0, %v5059_v63  ;;  %v2198_v38 = vsel %vm2182_vm0, 0.0, %v5057_v31 }
 0x3c8   : > { %v3254_v10 = vpop.permute.xlu1 %3253  ;;  %v2262_v7 = vpack.c.bf16 %v5065_v28, %v5062_v42  ;;  %v3312_v3 = vpack.i.bf16 %v5065_v28, %v5062_v42  ;;  %v2270_v59 = vpack.c.bf16 %v2198_v38, %v2197_v16 }
 0x3c9   : > { %v3256_v52 = vunpack.i.h.bf16 %v3254_v10  ;;  %v3255_v11 = vunpack.i.l.bf16 %v3254_v10  ;;  %2980 = vmatpush1.bf16.msk.msra.mxu1 %vm4957_vm2, %v2979_v54  ;;  %v2282_v54 = vpack.c.bf16 %v2222_v24, %v2221_v48 }
 0x3ca   : > { %2548 = vmatprep.subr.bf16.mxu1 %v3657_v55  ;;  %3313 = vrot.lane.b32.xlu1 %v3312_v3, %s3658_s17  ;;  %s5489_s17 = scalar_lea.vmem [#allocation2], %s2905_s16 }
 0x3cb   : > { %v2984_v22 = vpack.c.bf16 %v3256_v52, %v3255_v11  ;;  %v2195_v18 = vsel %vm2182_vm0, 0.0, %v3255_v11  ;;  %v2196_v61 = vsel %vm2182_vm0, 0.0, %v3256_v52  ;;  %v2227_v20 = vsel %vm2182_vm0, %v3255_v11, 0.0  ;;  %s2839_s25 = sshll.u32 %s5489_s17, 4  ;;  %s5571_s25 = int_to_ptr.vmem [resolvable:$true] %s2839_s25 }
 0x3cc   : > { %v3264_v41 = vpop.permute.xlu1 %3263  ;;  %v2269_v33 = vpack.c.bf16 %v2196_v61, %v2195_v18  ;;  %v2263_v61 = vpack.c.bf16 %v2184_v60, %v2183_v9  ;;  %v2229_v11 = vsel %vm2182_vm0, %v5059_v63, 0.0  ;;  %s3595_s26 = scalar_lea.vmem %s5571_s25, 4096  ;;  %p3602_p0 = scmp.lt.s32.totalorder %s5571_s25, %s3600_s28 }
 0x3cd   : > { %v3266_v62 = vunpack.i.h.bf16 %v3264_v41  ;;  %v3265_v45 = vunpack.i.l.bf16 %v3264_v41  ;;  %2985 = vmatpush1.bf16.msk.msra.mxu1 %vm4957_vm2, %v2984_v22  ;;  %v5096_v49 = vpop.permute.xlu0 %3278  ;;  %v2228_v22 = vsel %vm2182_vm0, %v3256_v52, 0.0  ;;  %v2230_v52 = vsel %vm2182_vm0, %v5057_v31, 0.0  ;;  %v5144_v31 = vld [vmem:[%s5624_s7 + $0x4] ss:$8 sps:$4 sm:$0xff]   ;;  %p3596_p11 = scmp.ne.s32.totalorder %s5571_s25, %s3595_s26  ;;  %p3603_p1 = scmp.lt.s32.totalorder %s3601_s29, %s3595_s26 }
 0x3ce   : > { %2522 = vrot.lane.b32.xlu0 %v2269_v33, %s3659_s21  ;;  %2550 = vmatprep.subr.bf16.mxu1 %v3657_v55  ;;  %v2286_v38 = vpack.c.bf16 %v2230_v52, %v2229_v11 }
 0x3cf   : > { %v2989_v8 = vpack.c.bf16 %v3266_v62, %v3265_v45  ;;  %2325 = vrot.lane.b32.xlu1 %v2280_v25, %s3659_s21  ;;  %v2193_v17 = vsel %vm2182_vm0, 0.0, %v3265_v45  ;;  %v2194_v58 = vsel %vm2182_vm0, 0.0, %v3266_v62  ;;  %v2285_v25 = vpack.c.bf16 %v2228_v22, %v2227_v20  ;;  %2972 = vmatprep.mubr.msk.bf16.mxu0 %vm2420_vm3, %v5144_v31  ;;  %p3597_p12 = pnand %p3596_p11, %p3751_p5  ;;  %p3604_p2 = por %p3603_p1, %p3602_p0 }
 0x3d0   : > { %v3274_v14 = vpop.permute.xlu1 %3273  ;;  %v2268_v23 = vpack.c.bf16 %v2194_v58, %v2193_v17  ;;  %2996 = vmatprep.mubr.msk.bf16.mxu1 %vm2420_vm3, %v5144_v31 }
 0x3d1   : > { %v3276_v35 = vunpack.i.h.bf16 %v3274_v14  ;;  %2990 = vmatpush1.bf16.msk.msra.mxu1 %vm4957_vm2, %v2989_v8  ;;  %v3275_v36 = vunpack.i.l.bf16 %v3274_v14  ;;  %v2225_v8 = vsel %vm2182_vm0, %v3265_v45, 0.0  ;;  %v2226_v14 = vsel %vm2182_vm0, %v3266_v62, 0.0  ;;  %p3598_p13 = pneg %p3597_p12 }
 0x3d2   : > { %2526 = vrot.lane.b32.xlu0 %v2270_v59, %s3659_s21  ;;  %2552 = vmatprep.subr.bf16.mxu1 %v3657_v55  ;;  %v2284_v59 = vpack.c.bf16 %v2226_v14, %v2225_v8  ;;  %v2215_v62 = vsel %vm2182_vm0, %v5001_v50, 0.0  ;;  %v2216_v45 = vsel %vm2182_vm0, %v4999_v53, 0.0 }
 0x3d3   : > { %2329 = vrot.lane.b32.xlu1 %v2281_v51, %s3659_s21  ;;  %v2994_v4 = vpack.c.bf16 %v3276_v35, %v3275_v36  ;;  %v2191_v41 = vsel %vm2182_vm0, 0.0, %v3275_v36  ;;  %v2192_v33 = vsel %vm2182_vm0, 0.0, %v3276_v35  ;;  %v2279_v51 = vpack.c.bf16 %v2216_v45, %v2215_v62  ;;  %p3605_p3 = pnand %p3604_p2, %p3598_p13 }
 0x3d4   : > { %v3284_v39 = vpop.permute.xlu0 %3283  ;;  %v2267_v46 = vpack.c.bf16 %v2192_v33, %v2191_v41  ;;  %v2223_v48 = vsel %vm2182_vm0, %v3275_v36, 0.0  ;;  %v2224_v17 = vsel %vm2182_vm0, %v3276_v35, 0.0 }
 0x3d5   : > { %v5109_v10 = vunpack.i.h.bf16 %v3284_v39  ;;  %v5111_v3 = vunpack.i.l.bf16 %v3284_v39  ;;  %2995 = vmatpush1.bf16.msk.msra.mxu1 %vm4957_vm2, %v2994_v4  ;;  %v2283_v58 = vpack.c.bf16 %v2224_v17, %v2223_v48 }
 0x3d6   : > { %2518 = vrot.lane.b32.xlu0 %v2268_v23, %s3659_s21  ;;  %2562 = vmatprep.subr.bf16.mxu1 %v3657_v55 }
 0x3d7   : > { %2333 = vrot.lane.b32.xlu1 %v2282_v54, %s3659_s21  ;;  %v2201_v19 = vsel %vm2182_vm0, 0.0, %v5111_v3  ;;  %v2202_v16 = vsel %vm2182_vm0, 0.0, %v5109_v10  ;;  %v2234_v24 = vsel %vm2182_vm0, %v5109_v10, 0.0  ;;  %v2233_v4 = vsel %vm2182_vm0, %v5111_v3, 0.0 }
 0x3d8   : > { %v2272_v63 = vpack.c.bf16 %v2202_v16, %v2201_v19  ;;  %v2288_v50 = vpack.c.bf16 %v2234_v24, %v2233_v4  ;;  %v5631_v0 = vpack.c.bf16 %v5109_v10, %v5111_v3 }
 0x3da   : > { %2319 = vrot.lane.b32.xlu0 %v2263_v61, %s3659_s21 }
 0x3db   : > { %2524 = vrot.lane.b32.xlu1 %v2285_v25, %s3659_s21 }
 0x3de   : > { %2514 = vrot.lane.b32.xlu0 %v2267_v46, %s3659_s21 }
 0x3df   : > { %2528 = vrot.lane.b32.xlu1 %v2286_v38, %s3659_s21 }
 0x3e2   : > { %2624 = vrot.lane.b32.xlu0 %v2272_v63, %s3659_s21 }
 0x3e3   : > { %2520 = vrot.lane.b32.xlu1 %v2284_v59, %s3659_s21 }
 0x3e7   : > { %2321 = vrot.lane.b32.xlu1 %v2279_v51, %s3659_s21 }
 0x3eb   : > { %2516 = vrot.lane.b32.xlu1 %v2283_v58, %s3659_s21 }
 0x3ef   : > { %2626 = vrot.lane.b32.xlu1 %v2288_v50, %s3659_s21 }
 0x40d   : > { %v3289_v53 = vpop.permute.xlu0 %3288 }
 0x40e   : > { %v5166_v39 = vunpack.i.h.bf16 %v3289_v53  ;;  %v5168_v36 = vunpack.i.l.bf16 %v3289_v53 }
 0x410   : > { %v2236_v35 = vsel %vm2182_vm0, %v5166_v39, 0.0  ;;  %v2235_v23 = vsel %vm2182_vm0, %v5168_v36, 0.0  ;;  %v3016_v54 = vpack.c.bf16 %v5166_v39, %v5168_v36  ;;  %v2203_v9 = vsel %vm2182_vm0, 0.0, %v5168_v36 }
 0x411   : > { %v2289_v60 = vpack.c.bf16 %v2236_v35, %v2235_v23  ;;  %v2204_v20 = vsel %vm2182_vm0, 0.0, %v5166_v39 }
 0x412   : > { %v2273_v22 = vpack.c.bf16 %v2204_v20, %v2203_v9 }
 0x413   : > { %2630 = vrot.lane.b32.xlu1 %v2289_v60, %s3659_s21 }
 0x414   : > { %2628 = vrot.lane.b32.xlu0 %v2273_v22, %s3659_s21 }
 0x415   : > { %v3294_v61 = vpop.permute.xlu0 %3293 }
 0x416   : > { %v5182_v41 = vunpack.i.h.bf16 %v3294_v61  ;;  %v5184_v33 = vunpack.i.l.bf16 %v3294_v61 }
 0x418   : > { %v2206_v25 = vsel %vm2182_vm0, 0.0, %v5182_v41  ;;  %v2238_v11 = vsel %vm2182_vm0, %v5182_v41, 0.0  ;;  %v2205_v52 = vsel %vm2182_vm0, 0.0, %v5184_v33  ;;  %v2237_v46 = vsel %vm2182_vm0, %v5184_v33, 0.0 }
 0x419   : > { %v2274_v19 = vpack.c.bf16 %v2206_v25, %v2205_v52  ;;  %v2290_v16 = vpack.c.bf16 %v2238_v11, %v2237_v46  ;;  %v3011_v38 = vpack.c.bf16 %v5182_v41, %v5184_v33  ;;  %v5198_v59 = vpop.permute.xlu0 %2323  ;;  %v5231_v11 = vunpack.i.h.bf16 %v5096_v49 }
 0x41a   : > { %v5234_v52 = vunpack.i.l.bf16 %v5096_v49 }
 0x41b   : > { %2634 = vrot.lane.b32.xlu1 %v2290_v16, %s3659_s21  ;;  %2632 = vrot.lane.b32.xlu0 %v2274_v19, %s3659_s21  ;;  %v2200_v49 = vsel %vm2182_vm0, 0.0, %v5231_v11 }
 0x41d   : > { %v2328_v50 = vpop.permute.xlu0 %2327 }
 0x41e   : > { %v3299_v8 = vpop.permute.xlu1 %3298 }
 0x421   : > { %v2332_v16 = vpop.permute.xlu0 %2331 }
 0x42c   : > { %v3304_v14 = vpop.permute.xlu1 %3303 }
 0x42d   : > { %v5214_v35 = vunpack.i.h.bf16 %v3304_v14  ;;  %v5216_v23 = vunpack.i.l.bf16 %v3304_v14 }
 0x42f   : > { %v2210_v14 = vsel %vm2182_vm0, 0.0, %v5214_v35 }
 0x434   : > { %v3309_v63 = vpop.permute.xlu1 %3308 }
 0x435   : > { %v5200_v62 = vunpack.i.h.bf16 %v3309_v63  ;;  %v5202_v45 = vunpack.i.l.bf16 %v3309_v63  ;;  %v2242_v63 = vsel %vm2182_vm0, %v5214_v35, 0.0 }
 0x437   : > { %v2212_v51 = vsel %vm2182_vm0, 0.0, %v5200_v62  ;;  %v2244_v48 = vsel %vm2182_vm0, %v5200_v62, 0.0  ;;  %v2211_v17 = vsel %vm2182_vm0, 0.0, %v5202_v45  ;;  %v2243_v58 = vsel %vm2182_vm0, %v5202_v45, 0.0 }
 0x438   : > { %v2277_v24 = vpack.c.bf16 %v2212_v51, %v2211_v17  ;;  %v2293_v4 = vpack.c.bf16 %v2244_v48, %v2243_v58  ;;  %v2209_v51 = vsel %vm2182_vm0, 0.0, %v5216_v23  ;;  %v2241_v48 = vsel %vm2182_vm0, %v5216_v23, 0.0 }
 0x439   : > { %v2232_v58 = vsel %vm2182_vm0, %v5231_v11, 0.0 }
 0x43a   : > { %2736 = vrot.lane.b32.xlu1 %v2293_v4, %s3659_s21  ;;  %2734 = vrot.lane.b32.xlu0 %v2277_v24, %s3659_s21  ;;  %v2276_v24 = vpack.c.bf16 %v2210_v14, %v2209_v51  ;;  %v2292_v4 = vpack.c.bf16 %v2242_v63, %v2241_v48 }
 0x43c   : > { %v3314_v53 = vpop.permute.xlu1 %3313 }
 0x43d   : > { %v5218_v9 = vunpack.i.h.bf16 %v3314_v53  ;;  %v5220_v60 = vunpack.i.l.bf16 %v3314_v53  ;;  %v2199_v53 = vsel %vm2182_vm0, 0.0, %v5234_v52 }
 0x43f   : > { %v2214_v20 = vsel %vm2182_vm0, 0.0, %v5218_v9  ;;  %v2246_v22 = vsel %vm2182_vm0, %v5218_v9, 0.0  ;;  %v2213_v61 = vsel %vm2182_vm0, 0.0, %v5220_v60  ;;  %v2245_v25 = vsel %vm2182_vm0, %v5220_v60, 0.0 }
 0x440   : > { %v2278_v46 = vpack.c.bf16 %v2214_v20, %v2213_v61  ;;  %v2294_v19 = vpack.c.bf16 %v2246_v22, %v2245_v25  ;;  %v2231_v20 = vsel %vm2182_vm0, %v5234_v52, 0.0  ;;  %v5254_v22 = vunpack.i.h.bf16 %v3299_v8  ;;  %v2523_v25 = vpop.permute.xlu0 %2522 }
 0x441   : > { %v2326_v17 = vpop.permute.xlu1 %2325  ;;  %v5256_v61 = vunpack.i.l.bf16 %v3299_v8  ;;  %v2287_v18 = vpack.c.bf16 %v2232_v58, %v2231_v20  ;;  %v3043_v6 = vpack.c.bf16 %v5218_v9, %v5220_v60 }
 0x442   : > { %2740 = vrot.lane.b32.xlu1 %v2294_v19, %s3659_s21  ;;  %2738 = vrot.lane.b32.xlu0 %v2278_v46, %s3659_s21  ;;  %v2271_v19 = vpack.c.bf16 %v2200_v49, %v2199_v53  ;;  %v2208_v14 = vsel %vm2182_vm0, 0.0, %v5254_v22  ;;  %v2240_v63 = vsel %vm2182_vm0, %v5254_v22, 0.0 }
 0x443   : > { %v2207_v51 = vsel %vm2182_vm0, 0.0, %v5256_v61  ;;  %v2239_v8 = vsel %vm2182_vm0, %v5256_v61, 0.0  ;;  %v3058_v27 = vpack.c.bf16 %v5254_v22, %v5256_v61 }
 0x444   : > { %v2527_v49 = vpop.permute.xlu0 %2526  ;;  %v2275_v58 = vpack.c.bf16 %v2208_v14, %v2207_v51 }
 0x445   : > { %v2330_v46 = vpop.permute.xlu1 %2329 }
 0x446   : > { %2732 = vrot.lane.b32.xlu1 %v2292_v4, %s3659_s21  ;;  %2730 = vrot.lane.b32.xlu0 %v2276_v24, %s3659_s21  ;;  %v2291_v24 = vpack.c.bf16 %v2240_v63, %v2239_v8  ;;  %v2338_v20 = vsel %vm2335_vm4, %v2328_v50, %v2330_v46 }
 0x449   : > { %v2334_v48 = vpop.permute.xlu1 %2333 }
 0x44a   : > { %v2339_v4 = vsel %vm2335_vm4, %v2332_v16, %v2334_v48  ;;  %2622 = vrot.lane.b32.xlu1 %v2287_v18, %s3659_s21  ;;  %2620 = vrot.lane.b32.xlu0 %v2271_v19, %s3659_s21  ;;  %v2519_v16 = vpop.permute.xlu0 %2518  ;;  %v2337_v19 = vsel %vm2335_vm4, %v5198_v59, %v2326_v17  ;;  %v2304_v59 = vld [vmem:[%s5625_s8 + $0x8] sm:$0xff]  ;;  %v2303_v17 = vld [vmem:[%s5625_s8] sm:$0xff] }
 0x44b   : > { %2458 = vmatpush2.bf16.msra.mxu0 %v2339_v4 }
 0x44c   : > { %2459 = vmatprep.subr.bf16.mxu0 %v3657_v55 }
 0x44d   : > { %v2525_v53 = vpop.permute.xlu1 %2524 }
 0x44e   : > { %2728 = vrot.lane.b32.xlu1 %v2291_v24, %s3659_s21  ;;  %2726 = vrot.lane.b32.xlu0 %v2275_v58, %s3659_s21  ;;  %v2532_v46 = vsel %vm2335_vm4, %v2523_v25, %v2525_v53  ;;  %v2320_v63 = vpop.permute.xlu0 %2319  ;;  %v5294_v25 = vld [vmem:[%s5624_s7] ss:$8 sps:$4 sm:$0xff]   ;;  %v5301_v58 = vld [vmem:[%s5624_s7 + $0x14] ss:$8 sps:$4 sm:$0xff]   ;;  %s3080_s21 = sshll.u32 %s3734_s13, 12  ;;  %s5577_s13 = scalar_lea.sflag [#allocation3], %s326_s14 }
 0x44f   : > { %2460 = vmatpush2.bf16.msra.mxu0 %v2338_v20  ;;  %v2305_v24 = vld [vmem:[%s5625_s8 + $0x10] sm:$0xff]  ;;  %v2306_v20 = vld [vmem:[%s5625_s8 + $0x18] sm:$0xff]  ;;  %s5569_s24 = scalar_lea.hbm %s5626_s9, %s3080_s21 }
 0x450   : > { %2461 = vmatprep.subr.bf16.mxu0 %v3657_v55 }
 0x451   : > { %v2529_v18 = vpop.permute.xlu1 %2528 }
 0x452   : > { %v2533_v14 = vsel %vm2335_vm4, %v2527_v49, %v2529_v18  ;;  %2351 = vperm.xlu1 %3318, %v2304_v59   ;;  %2346 = vperm.xlu0 %3317, %v2303_v17   ;;  %v2515_v4 = vpop.permute.xlu0 %2514  ;;  %v5325_v18 = vld [vmem:[%s5624_s7 + $0x10] ss:$8 sps:$4 sm:$0xff]  }
 0x453   : > { %2462 = vmatpush2.bf16.msra.mxu0 %v2337_v19  ;;  %2563 = vmatpush2.bf16.msra.mxu1 %v2533_v14 }
 0x454   : > { %2564 = vmatprep.subr.bf16.mxu1 %v3657_v55  ;;  %2463 = vmatprep.subr.bf16.mxu0 %v3657_v55 }
 0x455   : > { %v2521_v50 = vpop.permute.xlu1 %2520 }
 0x456   : > { %v2531_v8 = vsel %vm2335_vm4, %v2519_v16, %v2521_v50  ;;  %2356 = vperm.xlu1 %3318, %v2305_v24   ;;  %v2307_v16 = vld [vmem:[%s5625_s8 + $0x20] sm:$0xff]  ;;  %2361 = vperm.xlu0 %3317, %v2306_v20   ;;  %v2625_v13 = vpop.permute.xlu0 %2624 }
 0x457   : > { %2565 = vmatpush2.bf16.msra.mxu1 %v2532_v46 }
 0x458   : > { %2566 = vmatprep.subr.bf16.mxu1 %v3657_v55 }
 0x459   : > { %v2322_v51 = vpop.permute.xlu1 %2321 }
 0x45a   : > { %v2336_v48 = vsel %vm2335_vm4, %v2320_v63, %v2322_v51  ;;  %2366 = vperm.xlu1 %3318, %v2307_v16   ;;  %2371 = vperm.xlu0 %3317, %v2308_v15  }
 0x45b   : > { %2464 = vmatpush2.bf16.msra.mxu0 %v2336_v48  ;;  %2567 = vmatpush2.bf16.msra.mxu1 %v2531_v8 }
 0x45c   : > { %2568 = vmatprep.subr.bf16.mxu1 %v3657_v55  ;;  %2644 = vmatprep.subr.bf16.mxu0 %v3657_v55 }
 0x45d   : > { %v2517_v49 = vpop.permute.xlu1 %2516 }
 0x45e   : > { %v2530_v53 = vsel %vm2335_vm4, %v2515_v4, %v2517_v49  ;;  %2466 = vmatmul.mubr.bf16.vlgmr.msra.gmra.mxu0 %v5294_v25  ;;  %2376 = vperm.xlu1 %3318, %v2309_v12  }
 0x45f   : > { %2569 = vmatpush2.bf16.msra.mxu1 %v2530_v53  ;;  %2645 = vmatpush1.bf16.msra.mxu0 %v2258_v29  ;;  %v3053_v29 = vpack.c.bf16 %v5214_v35, %v5216_v23 }
 0x460   : > { %2646 = vmatprep.subr.bf16.mxu0 %v3657_v55  ;;  %2750 = vmatprep.subr.bf16.mxu1 %v3657_v55 }
 0x461   : > { %2973 = vmatprep.mubr.msk.bf16.mxu0 %vm2420_vm3, %v5301_v58  ;;  %2381 = vperm.xlu0 %3317, %v2310_v37  }
 0x462   : > { %2571 = vmatmul.mubr.bf16.vlgmr.msra.gmra.mxu1 %v5294_v25 }
 0x463   : > { %2647 = vmatpush1.bf16.msra.mxu0 %v2257_v56  ;;  %2751 = vmatpush1.bf16.msra.mxu1 %v2262_v7  ;;  %v5366_v56 = vld [vmem:[%s5624_s7 + $0x20] ss:$8 sps:$4 sm:$0xff]  }
 0x464   : > { %2648 = vmatprep.subr.bf16.mxu0 %v3657_v55  ;;  %2752 = vmatprep.subr.bf16.mxu1 %v3657_v55 }
 0x465   : > { %2997 = vmatprep.mubr.msk.bf16.mxu1 %vm2420_vm3, %v5301_v58 }
 0x466   : > { %2474 = vmatmul.mubr.bf16.gmra.mxu0 %v5325_v18 }
 0x467   : > { %2649 = vmatpush1.bf16.msra.mxu0 %v2256_v34  ;;  %2753 = vmatpush1.bf16.msra.mxu1 %v2261_v40  ;;  %v3026_v34 = vpack.c.bf16 %v5231_v11, %v5234_v52 }
 0x468   : > { %2650 = vmatprep.subr.bf16.mxu0 %v3657_v55  ;;  %2754 = vmatprep.subr.bf16.mxu1 %v3657_v55 }
 0x469   : > { %2974 = vmatprep.mubr.msk.bf16.mxu0 %vm2420_vm3, %v5346_v30 }
 0x46a   : > { %2579 = vmatmul.mubr.bf16.gmra.mxu1 %v5325_v18 }
 0x46b   : > { %2651 = vmatpush1.bf16.msra.mxu0 %v2255_v57  ;;  %2755 = vmatpush1.bf16.msra.mxu1 %v2260_v1  ;;  %v3048_v57 = vpack.c.bf16 %v5200_v62, %v5202_v45 }
 0x46c   : > { %2652 = vmatprep.subr.bf16.mxu0 %v3657_v55  ;;  %2756 = vmatprep.subr.bf16.mxu1 %v3657_v55 }
 0x46d   : > { %2998 = vmatprep.mubr.msk.bf16.mxu1 %vm2420_vm3, %v5346_v30 }
 0x46e   : > { %2482 = vmatmul.mubr.bf16.gmra.mxu0 %v5366_v56 }
 0x46f   : > { %3012 = vmatpush1.bf16.msk.msra.mxu0 %vm4957_vm2, %v3011_v38  ;;  %2757 = vmatpush1.bf16.msra.mxu1 %v2259_v32  ;;  %v2627_v32 = vpop.permute.xlu1 %2626 }
 0x470   : > { %2654 = vmatprep.subr.bf16.mxu0 %v3657_v55  ;;  %2758 = vmatprep.subr.bf16.mxu1 %v3657_v55  ;;  %v2637_v2 = vsel %vm2335_vm4, %v2625_v13, %v2627_v32 }
 0x471   : > { %2975 = vmatprep.mubr.msk.bf16.mxu0 %vm2420_vm3, %v5381_v21 }
 0x472   : > { %2587 = vmatmul.mubr.bf16.gmra.mxu1 %v5366_v56 }
 0x473   : > { %3017 = vmatpush1.bf16.msk.msra.mxu0 %vm4957_vm2, %v3016_v54  ;;  %3044 = vmatpush1.bf16.msk.msra.mxu1 %vm4957_vm2, %v3043_v6 }
 0x474   : > { %2656 = vmatprep.subr.bf16.mxu0 %v3657_v55  ;;  %2760 = vmatprep.subr.bf16.mxu1 %v3657_v55 }
 0x475   : > { %2999 = vmatprep.mubr.msk.bf16.mxu1 %vm2420_vm3, %v5381_v21 }
 0x476   : > { %2490 = vmatmul.mubr.bf16.gmra.mxu0 %v5402_v43 }
 0x477   : > { %3022 = vmatpush1.bf16.msk.msra.mxu0 %vm4957_vm2, %v5631_v0  ;;  %3049 = vmatpush1.bf16.msk.msra.mxu1 %vm4957_vm2, %v3048_v57 }
 0x478   : > { %2658 = vmatprep.subr.bf16.mxu0 %v3657_v55  ;;  %2762 = vmatprep.subr.bf16.mxu1 %v3657_v55 }
 0x479   : > { %3028 = vmatprep.mubr.msk.bf16.mxu0 %vm2420_vm3, %v5144_v31 }
 0x47a   : > { %2595 = vmatmul.mubr.bf16.gmra.mxu1 %v5402_v43 }
 0x47b   : > { %3027 = vmatpush1.bf16.msk.msra.mxu0 %vm4957_vm2, %v3026_v34  ;;  %3054 = vmatpush1.bf16.msk.msra.mxu1 %vm4957_vm2, %v3053_v29 }
 0x47c   : > { %2764 = vmatprep.subr.bf16.mxu1 %v3657_v55  ;;  %2668 = vmatprep.subr.bf16.mxu0 %v3657_v55 }
 0x47d   : > { %3060 = vmatprep.mubr.msk.bf16.mxu1 %vm2420_vm3, %v5144_v31 }
 0x47f   : > { %3059 = vmatpush1.bf16.msk.msra.mxu1 %vm4957_vm2, %v3058_v27 }
 0x480   : > { %2774 = vmatprep.subr.bf16.mxu1 %v3657_v55 }
 0x485   : > { %v2631_v47 = vpop.permute.xlu1 %2630 }
 0x486   : > { %v2629_v5 = vpop.permute.xlu0 %2628 }
 0x487   : > { %v2638_v40 = vsel %vm2335_vm4, %v2629_v5, %v2631_v47 }
 0x48d   : > { %v2635_v1 = vpop.permute.xlu1 %2634  ;;  %v2633_v26 = vpop.permute.xlu0 %2632 }
 0x48e   : > { %v2639_v44 = vsel %vm2335_vm4, %v2633_v26, %v2635_v1 }
 0x48f   : > { %2669 = vmatpush2.bf16.msra.mxu0 %v2639_v44 }
 0x490   : > { %2670 = vmatprep.subr.bf16.mxu0 %v3657_v55 }
 0x493   : > { %2671 = vmatpush2.bf16.msra.mxu0 %v2638_v40 }
 0x494   : > { %2672 = vmatprep.subr.bf16.mxu0 %v3657_v55 }
 0x497   : > { %2673 = vmatpush2.bf16.msra.mxu0 %v2637_v2 }
 0x498   : > { %2674 = vmatprep.subr.bf16.mxu0 %v3657_v55 }
 0x4ac   : > { %v2737_v42 = vpop.permute.xlu1 %2736  ;;  %v2735_v28 = vpop.permute.xlu0 %2734 }
 0x4ad   : > { %v2744_v36 = vsel %vm2335_vm4, %v2735_v28, %v2737_v42 }
 0x4b4   : > { %v2741_v7 = vpop.permute.xlu1 %2740  ;;  %v2739_v10 = vpop.permute.xlu0 %2738 }
 0x4b5   : > { %v2745_v3 = vsel %vm2335_vm4, %v2739_v10, %v2741_v7 }
 0x4b6   : > { %2775 = vmatpush2.bf16.msra.mxu1 %v2745_v3 }
 0x4b7   : > { %2776 = vmatprep.subr.bf16.mxu1 %v3657_v55 }
 0x4b8   : > { %v2733_v31 = vpop.permute.xlu1 %2732  ;;  %v2731_v39 = vpop.permute.xlu0 %2730 }
 0x4b9   : > { %v2743_v33 = vsel %vm2335_vm4, %v2731_v39, %v2733_v31 }
 0x4ba   : > { %2777 = vmatpush2.bf16.msra.mxu1 %v2744_v36 }
 0x4bb   : > { %2778 = vmatprep.subr.bf16.mxu1 %v3657_v55 }
 0x4bc   : > { %v2623_v54 = vpop.permute.xlu1 %2622  ;;  %v2621_v41 = vpop.permute.xlu0 %2620 }
 0x4bd   : > { %v2636_v38 = vsel %vm2335_vm4, %v2621_v41, %v2623_v54 }
 0x4be   : > { %2675 = vmatpush2.bf16.msra.mxu0 %v2636_v38  ;;  %2779 = vmatpush2.bf16.msra.mxu1 %v2743_v33 }
 0x4bf   : > { %2780 = vmatprep.subr.bf16.mxu1 %v3657_v55 }
 0x4c0   : > { %v2729_v62 = vpop.permute.xlu1 %2728  ;;  %v2727_v45 = vpop.permute.xlu0 %2726 }
 0x4c1   : > { %v2742_v35 = vsel %vm2335_vm4, %v2727_v45, %v2729_v62  ;;  %2677 = vmatmul.mubr.bf16.vlgmr.msra.gmra.mxu0 %v5294_v25 }
 0x4c2   : > { %2781 = vmatpush2.bf16.msra.mxu1 %v2742_v35  ;;  %3029 = vmatprep.mubr.msk.bf16.mxu0 %vm2420_vm3, %v5301_v58 }
 0x4c5   : > { %2783 = vmatmul.mubr.bf16.vlgmr.msra.gmra.mxu1 %v5294_v25 }
 0x4c6   : > { %3061 = vmatprep.mubr.msk.bf16.mxu1 %vm2420_vm3, %v5301_v58 }
 0x4c9   : > { %2685 = vmatmul.mubr.bf16.gmra.mxu0 %v5325_v18 }
 0x4ca   : > { %3030 = vmatprep.mubr.msk.bf16.mxu0 %vm2420_vm3, %v5346_v30 }
 0x4cd   : > { %2791 = vmatmul.mubr.bf16.gmra.mxu1 %v5325_v18  ;;  %v5484_v55 = vpop.permute.xlu0 %2346  ;;  %v5486_v9 = vpop.permute.xlu1 %2351 }
 0x4ce   : > { %3062 = vmatprep.mubr.msk.bf16.mxu1 %vm2420_vm3, %v5346_v30 }
 0x4d1   : > { %2693 = vmatmul.mubr.bf16.gmra.mxu0 %v5366_v56  ;;  %v5494_v14 = vpop.permute.xlu1 %2356  ;;  %v5500_v8 = vpop.permute.xlu0 %2361 }
 0x4d2   : > { %3031 = vmatprep.mubr.msk.bf16.mxu0 %vm2420_vm3, %v5381_v21 }
 0x4d5   : > { %2799 = vmatmul.mubr.bf16.gmra.mxu1 %v5366_v56  ;;  %v5506_v53 = vpop.permute.xlu1 %2366  ;;  %v5512_v37 = vpop.permute.xlu0 %2371 }
 0x4d6   : > { %3063 = vmatprep.mubr.msk.bf16.mxu1 %vm2420_vm3, %v5381_v21 }
 0x4d9   : > { %2701 = vmatmul.mubr.bf16.gmra.mxu0 %v5402_v43  ;;  %v5518_v34 = vpop.permute.xlu1 %2376 }
 0x4dc   : > { %v5524_v1 = vpop.permute.xlu0 %2381 }
 0x4dd   : > { %2807 = vmatmul.mubr.bf16.gmra.mxu1 %v5402_v43 }
 0x51e   : > { %v2467_v23 = vpop.f32.mrf.mxu0 }
 0x51f   : > { %v2468_v60 = vadd.f32 %v2467_v23, %v5484_v55 }
 0x520   : > { %v2469_v11 = vpop.f32.mrf.mxu0 }
 0x521   : > { %2498 = vst [vmem:[%s5489_s17] sm:$0xff] %v2468_v60 }
 0x522   : > { %v2572_v52 = vpop.f32.mrf.mxu1  ;;  %v2470_v22 = vpop.f32.mrf.mxu0 }
 0x523   : > { %v2471_v61 = vadd.f32 %v2470_v22, %v5486_v9  ;;  %v2573_v19 = vadd.f32 %v2572_v52, %v5484_v55 }
 0x524   : > { %v2574_v50 = vpop.f32.mrf.mxu1  ;;  %v2472_v46 = vpop.f32.mrf.mxu0 }
 0x525   : > { %2499 = vst [vmem:[%s5489_s17 + $0x8] sm:$0xff] %v2471_v61  ;;  %3000 = vst [vmem:[%s5489_s17 + $0x40] sm:$0xff] %v2573_v19 }
 0x526   : > { %v2575_v63 = vpop.f32.mrf.mxu1  ;;  %v2475_v51 = vpop.f32.mrf.mxu0 }
 0x527   : > { %v2576_v59 = vadd.f32 %v2575_v63, %v5486_v9  ;;  %v2476_v17 = vadd.f32 %v2475_v51, %v5494_v14 }
 0x528   : > { %v2577_v48 = vpop.f32.mrf.mxu1  ;;  %v2477_v25 = vpop.f32.mrf.mxu0 }
 0x529   : > { %3001 = vst [vmem:[%s5489_s17 + $0x48] sm:$0xff] %v2576_v59  ;;  %2500 = vst [vmem:[%s5489_s17 + $0x10] sm:$0xff] %v2476_v17 }
 0x52a   : > { %v2580_v4 = vpop.f32.mrf.mxu1  ;;  %v2478_v49 = vpop.f32.mrf.mxu0 }
 0x52b   : > { %v2581_v58 = vadd.f32 %v2580_v4, %v5494_v14  ;;  %v2479_v24 = vadd.f32 %v2478_v49, %v5500_v8 }
 0x52c   : > { %v2582_v20 = vpop.f32.mrf.mxu1  ;;  %v2480_v16 = vpop.f32.mrf.mxu0 }
 0x52d   : > { %3002 = vst [vmem:[%s5489_s17 + $0x50] sm:$0xff] %v2581_v58  ;;  %2501 = vst [vmem:[%s5489_s17 + $0x18] sm:$0xff] %v2479_v24 }
 0x52e   : > { %v2583_v18 = vpop.f32.mrf.mxu1  ;;  %v2483_v15 = vpop.f32.mrf.mxu0 }
 0x52f   : > { %v2584_v12 = vadd.f32 %v2583_v18, %v5500_v8  ;;  %v2484_v30 = vadd.f32 %v2483_v15, %v5506_v53 }
 0x530   : > { %v2585_v56 = vpop.f32.mrf.mxu1  ;;  %v2485_v21 = vpop.f32.mrf.mxu0 }
 0x531   : > { %3003 = vst [vmem:[%s5489_s17 + $0x58] sm:$0xff] %v2584_v12  ;;  %2502 = vst [vmem:[%s5489_s17 + $0x20] sm:$0xff] %v2484_v30 }
 0x532   : > { %v2588_v6 = vpop.f32.mrf.mxu1  ;;  %v2486_v43 = vpop.f32.mrf.mxu0 }
 0x533   : > { %v2589_v57 = vadd.f32 %v2588_v6, %v5506_v53  ;;  %v2487_v0 = vadd.f32 %v2486_v43, %v5512_v37 }
 0x534   : > { %v2590_v29 = vpop.f32.mrf.mxu1  ;;  %v2488_v27 = vpop.f32.mrf.mxu0 }
 0x535   : > { %3004 = vst [vmem:[%s5489_s17 + $0x60] sm:$0xff] %v2589_v57  ;;  %2503 = vst [vmem:[%s5489_s17 + $0x28] sm:$0xff] %v2487_v0 }
 0x536   : > { %v2591_v13 = vpop.f32.mrf.mxu1  ;;  %v2491_v32 = vpop.f32.mrf.mxu0 }
 0x537   : > { %v2592_v47 = vadd.f32 %v2591_v13, %v5512_v37  ;;  %v2492_v5 = vadd.f32 %v2491_v32, %v5518_v34 }
 0x538   : > { %v2593_v26 = vpop.f32.mrf.mxu1  ;;  %v2493_v44 = vpop.f32.mrf.mxu0 }
 0x539   : > { %3005 = vst [vmem:[%s5489_s17 + $0x68] sm:$0xff] %v2592_v47  ;;  %2504 = vst [vmem:[%s5489_s17 + $0x30] sm:$0xff] %v2492_v5 }
 0x53a   : > { %v2596_v40 = vpop.f32.mrf.mxu1  ;;  %v2494_v2 = vpop.f32.mrf.mxu0 }
 0x53b   : > { %v2597_v42 = vadd.f32 %v2596_v40, %v5518_v34  ;;  %v2495_v28 = vadd.f32 %v2494_v2, %v5524_v1 }
 0x53c   : > { %v2598_v7 = vpop.f32.mrf.mxu1  ;;  %v2496_v10 = vpop.f32.mrf.mxu0 }
 0x53d   : > { %3006 = vst [vmem:[%s5489_s17 + $0x70] sm:$0xff] %v2597_v42  ;;  %2505 = vst [vmem:[%s5489_s17 + $0x38] sm:$0xff] %v2495_v28 }
 0x53e   : > { %v2599_v3 = vpop.f32.mrf.mxu1 }
 0x53f   : > { %v2600_v31 = vadd.f32 %v2599_v3, %v5524_v1 }
 0x540   : > { %v2601_v39 = vpop.f32.mrf.mxu1 }
 0x541   : > { %3007 = vst [vmem:[%s5489_s17 + $0x78] sm:$0xff] %v2600_v31 }
 0x581   : > { %v2678_v36 = vpop.f32.mrf.mxu0 }
 0x582   : > { %v2679_v54 = vadd.f32 %v2678_v36, %v5484_v55 }
 0x583   : > { %v2680_v41 = vpop.f32.mrf.mxu0 }
 0x584   : > { %3032 = vst [vmem:[%s5489_s17 + $0x80] sm:$0xff] %v2679_v54 }
 0x585   : > { %v2681_v33 = vpop.f32.mrf.mxu0  ;;  %v2784_v38 = vpop.f32.mrf.mxu1 }
 0x586   : > { %v2682_v62 = vadd.f32 %v2681_v33, %v5486_v9  ;;  %v2785_v45 = vadd.f32 %v2784_v38, %v5484_v55 }
 0x587   : > { %v2683_v35 = vpop.f32.mrf.mxu0  ;;  %v2786_v23 = vpop.f32.mrf.mxu1 }
 0x588   : > { %3033 = vst [vmem:[%s5489_s17 + $0x88] sm:$0xff] %v2682_v62  ;;  %3064 = vst [vmem:[%s5489_s17 + $0xc0] sm:$0xff] %v2785_v45 }
 0x589   : > { %v2686_v60 = vpop.f32.mrf.mxu0  ;;  %v2787_v11 = vpop.f32.mrf.mxu1 }
 0x58a   : > { %v2687_v52 = vadd.f32 %v2686_v60, %v5494_v14  ;;  %v2788_v22 = vadd.f32 %v2787_v11, %v5486_v9 }
 0x58b   : > { %v2688_v61 = vpop.f32.mrf.mxu0  ;;  %v2789_v19 = vpop.f32.mrf.mxu1 }
 0x58c   : > { %3034 = vst [vmem:[%s5489_s17 + $0x90] sm:$0xff] %v2687_v52  ;;  %3065 = vst [vmem:[%s5489_s17 + $0xc8] sm:$0xff] %v2788_v22 }
 0x58d   : > { %v2689_v50 = vpop.f32.mrf.mxu0  ;;  %v2792_v55 = vpop.f32.mrf.mxu1 }
 0x58e   : > { %v2690_v46 = vadd.f32 %v2689_v50, %v5500_v8  ;;  %v2793_v63 = vadd.f32 %v2792_v55, %v5494_v14 }
 0x58f   : > { %v2691_v51 = vpop.f32.mrf.mxu0  ;;  %v2794_v59 = vpop.f32.mrf.mxu1 }
 0x590   : > { %3035 = vst [vmem:[%s5489_s17 + $0x98] sm:$0xff] %v2690_v46  ;;  %3066 = vst [vmem:[%s5489_s17 + $0xd0] sm:$0xff] %v2793_v63 }
 0x591   : > { %v2694_v17 = vpop.f32.mrf.mxu0  ;;  %v2795_v9 = vpop.f32.mrf.mxu1 }
 0x592   : > { %v2695_v48 = vadd.f32 %v2694_v17, %v5506_v53  ;;  %v2796_v25 = vadd.f32 %v2795_v9, %v5500_v8 }
 0x593   : > { %v2696_v4 = vpop.f32.mrf.mxu0  ;;  %v2797_v49 = vpop.f32.mrf.mxu1 }
 0x594   : > { %3036 = vst [vmem:[%s5489_s17 + $0xa0] sm:$0xff] %v2695_v48  ;;  %3067 = vst [vmem:[%s5489_s17 + $0xd8] sm:$0xff] %v2796_v25 }
 0x595   : > { %v2697_v58 = vpop.f32.mrf.mxu0  ;;  %v2800_v14 = vpop.f32.mrf.mxu1 }
 0x596   : > { %v2698_v24 = vadd.f32 %v2697_v58, %v5512_v37  ;;  %v2801_v20 = vadd.f32 %v2800_v14, %v5506_v53 }
 0x597   : > { %v2699_v16 = vpop.f32.mrf.mxu0  ;;  %v2802_v18 = vpop.f32.mrf.mxu1 }
 0x598   : > { %3037 = vst [vmem:[%s5489_s17 + $0xa8] sm:$0xff] %v2698_v24  ;;  %3068 = vst [vmem:[%s5489_s17 + $0xe0] sm:$0xff] %v2801_v20 }
 0x599   : > { %v2702_v15 = vpop.f32.mrf.mxu0  ;;  %v2803_v8 = vpop.f32.mrf.mxu1 }
 0x59a   : > { %v2703_v12 = vadd.f32 %v2702_v15, %v5518_v34  ;;  %v2804_v30 = vadd.f32 %v2803_v8, %v5512_v37 }
 0x59b   : > { %v2704_v56 = vpop.f32.mrf.mxu0  ;;  %v2805_v21 = vpop.f32.mrf.mxu1 }
 0x59c   : > { %3038 = vst [vmem:[%s5489_s17 + $0xb0] sm:$0xff] %v2703_v12  ;;  %3069 = vst [vmem:[%s5489_s17 + $0xe8] sm:$0xff] %v2804_v30 }
 0x59d   : > { %v2705_v53 = vpop.f32.mrf.mxu0  ;;  %v2808_v6 = vpop.f32.mrf.mxu1 }
 0x59e   : > { %v2706_v43 = vadd.f32 %v2705_v53, %v5524_v1  ;;  %v2809_v57 = vadd.f32 %v2808_v6, %v5518_v34 }
 0x59f   : > { %v2707_v0 = vpop.f32.mrf.mxu0  ;;  %v2810_v29 = vpop.f32.mrf.mxu1 }
 0x5a0   : > { %3039 = vst [vmem:[%s5489_s17 + $0xb8] sm:$0xff] %v2706_v43  ;;  %3070 = vst [vmem:[%s5489_s17 + $0xf0] sm:$0xff] %v2809_v57 }
 0x5a1   : > { %v2811_v37 = vpop.f32.mrf.mxu1 }
 0x5a2   : > { %v2812_v34 = vadd.f32 %v2811_v37, %v5524_v1 }
 0x5a3   : > { %v2813_v27 = vpop.f32.mrf.mxu1 }
 0x5a4   : > { %3071 = vst [vmem:[%s5489_s17 + $0xf8] sm:$0xff] %v2812_v34 }
 0x5a5   : > { %3608 = shalt.err (!%p3605_p3)
}
 0x5a6   : > { %s3609_s14 = scalar_lea.hbm %s5569_s24, 4096  ;;  %s3613_s21 = scalar_lea.hbm %s5626_s9, 8192 }
 0x5a7   : > { %p3610_p4 = scmp.ne.s32.totalorder %s5569_s24, %s3609_s14  ;;  %p3614_p9 = scmp.lt.s32.totalorder %s5569_s24, %s5626_s9 }
 0x5a8   : > { %p3615_p10 = scmp.lt.s32.totalorder %s3613_s21, %s3609_s14 }
 0x5a9   : > { %p3611_p7 = pnand %p3610_p4, %p3751_p5 }
 0x5aa   : > { %p3616_p11 = por %p3615_p10, %p3614_p9 }
 0x5ab   : > { %p3612_p8 = pneg %p3611_p7 }
 0x5ad   : > { %p3617_p12 = pnand %p3616_p11, %p3612_p8 }
 0x5af   : > { %3620 = shalt.err (!%p3617_p12)
}
 0x5b0   : > { %s3661_s26 = smov 128   ;;  %s3662_s27 = smov 8  }
 0x5b1   : > { %3193 = dma.vmem_to_hbm [thread:$0]  (%p3751_p5), %s5571_s25, 4096, %s5569_s24, %s5577_s13, %s3661_s26, %s3661_s26, %s3662_s27  }
 0x5b2 PF: > { %p3199_p13 = scmp.ge.s32.totalorder %s3655_s12, 2  ;;  %s2854_s28 = sand.u32 1, %s3643_s30  }
 0x5b3   : > { %s2855_s29 = scalar_lea.sflag [#allocation3], %s2854_s28 }
 0x5b4   : > { %p3196_p0 = pnand %p3199_p13, %p3755_p6 }
 0x5b6   : > { %p3197_p1 = pneg %p3196_p0 }
 0x5b8   : > { %3638 = dma.done.wait (%p3197_p1), %s2855_s29, 4096  }
 0x5b9   : > { %3640 = vsyncadd (%p3197_p1), %s2855_s29, 4294963200  ;;  %p19_p2 = scmp.ge.s32.totalorder %s3738_s15, 4   ;;  %s5632_s30 = smov %s3647_s10 }
 0x5ba   : > { %s5633_s10 = smov %s3651_s11  ;;  %s5634_s11 = smov %s3749_s18 }
 0x5bb   : > { %s5635_s12 = smov %s3738_s15  ;;  %21 = sbr.rel (!%p19_p2) target bundleno = 3 (0x3), region = 94 }
 0x5c0   :  { %2860 = vsyncpa [#allocation3], 1 }
 0x5c1   :  { %2862 = vsyncpa [#allocation3 + $0x1], 1 }

</bundles_post_ra>
